<compile_context>
chip_gen: v7x
topology: tpu7x:2x2x1
jax: 0.10.0
libtpu: 0.0.40
codegen_flags: <defaults>
</compile_context>

<pallas_src>
import functools

import numpy as np
import jax
import jax.numpy as jnp
from jax.experimental import pallas as pl
from jax.experimental.pallas import tpu as pltpu


# ----------------------------------------------------------------------------
# Fused kernel: pair gather + memory-bank enqueue.
# Pure data movement: HBM->HBM DMAs driven by a packed scalar-prefetch index
# table.  Packed layout of idx_ref (length 5*K):
#   [0*K + j] anchor source row in est1
#   [1*K + j] independent-partner source row in the memory bank
#   [2*K + j] dependent-partner source row in est1
#   [3*K + j] bank slot to enqueue row j into
#   [4*K + j] keep flag (1 -> enqueue row j, 0 -> skip)
# ----------------------------------------------------------------------------
def _fused_pair_sample_kernel(G, K, idx_ref, est_hbm, bank_hbm,
                              anchor_out, ind_out, dep_out, bank_out, sems):
    g = pl.program_id(0)
    base = g * G

    # Hoist ALL scalar index reads before any DMA wait (a .wait() breaks SMEM
    # sst->sld forwarding, so post-wait scalar reads would stall).
    a_i = [idx_ref[base + jl] for jl in range(G)]
    b_i = [idx_ref[K + base + jl] for jl in range(G)]
    d_i = [idx_ref[2 * K + base + jl] for jl in range(G)]
    s_i = [idx_ref[3 * K + base + jl] for jl in range(G)]
    keep = [idx_ref[4 * K + base + jl] for jl in range(G)]

    # Phase 1: start all gather DMAs (3 per pair) so up to 3*G are in flight.
    for jl in range(G):
        j = base + jl
        pltpu.make_async_copy(est_hbm.at[a_i[jl]], anchor_out.at[j],
                              sems.at[jl, 0]).start()
        pltpu.make_async_copy(bank_hbm.at[b_i[jl]], ind_out.at[j],
                              sems.at[jl, 1]).start()
        pltpu.make_async_copy(est_hbm.at[d_i[jl]], dep_out.at[j],
                              sems.at[jl, 2]).start()

    # Phase 2: wait the bank reads (static-index descriptors: a wait only needs
    # the transfer shape + semaphore) BEFORE any enqueue write may clobber a
    # slot, so the independent partner samples the pre-update bank.
    for jl in range(G):
        pltpu.make_async_copy(bank_hbm.at[0], ind_out.at[0],
                              sems.at[jl, 1]).wait()

    # Phase 3: start enqueue writes (valid components -> bank slots).
    for jl in range(G):
        @pl.when(keep[jl] != 0)
        def _():
            pltpu.make_async_copy(est_hbm.at[a_i[jl]], bank_out.at[s_i[jl]],
                                  sems.at[jl, 3]).start()

    # Phase 4: drain the remaining DMAs.
    for jl in range(G):
        pltpu.make_async_copy(est_hbm.at[0], anchor_out.at[0],
                              sems.at[jl, 0]).wait()
        pltpu.make_async_copy(est_hbm.at[0], dep_out.at[0],
                              sems.at[jl, 2]).wait()
    for jl in range(G):
        @pl.when(keep[jl] != 0)
        def _():
            pltpu.make_async_copy(est_hbm.at[0], bank_out.at[0],
                                  sems.at[jl, 3]).wait()


def fused_pair_sample(est1, memory_bank, a_idx, bank_idx, dep_idx, slot_idx,
                      keep, *, group_size=32):
    """Returns (independent_pair [K,2,F,T], dependent_pair [K,2,F,T], new_bank).

    Rows j >= n_valid of the pair tensors are defined but meaningless padding
    (duplicates of row-0 data); callers slice [:n_valid].
    """
    N, F, T = est1.shape
    Nbank = memory_bank.shape[0]
    K = int(a_idx.shape[0])
    G = max(1, min(group_size, K))
    num_groups = pl.cdiv(K, G)
    Kp = num_groups * G
    pad = Kp - K
    if pad:  # keep every unconditional SMEM read / output row in bounds
        padz = lambda x: jnp.pad(x, (0, pad))
        a_idx, bank_idx, dep_idx, slot_idx, keep = map(
            padz, (a_idx, bank_idx, dep_idx, slot_idx, keep))
    idx = jnp.concatenate([a_idx, bank_idx, dep_idx, slot_idx, keep]
                          ).astype(jnp.int32)

    kernel = functools.partial(_fused_pair_sample_kernel, G, Kp)
    anchor, ind_p, dep_p, new_bank = pl.pallas_call(
        kernel,
        out_shape=(jax.ShapeDtypeStruct((Kp, F, T), est1.dtype),
                   jax.ShapeDtypeStruct((Kp, F, T), est1.dtype),
                   jax.ShapeDtypeStruct((Kp, F, T), est1.dtype),
                   jax.ShapeDtypeStruct((Nbank, F, T), memory_bank.dtype)),
        grid_spec=pltpu.PrefetchScalarGridSpec(
            num_scalar_prefetch=1,
            grid=(num_groups,),
            in_specs=[pl.BlockSpec(memory_space=pl.ANY),    # est1 (HBM)
                      pl.BlockSpec(memory_space=pl.ANY)],   # bank (HBM, aliased)
            out_specs=(pl.BlockSpec(memory_space=pl.ANY),
                       pl.BlockSpec(memory_space=pl.ANY),
                       pl.BlockSpec(memory_space=pl.ANY),
                       pl.BlockSpec(memory_space=pl.ANY)),
            scratch_shapes=[pltpu.SemaphoreType.DMA((G, 4))]),
        # flat inputs: 0=idx (prefetch), 1=est1, 2=memory_bank -> output 3
        input_output_aliases={2: 3},
        # "arbitrary": bank reads/writes create a real cross-step dependency
        # once num_groups > 1 (with the default single step this is moot).
        compiler_params=pltpu.CompilerParams(
            dimension_semantics=("arbitrary",)),
    )(idx, est1, memory_bank)

    if pad:
        anchor, ind_p, dep_p = anchor[:K], ind_p[:K], dep_p[:K]
    independent_pair = jnp.stack([anchor, ind_p], axis=1)
    dependent_pair = jnp.stack([anchor, dep_p], axis=1)
    return independent_pair, dependent_pair, new_bank


# ----------------------------------------------------------------------------
# PairSampleModule forward (functional; returns updated bank state too).
# Fully traceable: shapes are static, all index math stays on device.
# ----------------------------------------------------------------------------
def pair_sample_forward(est_mel_mag, components_valid_nums, memory_bank,
                        bank_write_idx, rng_key):
    B, S, C, F, T = est_mel_mag.shape
    N = B * S * C
    N2 = S * C
    Nbank = memory_bank.shape[0]

    est1 = est_mel_mag.reshape(N, F, T)
    valid = components_valid_nums.reshape(N) != 0
    n_valid = jnp.sum(valid.astype(jnp.int32))

    # Compacted valid component indices (valid first, original order); rows
    # >= n_valid are padding (index 0, harmless duplicates in the outputs).
    order = jnp.argsort(jnp.logical_not(valid).astype(jnp.int32),
                        stable=True).astype(jnp.int32)
    row = jnp.arange(N, dtype=jnp.int32)
    row_is_real = row < n_valid
    a_idx = jnp.where(row_is_real, order, 0).astype(jnp.int32)

    key_bank, key_dep = jax.random.split(rng_key)

    # Independent partner: random sample from the (pre-update) memory bank.
    # TODO(synk): random_sample_components_from_bank is not defined in the
    # source; implemented as a uniform draw over bank slots of the pre-update
    # bank (the original interleaves sample-then-enqueue per component).
    # TODO(synk): the opts['sample_2_from_bank'] branch is not implemented.
    bank_idx = jax.random.randint(key_bank, (N,), 0, Nbank, dtype=jnp.int32)

    # Dependent partner: uniform re-draw among valid components of the SAME
    # mixture.  TODO(synk): dependent_sample_from_est_mel_mag is not defined
    # in the source; this deterministic uniform re-draw stands in for it.
    valid2 = valid.reshape(B, N2)
    cnt_per_mix = jnp.sum(valid2.astype(jnp.int32), axis=1)            # [B]
    local_order = jnp.argsort(jnp.logical_not(valid2).astype(jnp.int32),
                              axis=1, stable=True).astype(jnp.int32)   # [B,N2]
    mix = a_idx // N2
    u = jax.random.uniform(key_dep, (N,), dtype=jnp.float32)
    cm = jnp.maximum(cnt_per_mix[mix], 1)
    r = jnp.minimum((u * cm.astype(jnp.float32)).astype(jnp.int32), cm - 1)
    b_dep = (mix * N2 + local_order[mix, r]).astype(jnp.int32)

    # Memory-bank enqueue: j-th valid component -> slot (write_idx + j) % Nbank.
    # If n_valid > Nbank, only the last writer per slot is kept (matches the
    # sequential torch enqueue).  In production, donate the bank buffer to the
    # jitted fn so the input/output aliasing is truly in-place.
    slots = ((bank_write_idx + row) % Nbank).astype(jnp.int32)
    keep = (row_is_real & (row >= n_valid - Nbank)).astype(jnp.int32)

    independent_pair, dependent_pair, new_bank = fused_pair_sample(
        est1, memory_bank, a_idx, bank_idx, b_dep, slots, keep)
    new_write_idx = (bank_write_idx + n_valid) % Nbank

    return independent_pair, dependent_pair, new_bank, new_write_idx, n_valid


# ----------------------------------------------------------------------------
if __name__ == "__main__":
    # small shapes: B=2 mixtures, S=2, C=2 (=> 4 components per mixture),
    # F=16 mel bins, T=128 frames, bank_size=8
    B, S, C, F, T = 2, 2, 2, 16, 128
    BANK_N = 8

    key = jax.random.PRNGKey(0)
    k_est, k_bank, k_fwd = jax.random.split(key, 3)

    est_mel_mag = jax.random.normal(k_est, (B, S, C, F, T), dtype=jnp.float32)
    components_valid_nums = jnp.array(
        [1, 0, 1, 1, 0, 1, 1, 1], dtype=jnp.int32).reshape(B, S, C)
    # Memorybank.__init__: torch.randn([N, F, T]) -> deterministic init here
    memory_bank = jax.random.normal(k_bank, (BANK_N, F, T), dtype=jnp.float32)

    fwd = jax.jit(pair_sample_forward)
    (independent_pair, dependent_pair,
     new_bank, new_write_idx, n_valid) = fwd(
        est_mel_mag, components_valid_nums, memory_bank, jnp.int32(0), k_fwd)
    jax.block_until_ready((independent_pair, dependent_pair, new_bank))

    # ---- sanity checks (deterministic structure, independent of RNG draws) --
    est1_np = np.asarray(est_mel_mag).reshape(-1, F, T)
    bank_np = np.asarray(memory_bank)
    valid_np = np.asarray(components_valid_nums).reshape(-1) != 0
    vidx = np.nonzero(valid_np)[0]
    nv = int(n_valid)
    N2 = S * C

    assert nv == len(vidx)
    assert independent_pair.shape == (B * S * C, 2, F, T)
    assert dependent_pair.shape == (B * S * C, 2, F, T)
    assert new_bank.shape == (BANK_N, F, T)

    ind = np.asarray(independent_pair)
    dep = np.asarray(dependent_pair)
    nb = np.asarray(new_bank)

    # first member of every valid pair is the valid component itself
    np.testing.assert_allclose(ind[:nv, 0], est1_np[vidx])
    np.testing.assert_allclose(dep[:nv, 0], est1_np[vidx])
    # independent partner must be a row of the pre-update bank
    for j in range(nv):
        d = np.abs(bank_np - ind[j, 1]).reshape(BANK_N, -1).max(axis=1)
        assert d.min() < 1e-6
    # dependent partner must be a valid component of the same mixture
    for j in range(nv):
        m = int(vidx[j]) // N2
        cand_idx = [m * N2 + l for l in range(N2) if valid_np[m * N2 + l]]
        cands = est1_np[cand_idx]
        d = np.abs(cands - dep[j, 1]).reshape(len(cand_idx), -1).max(axis=1)
        assert d.min() < 1e-6
    # bank enqueue: first nv slots hold the enqueued components, rest unchanged
    np.testing.assert_allclose(nb[:nv], est1_np[vidx])
    np.testing.assert_allclose(nb[nv:], bank_np[nv:])
    assert int(new_write_idx) == nv % BANK_N

    print("KERNEL_OK")
</pallas_src>

<mosaic_0001>
module attributes {stable_mosaic.version = 11 : i64} {
  func.func @_fused_pair_sample_kernel(%arg0: i32, %arg1: memref<40xi32, #tpu.memory_space<smem>>, %arg2: memref<8x16x128xf32, #tpu.memory_space<any>>, %arg3: memref<8x16x128xf32, #tpu.memory_space<any>>, %arg4: memref<8x16x128xf32, #tpu.memory_space<any>>, %arg5: memref<8x16x128xf32, #tpu.memory_space<any>>, %arg6: memref<8x16x128xf32, #tpu.memory_space<any>>, %arg7: memref<8x16x128xf32, #tpu.memory_space<any>>, %arg8: memref<8x4x!tpu.dma_semaphore, #tpu.memory_space<semaphore_mem>>) attributes {dimension_semantics = [#tpu.dimension_semantics<arbitrary>], iteration_bounds = array<i64: 1>, scalar_prefetch = 1 : i64, scratch_operands = 1 : i64, tpu.core_type = #tpu.core_type<tc>, window_params = [{}, {}, {}, {}, {}, {}]} {
    %c8_i32 = arith.constant 8 : i32
    %0 = arith.muli %arg0, %c8_i32 : i32
    %c0_i32 = arith.constant 0 : i32
    %1 = arith.addi %0, %c0_i32 : i32
    %2 = arith.index_cast %1 : i32 to index
    %3 = memref.load %arg1[%2] : memref<40xi32, #tpu.memory_space<smem>>
    %c1_i32 = arith.constant 1 : i32
    %4 = arith.addi %0, %c1_i32 : i32
    %5 = arith.index_cast %4 : i32 to index
    %6 = memref.load %arg1[%5] : memref<40xi32, #tpu.memory_space<smem>>
    %c2_i32 = arith.constant 2 : i32
    %7 = arith.addi %0, %c2_i32 : i32
    %8 = arith.index_cast %7 : i32 to index
    %9 = memref.load %arg1[%8] : memref<40xi32, #tpu.memory_space<smem>>
    %c3_i32 = arith.constant 3 : i32
    %10 = arith.addi %0, %c3_i32 : i32
    %11 = arith.index_cast %10 : i32 to index
    %12 = memref.load %arg1[%11] : memref<40xi32, #tpu.memory_space<smem>>
    %c4_i32 = arith.constant 4 : i32
    %13 = arith.addi %0, %c4_i32 : i32
    %14 = arith.index_cast %13 : i32 to index
    %15 = memref.load %arg1[%14] : memref<40xi32, #tpu.memory_space<smem>>
    %c5_i32 = arith.constant 5 : i32
    %16 = arith.addi %0, %c5_i32 : i32
    %17 = arith.index_cast %16 : i32 to index
    %18 = memref.load %arg1[%17] : memref<40xi32, #tpu.memory_space<smem>>
    %c6_i32 = arith.constant 6 : i32
    %19 = arith.addi %0, %c6_i32 : i32
    %20 = arith.index_cast %19 : i32 to index
    %21 = memref.load %arg1[%20] : memref<40xi32, #tpu.memory_space<smem>>
    %c7_i32 = arith.constant 7 : i32
    %22 = arith.addi %0, %c7_i32 : i32
    %23 = arith.index_cast %22 : i32 to index
    %24 = memref.load %arg1[%23] : memref<40xi32, #tpu.memory_space<smem>>
    %c8_i32_0 = arith.constant 8 : i32
    %25 = arith.addi %c8_i32_0, %0 : i32
    %c0_i32_1 = arith.constant 0 : i32
    %26 = arith.addi %25, %c0_i32_1 : i32
    %27 = arith.index_cast %26 : i32 to index
    %28 = memref.load %arg1[%27] : memref<40xi32, #tpu.memory_space<smem>>
    %c8_i32_2 = arith.constant 8 : i32
    %29 = arith.addi %c8_i32_2, %0 : i32
    %c1_i32_3 = arith.constant 1 : i32
    %30 = arith.addi %29, %c1_i32_3 : i32
    %31 = arith.index_cast %30 : i32 to index
    %32 = memref.load %arg1[%31] : memref<40xi32, #tpu.memory_space<smem>>
    %c8_i32_4 = arith.constant 8 : i32
    %33 = arith.addi %c8_i32_4, %0 : i32
    %c2_i32_5 = arith.constant 2 : i32
    %34 = arith.addi %33, %c2_i32_5 : i32
    %35 = arith.index_cast %34 : i32 to index
    %36 = memref.load %arg1[%35] : memref<40xi32, #tpu.memory_space<smem>>
    %c8_i32_6 = arith.constant 8 : i32
    %37 = arith.addi %c8_i32_6, %0 : i32
    %c3_i32_7 = arith.constant 3 : i32
    %38 = arith.addi %37, %c3_i32_7 : i32
    %39 = arith.index_cast %38 : i32 to index
    %40 = memref.load %arg1[%39] : memref<40xi32, #tpu.memory_space<smem>>
    %c8_i32_8 = arith.constant 8 : i32
    %41 = arith.addi %c8_i32_8, %0 : i32
    %c4_i32_9 = arith.constant 4 : i32
    %42 = arith.addi %41, %c4_i32_9 : i32
    %43 = arith.index_cast %42 : i32 to index
    %44 = memref.load %arg1[%43] : memref<40xi32, #tpu.memory_space<smem>>
    %c8_i32_10 = arith.constant 8 : i32
    %45 = arith.addi %c8_i32_10, %0 : i32
    %c5_i32_11 = arith.constant 5 : i32
    %46 = arith.addi %45, %c5_i32_11 : i32
    %47 = arith.index_cast %46 : i32 to index
    %48 = memref.load %arg1[%47] : memref<40xi32, #tpu.memory_space<smem>>
    %c8_i32_12 = arith.constant 8 : i32
    %49 = arith.addi %c8_i32_12, %0 : i32
    %c6_i32_13 = arith.constant 6 : i32
    %50 = arith.addi %49, %c6_i32_13 : i32
    %51 = arith.index_cast %50 : i32 to index
    %52 = memref.load %arg1[%51] : memref<40xi32, #tpu.memory_space<smem>>
    %c8_i32_14 = arith.constant 8 : i32
    %53 = arith.addi %c8_i32_14, %0 : i32
    %c7_i32_15 = arith.constant 7 : i32
    %54 = arith.addi %53, %c7_i32_15 : i32
    %55 = arith.index_cast %54 : i32 to index
    %56 = memref.load %arg1[%55] : memref<40xi32, #tpu.memory_space<smem>>
    %c16_i32 = arith.constant 16 : i32
    %57 = arith.addi %c16_i32, %0 : i32
    %c0_i32_16 = arith.constant 0 : i32
    %58 = arith.addi %57, %c0_i32_16 : i32
    %59 = arith.index_cast %58 : i32 to index
    %60 = memref.load %arg1[%59] : memref<40xi32, #tpu.memory_space<smem>>
    %c16_i32_17 = arith.constant 16 : i32
    %61 = arith.addi %c16_i32_17, %0 : i32
    %c1_i32_18 = arith.constant 1 : i32
    %62 = arith.addi %61, %c1_i32_18 : i32
    %63 = arith.index_cast %62 : i32 to index
    %64 = memref.load %arg1[%63] : memref<40xi32, #tpu.memory_space<smem>>
    %c16_i32_19 = arith.constant 16 : i32
    %65 = arith.addi %c16_i32_19, %0 : i32
    %c2_i32_20 = arith.constant 2 : i32
    %66 = arith.addi %65, %c2_i32_20 : i32
    %67 = arith.index_cast %66 : i32 to index
    %68 = memref.load %arg1[%67] : memref<40xi32, #tpu.memory_space<smem>>
    %c16_i32_21 = arith.constant 16 : i32
    %69 = arith.addi %c16_i32_21, %0 : i32
    %c3_i32_22 = arith.constant 3 : i32
    %70 = arith.addi %69, %c3_i32_22 : i32
    %71 = arith.index_cast %70 : i32 to index
    %72 = memref.load %arg1[%71] : memref<40xi32, #tpu.memory_space<smem>>
    %c16_i32_23 = arith.constant 16 : i32
    %73 = arith.addi %c16_i32_23, %0 : i32
    %c4_i32_24 = arith.constant 4 : i32
    %74 = arith.addi %73, %c4_i32_24 : i32
    %75 = arith.index_cast %74 : i32 to index
    %76 = memref.load %arg1[%75] : memref<40xi32, #tpu.memory_space<smem>>
    %c16_i32_25 = arith.constant 16 : i32
    %77 = arith.addi %c16_i32_25, %0 : i32
    %c5_i32_26 = arith.constant 5 : i32
    %78 = arith.addi %77, %c5_i32_26 : i32
    %79 = arith.index_cast %78 : i32 to index
    %80 = memref.load %arg1[%79] : memref<40xi32, #tpu.memory_space<smem>>
    %c16_i32_27 = arith.constant 16 : i32
    %81 = arith.addi %c16_i32_27, %0 : i32
    %c6_i32_28 = arith.constant 6 : i32
    %82 = arith.addi %81, %c6_i32_28 : i32
    %83 = arith.index_cast %82 : i32 to index
    %84 = memref.load %arg1[%83] : memref<40xi32, #tpu.memory_space<smem>>
    %c16_i32_29 = arith.constant 16 : i32
    %85 = arith.addi %c16_i32_29, %0 : i32
    %c7_i32_30 = arith.constant 7 : i32
    %86 = arith.addi %85, %c7_i32_30 : i32
    %87 = arith.index_cast %86 : i32 to index
    %88 = memref.load %arg1[%87] : memref<40xi32, #tpu.memory_space<smem>>
    %c24_i32 = arith.constant 24 : i32
    %89 = arith.addi %c24_i32, %0 : i32
    %c0_i32_31 = arith.constant 0 : i32
    %90 = arith.addi %89, %c0_i32_31 : i32
    %91 = arith.index_cast %90 : i32 to index
    %92 = memref.load %arg1[%91] : memref<40xi32, #tpu.memory_space<smem>>
    %c24_i32_32 = arith.constant 24 : i32
    %93 = arith.addi %c24_i32_32, %0 : i32
    %c1_i32_33 = arith.constant 1 : i32
    %94 = arith.addi %93, %c1_i32_33 : i32
    %95 = arith.index_cast %94 : i32 to index
    %96 = memref.load %arg1[%95] : memref<40xi32, #tpu.memory_space<smem>>
    %c24_i32_34 = arith.constant 24 : i32
    %97 = arith.addi %c24_i32_34, %0 : i32
    %c2_i32_35 = arith.constant 2 : i32
    %98 = arith.addi %97, %c2_i32_35 : i32
    %99 = arith.index_cast %98 : i32 to index
    %100 = memref.load %arg1[%99] : memref<40xi32, #tpu.memory_space<smem>>
    %c24_i32_36 = arith.constant 24 : i32
    %101 = arith.addi %c24_i32_36, %0 : i32
    %c3_i32_37 = arith.constant 3 : i32
    %102 = arith.addi %101, %c3_i32_37 : i32
    %103 = arith.index_cast %102 : i32 to index
    %104 = memref.load %arg1[%103] : memref<40xi32, #tpu.memory_space<smem>>
    %c24_i32_38 = arith.constant 24 : i32
    %105 = arith.addi %c24_i32_38, %0 : i32
    %c4_i32_39 = arith.constant 4 : i32
    %106 = arith.addi %105, %c4_i32_39 : i32
    %107 = arith.index_cast %106 : i32 to index
    %108 = memref.load %arg1[%107] : memref<40xi32, #tpu.memory_space<smem>>
    %c24_i32_40 = arith.constant 24 : i32
    %109 = arith.addi %c24_i32_40, %0 : i32
    %c5_i32_41 = arith.constant 5 : i32
    %110 = arith.addi %109, %c5_i32_41 : i32
    %111 = arith.index_cast %110 : i32 to index
    %112 = memref.load %arg1[%111] : memref<40xi32, #tpu.memory_space<smem>>
    %c24_i32_42 = arith.constant 24 : i32
    %113 = arith.addi %c24_i32_42, %0 : i32
    %c6_i32_43 = arith.constant 6 : i32
    %114 = arith.addi %113, %c6_i32_43 : i32
    %115 = arith.index_cast %114 : i32 to index
    %116 = memref.load %arg1[%115] : memref<40xi32, #tpu.memory_space<smem>>
    %c24_i32_44 = arith.constant 24 : i32
    %117 = arith.addi %c24_i32_44, %0 : i32
    %c7_i32_45 = arith.constant 7 : i32
    %118 = arith.addi %117, %c7_i32_45 : i32
    %119 = arith.index_cast %118 : i32 to index
    %120 = memref.load %arg1[%119] : memref<40xi32, #tpu.memory_space<smem>>
    %c32_i32 = arith.constant 32 : i32
    %121 = arith.addi %c32_i32, %0 : i32
    %c0_i32_46 = arith.constant 0 : i32
    %122 = arith.addi %121, %c0_i32_46 : i32
    %123 = arith.index_cast %122 : i32 to index
    %124 = memref.load %arg1[%123] : memref<40xi32, #tpu.memory_space<smem>>
    %c32_i32_47 = arith.constant 32 : i32
    %125 = arith.addi %c32_i32_47, %0 : i32
    %c1_i32_48 = arith.constant 1 : i32
    %126 = arith.addi %125, %c1_i32_48 : i32
    %127 = arith.index_cast %126 : i32 to index
    %128 = memref.load %arg1[%127] : memref<40xi32, #tpu.memory_space<smem>>
    %c32_i32_49 = arith.constant 32 : i32
    %129 = arith.addi %c32_i32_49, %0 : i32
    %c2_i32_50 = arith.constant 2 : i32
    %130 = arith.addi %129, %c2_i32_50 : i32
    %131 = arith.index_cast %130 : i32 to index
    %132 = memref.load %arg1[%131] : memref<40xi32, #tpu.memory_space<smem>>
    %c32_i32_51 = arith.constant 32 : i32
    %133 = arith.addi %c32_i32_51, %0 : i32
    %c3_i32_52 = arith.constant 3 : i32
    %134 = arith.addi %133, %c3_i32_52 : i32
    %135 = arith.index_cast %134 : i32 to index
    %136 = memref.load %arg1[%135] : memref<40xi32, #tpu.memory_space<smem>>
    %c32_i32_53 = arith.constant 32 : i32
    %137 = arith.addi %c32_i32_53, %0 : i32
    %c4_i32_54 = arith.constant 4 : i32
    %138 = arith.addi %137, %c4_i32_54 : i32
    %139 = arith.index_cast %138 : i32 to index
    %140 = memref.load %arg1[%139] : memref<40xi32, #tpu.memory_space<smem>>
    %c32_i32_55 = arith.constant 32 : i32
    %141 = arith.addi %c32_i32_55, %0 : i32
    %c5_i32_56 = arith.constant 5 : i32
    %142 = arith.addi %141, %c5_i32_56 : i32
    %143 = arith.index_cast %142 : i32 to index
    %144 = memref.load %arg1[%143] : memref<40xi32, #tpu.memory_space<smem>>
    %c32_i32_57 = arith.constant 32 : i32
    %145 = arith.addi %c32_i32_57, %0 : i32
    %c6_i32_58 = arith.constant 6 : i32
    %146 = arith.addi %145, %c6_i32_58 : i32
    %147 = arith.index_cast %146 : i32 to index
    %148 = memref.load %arg1[%147] : memref<40xi32, #tpu.memory_space<smem>>
    %c32_i32_59 = arith.constant 32 : i32
    %149 = arith.addi %c32_i32_59, %0 : i32
    %c7_i32_60 = arith.constant 7 : i32
    %150 = arith.addi %149, %c7_i32_60 : i32
    %151 = arith.index_cast %150 : i32 to index
    %152 = memref.load %arg1[%151] : memref<40xi32, #tpu.memory_space<smem>>
    %c0_i32_61 = arith.constant 0 : i32
    %153 = arith.addi %0, %c0_i32_61 : i32
    %c0_i32_62 = arith.constant 0 : i32
    %c0_i32_63 = arith.constant 0 : i32
    %c0_i32_64 = arith.constant 0 : i32
    %c0_i32_65 = arith.constant 0 : i32
    %154 = tpu.memref_slice %arg2[%3, %c0_i32_64, %c0_i32_65] : memref<8x16x128xf32, #tpu.memory_space<any>> -> memref<1x16x128xf32, #tpu.memory_space<any>>
    %155 = tpu.memref_squeeze %154 : memref<1x16x128xf32, #tpu.memory_space<any>> -> memref<16x128xf32, #tpu.memory_space<any>>
    %c0_i32_66 = arith.constant 0 : i32
    %c0_i32_67 = arith.constant 0 : i32
    %156 = tpu.memref_slice %arg4[%153, %c0_i32_66, %c0_i32_67] : memref<8x16x128xf32, #tpu.memory_space<any>> -> memref<1x16x128xf32, #tpu.memory_space<any>>
    %157 = tpu.memref_squeeze %156 : memref<1x16x128xf32, #tpu.memory_space<any>> -> memref<16x128xf32, #tpu.memory_space<any>>
    %158 = tpu.memref_slice %arg8[%c0_i32_62, %c0_i32_63] : memref<8x4x!tpu.dma_semaphore, #tpu.memory_space<semaphore_mem>> -> memref<1x1x!tpu.dma_semaphore, #tpu.memory_space<semaphore_mem>>
    %159 = tpu.memref_squeeze %158 : memref<1x1x!tpu.dma_semaphore, #tpu.memory_space<semaphore_mem>> -> memref<!tpu.dma_semaphore, #tpu.memory_space<semaphore_mem>>
    tpu.enqueue_dma source(%155 : memref<16x128xf32, #tpu.memory_space<any>>) target(%157 : memref<16x128xf32, #tpu.memory_space<any>>) target_semaphore(%159 : memref<!tpu.dma_semaphore, #tpu.memory_space<semaphore_mem>>)
    %c0_i32_68 = arith.constant 0 : i32
    %c1_i32_69 = arith.constant 1 : i32
    %c0_i32_70 = arith.constant 0 : i32
    %c0_i32_71 = arith.constant 0 : i32
    %160 = tpu.memref_slice %arg3[%28, %c0_i32_70, %c0_i32_71] : memref<8x16x128xf32, #tpu.memory_space<any>> -> memref<1x16x128xf32, #tpu.memory_space<any>>
    %161 = tpu.memref_squeeze %160 : memref<1x16x128xf32, #tpu.memory_space<any>> -> memref<16x128xf32, #tpu.memory_space<any>>
    %c0_i32_72 = arith.constant 0 : i32
    %c0_i32_73 = arith.constant 0 : i32
    %162 = tpu.memref_slice %arg5[%153, %c0_i32_72, %c0_i32_73] : memref<8x16x128xf32, #tpu.memory_space<any>> -> memref<1x16x128xf32, #tpu.memory_space<any>>
    %163 = tpu.memref_squeeze %162 : memref<1x16x128xf32, #tpu.memory_space<any>> -> memref<16x128xf32, #tpu.memory_space<any>>
    %164 = tpu.memref_slice %arg8[%c0_i32_68, %c1_i32_69] : memref<8x4x!tpu.dma_semaphore, #tpu.memory_space<semaphore_mem>> -> memref<1x1x!tpu.dma_semaphore, #tpu.memory_space<semaphore_mem>>
    %165 = tpu.memref_squeeze %164 : memref<1x1x!tpu.dma_semaphore, #tpu.memory_space<semaphore_mem>> -> memref<!tpu.dma_semaphore, #tpu.memory_space<semaphore_mem>>
    tpu.enqueue_dma source(%161 : memref<16x128xf32, #tpu.memory_space<any>>) target(%163 : memref<16x128xf32, #tpu.memory_space<any>>) target_semaphore(%165 : memref<!tpu.dma_semaphore, #tpu.memory_space<semaphore_mem>>)
    %c0_i32_74 = arith.constant 0 : i32
    %c2_i32_75 = arith.constant 2 : i32
    %c0_i32_76 = arith.constant 0 : i32
    %c0_i32_77 = arith.constant 0 : i32
    %166 = tpu.memref_slice %arg2[%60, %c0_i32_76, %c0_i32_77] : memref<8x16x128xf32, #tpu.memory_space<any>> -> memref<1x16x128xf32, #tpu.memory_space<any>>
    %167 = tpu.memref_squeeze %166 : memref<1x16x128xf32, #tpu.memory_space<any>> -> memref<16x128xf32, #tpu.memory_space<any>>
    %c0_i32_78 = arith.constant 0 : i32
    %c0_i32_79 = arith.constant 0 : i32
    %168 = tpu.memref_slice %arg6[%153, %c0_i32_78, %c0_i32_79] : memref<8x16x128xf32, #tpu.memory_space<any>> -> memref<1x16x128xf32, #tpu.memory_space<any>>
    %169 = tpu.memref_squeeze %168 : memref<1x16x128xf32, #tpu.memory_space<any>> -> memref<16x128xf32, #tpu.memory_space<any>>
    %170 = tpu.memref_slice %arg8[%c0_i32_74, %c2_i32_75] : memref<8x4x!tpu.dma_semaphore, #tpu.memory_space<semaphore_mem>> -> memref<1x1x!tpu.dma_semaphore, #tpu.memory_space<semaphore_mem>>
    %171 = tpu.memref_squeeze %170 : memref<1x1x!tpu.dma_semaphore, #tpu.memory_space<semaphore_mem>> -> memref<!tpu.dma_semaphore, #tpu.memory_space<semaphore_mem>>
    tpu.enqueue_dma source(%167 : memref<16x128xf32, #tpu.memory_space<any>>) target(%169 : memref<16x128xf32, #tpu.memory_space<any>>) target_semaphore(%171 : memref<!tpu.dma_semaphore, #tpu.memory_space<semaphore_mem>>)
    %c1_i32_80 = arith.constant 1 : i32
    %172 = arith.addi %0, %c1_i32_80 : i32
    %c1_i32_81 = arith.constant 1 : i32
    %c0_i32_82 = arith.constant 0 : i32
    %c0_i32_83 = arith.constant 0 : i32
    %c0_i32_84 = arith.constant 0 : i32
    %173 = tpu.memref_slice %arg2[%6, %c0_i32_83, %c0_i32_84] : memref<8x16x128xf32, #tpu.memory_space<any>> -> memref<1x16x128xf32, #tpu.memory_space<any>>
    %174 = tpu.memref_squeeze %173 : memref<1x16x128xf32, #tpu.memory_space<any>> -> memref<16x128xf32, #tpu.memory_space<any>>
    %c0_i32_85 = arith.constant 0 : i32
    %c0_i32_86 = arith.constant 0 : i32
    %175 = tpu.memref_slice %arg4[%172, %c0_i32_85, %c0_i32_86] : memref<8x16x128xf32, #tpu.memory_space<any>> -> memref<1x16x128xf32, #tpu.memory_space<any>>
    %176 = tpu.memref_squeeze %175 : memref<1x16x128xf32, #tpu.memory_space<any>> -> memref<16x128xf32, #tpu.memory_space<any>>
    %177 = tpu.memref_slice %arg8[%c1_i32_81, %c0_i32_82] : memref<8x4x!tpu.dma_semaphore, #tpu.memory_space<semaphore_mem>> -> memref<1x1x!tpu.dma_semaphore, #tpu.memory_space<semaphore_mem>>
    %178 = tpu.memref_squeeze %177 : memref<1x1x!tpu.dma_semaphore, #tpu.memory_space<semaphore_mem>> -> memref<!tpu.dma_semaphore, #tpu.memory_space<semaphore_mem>>
    tpu.enqueue_dma source(%174 : memref<16x128xf32, #tpu.memory_space<any>>) target(%176 : memref<16x128xf32, #tpu.memory_space<any>>) target_semaphore(%178 : memref<!tpu.dma_semaphore, #tpu.memory_space<semaphore_mem>>)
    %c1_i32_87 = arith.constant 1 : i32
    %c1_i32_88 = arith.constant 1 : i32
    %c0_i32_89 = arith.constant 0 : i32
    %c0_i32_90 = arith.constant 0 : i32
    %179 = tpu.memref_slice %arg3[%32, %c0_i32_89, %c0_i32_90] : memref<8x16x128xf32, #tpu.memory_space<any>> -> memref<1x16x128xf32, #tpu.memory_space<any>>
    %180 = tpu.memref_squeeze %179 : memref<1x16x128xf32, #tpu.memory_space<any>> -> memref<16x128xf32, #tpu.memory_space<any>>
    %c0_i32_91 = arith.constant 0 : i32
    %c0_i32_92 = arith.constant 0 : i32
    %181 = tpu.memref_slice %arg5[%172, %c0_i32_91, %c0_i32_92] : memref<8x16x128xf32, #tpu.memory_space<any>> -> memref<1x16x128xf32, #tpu.memory_space<any>>
    %182 = tpu.memref_squeeze %181 : memref<1x16x128xf32, #tpu.memory_space<any>> -> memref<16x128xf32, #tpu.memory_space<any>>
    %183 = tpu.memref_slice %arg8[%c1_i32_87, %c1_i32_88] : memref<8x4x!tpu.dma_semaphore, #tpu.memory_space<semaphore_mem>> -> memref<1x1x!tpu.dma_semaphore, #tpu.memory_space<semaphore_mem>>
    %184 = tpu.memref_squeeze %183 : memref<1x1x!tpu.dma_semaphore, #tpu.memory_space<semaphore_mem>> -> memref<!tpu.dma_semaphore, #tpu.memory_space<semaphore_mem>>
    tpu.enqueue_dma source(%180 : memref<16x128xf32, #tpu.memory_space<any>>) target(%182 : memref<16x128xf32, #tpu.memory_space<any>>) target_semaphore(%184 : memref<!tpu.dma_semaphore, #tpu.memory_space<semaphore_mem>>)
    %c1_i32_93 = arith.constant 1 : i32
    %c2_i32_94 = arith.constant 2 : i32
    %c0_i32_95 = arith.constant 0 : i32
    %c0_i32_96 = arith.constant 0 : i32
    %185 = tpu.memref_slice %arg2[%64, %c0_i32_95, %c0_i32_96] : memref<8x16x128xf32, #tpu.memory_space<any>> -> memref<1x16x128xf32, #tpu.memory_space<any>>
    %186 = tpu.memref_squeeze %185 : memref<1x16x128xf32, #tpu.memory_space<any>> -> memref<16x128xf32, #tpu.memory_space<any>>
    %c0_i32_97 = arith.constant 0 : i32
    %c0_i32_98 = arith.constant 0 : i32
    %187 = tpu.memref_slice %arg6[%172, %c0_i32_97, %c0_i32_98] : memref<8x16x128xf32, #tpu.memory_space<any>> -> memref<1x16x128xf32, #tpu.memory_space<any>>
    %188 = tpu.memref_squeeze %187 : memref<1x16x128xf32, #tpu.memory_space<any>> -> memref<16x128xf32, #tpu.memory_space<any>>
    %189 = tpu.memref_slice %arg8[%c1_i32_93, %c2_i32_94] : memref<8x4x!tpu.dma_semaphore, #tpu.memory_space<semaphore_mem>> -> memref<1x1x!tpu.dma_semaphore, #tpu.memory_space<semaphore_mem>>
    %190 = tpu.memref_squeeze %189 : memref<1x1x!tpu.dma_semaphore, #tpu.memory_space<semaphore_mem>> -> memref<!tpu.dma_semaphore, #tpu.memory_space<semaphore_mem>>
    tpu.enqueue_dma source(%186 : memref<16x128xf32, #tpu.memory_space<any>>) target(%188 : memref<16x128xf32, #tpu.memory_space<any>>) target_semaphore(%190 : memref<!tpu.dma_semaphore, #tpu.memory_space<semaphore_mem>>)
    %c2_i32_99 = arith.constant 2 : i32
    %191 = arith.addi %0, %c2_i32_99 : i32
    %c2_i32_100 = arith.constant 2 : i32
    %c0_i32_101 = arith.constant 0 : i32
    %c0_i32_102 = arith.constant 0 : i32
    %c0_i32_103 = arith.constant 0 : i32
    %192 = tpu.memref_slice %arg2[%9, %c0_i32_102, %c0_i32_103] : memref<8x16x128xf32, #tpu.memory_space<any>> -> memref<1x16x128xf32, #tpu.memory_space<any>>
    %193 = tpu.memref_squeeze %192 : memref<1x16x128xf32, #tpu.memory_space<any>> -> memref<16x128xf32, #tpu.memory_space<any>>
    %c0_i32_104 = arith.constant 0 : i32
    %c0_i32_105 = arith.constant 0 : i32
    %194 = tpu.memref_slice %arg4[%191, %c0_i32_104, %c0_i32_105] : memref<8x16x128xf32, #tpu.memory_space<any>> -> memref<1x16x128xf32, #tpu.memory_space<any>>
    %195 = tpu.memref_squeeze %194 : memref<1x16x128xf32, #tpu.memory_space<any>> -> memref<16x128xf32, #tpu.memory_space<any>>
    %196 = tpu.memref_slice %arg8[%c2_i32_100, %c0_i32_101] : memref<8x4x!tpu.dma_semaphore, #tpu.memory_space<semaphore_mem>> -> memref<1x1x!tpu.dma_semaphore, #tpu.memory_space<semaphore_mem>>
    %197 = tpu.memref_squeeze %196 : memref<1x1x!tpu.dma_semaphore, #tpu.memory_space<semaphore_mem>> -> memref<!tpu.dma_semaphore, #tpu.memory_space<semaphore_mem>>
    tpu.enqueue_dma source(%193 : memref<16x128xf32, #tpu.memory_space<any>>) target(%195 : memref<16x128xf32, #tpu.memory_space<any>>) target_semaphore(%197 : memref<!tpu.dma_semaphore, #tpu.memory_space<semaphore_mem>>)
    %c2_i32_106 = arith.constant 2 : i32
    %c1_i32_107 = arith.constant 1 : i32
    %c0_i32_108 = arith.constant 0 : i32
    %c0_i32_109 = arith.constant 0 : i32
    %198 = tpu.memref_slice %arg3[%36, %c0_i32_108, %c0_i32_109] : memref<8x16x128xf32, #tpu.memory_space<any>> -> memref<1x16x128xf32, #tpu.memory_space<any>>
    %199 = tpu.memref_squeeze %198 : memref<1x16x128xf32, #tpu.memory_space<any>> -> memref<16x128xf32, #tpu.memory_space<any>>
    %c0_i32_110 = arith.constant 0 : i32
    %c0_i32_111 = arith.constant 0 : i32
    %200 = tpu.memref_slice %arg5[%191, %c0_i32_110, %c0_i32_111] : memref<8x16x128xf32, #tpu.memory_space<any>> -> memref<1x16x128xf32, #tpu.memory_space<any>>
    %201 = tpu.memref_squeeze %200 : memref<1x16x128xf32, #tpu.memory_space<any>> -> memref<16x128xf32, #tpu.memory_space<any>>
    %202 = tpu.memref_slice %arg8[%c2_i32_106, %c1_i32_107] : memref<8x4x!tpu.dma_semaphore, #tpu.memory_space<semaphore_mem>> -> memref<1x1x!tpu.dma_semaphore, #tpu.memory_space<semaphore_mem>>
    %203 = tpu.memref_squeeze %202 : memref<1x1x!tpu.dma_semaphore, #tpu.memory_space<semaphore_mem>> -> memref<!tpu.dma_semaphore, #tpu.memory_space<semaphore_mem>>
    tpu.enqueue_dma source(%199 : memref<16x128xf32, #tpu.memory_space<any>>) target(%201 : memref<16x128xf32, #tpu.memory_space<any>>) target_semaphore(%203 : memref<!tpu.dma_semaphore, #tpu.memory_space<semaphore_mem>>)
    %c2_i32_112 = arith.constant 2 : i32
    %c2_i32_113 = arith.constant 2 : i32
    %c0_i32_114 = arith.constant 0 : i32
    %c0_i32_115 = arith.constant 0 : i32
    %204 = tpu.memref_slice %arg2[%68, %c0_i32_114, %c0_i32_115] : memref<8x16x128xf32, #tpu.memory_space<any>> -> memref<1x16x128xf32, #tpu.memory_space<any>>
    %205 = tpu.memref_squeeze %204 : memref<1x16x128xf32, #tpu.memory_space<any>> -> memref<16x128xf32, #tpu.memory_space<any>>
    %c0_i32_116 = arith.constant 0 : i32
    %c0_i32_117 = arith.constant 0 : i32
    %206 = tpu.memref_slice %arg6[%191, %c0_i32_116, %c0_i32_117] : memref<8x16x128xf32, #tpu.memory_space<any>> -> memref<1x16x128xf32, #tpu.memory_space<any>>
    %207 = tpu.memref_squeeze %206 : memref<1x16x128xf32, #tpu.memory_space<any>> -> memref<16x128xf32, #tpu.memory_space<any>>
    %208 = tpu.memref_slice %arg8[%c2_i32_112, %c2_i32_113] : memref<8x4x!tpu.dma_semaphore, #tpu.memory_space<semaphore_mem>> -> memref<1x1x!tpu.dma_semaphore, #tpu.memory_space<semaphore_mem>>
    %209 = tpu.memref_squeeze %208 : memref<1x1x!tpu.dma_semaphore, #tpu.memory_space<semaphore_mem>> -> memref<!tpu.dma_semaphore, #tpu.memory_space<semaphore_mem>>
    tpu.enqueue_dma source(%205 : memref<16x128xf32, #tpu.memory_space<any>>) target(%207 : memref<16x128xf32, #tpu.memory_space<any>>) target_semaphore(%209 : memref<!tpu.dma_semaphore, #tpu.memory_space<semaphore_mem>>)
    %c3_i32_118 = arith.constant 3 : i32
    %210 = arith.addi %0, %c3_i32_118 : i32
    %c3_i32_119 = arith.constant 3 : i32
    %c0_i32_120 = arith.constant 0 : i32
    %c0_i32_121 = arith.constant 0 : i32
    %c0_i32_122 = arith.constant 0 : i32
    %211 = tpu.memref_slice %arg2[%12, %c0_i32_121, %c0_i32_122] : memref<8x16x128xf32, #tpu.memory_space<any>> -> memref<1x16x128xf32, #tpu.memory_space<any>>
    %212 = tpu.memref_squeeze %211 : memref<1x16x128xf32, #tpu.memory_space<any>> -> memref<16x128xf32, #tpu.memory_space<any>>
    %c0_i32_123 = arith.constant 0 : i32
    %c0_i32_124 = arith.constant 0 : i32
    %213 = tpu.memref_slice %arg4[%210, %c0_i32_123, %c0_i32_124] : memref<8x16x128xf32, #tpu.memory_space<any>> -> memref<1x16x128xf32, #tpu.memory_space<any>>
    %214 = tpu.memref_squeeze %213 : memref<1x16x128xf32, #tpu.memory_space<any>> -> memref<16x128xf32, #tpu.memory_space<any>>
    %215 = tpu.memref_slice %arg8[%c3_i32_119, %c0_i32_120] : memref<8x4x!tpu.dma_semaphore, #tpu.memory_space<semaphore_mem>> -> memref<1x1x!tpu.dma_semaphore, #tpu.memory_space<semaphore_mem>>
    %216 = tpu.memref_squeeze %215 : memref<1x1x!tpu.dma_semaphore, #tpu.memory_space<semaphore_mem>> -> memref<!tpu.dma_semaphore, #tpu.memory_space<semaphore_mem>>
    tpu.enqueue_dma source(%212 : memref<16x128xf32, #tpu.memory_space<any>>) target(%214 : memref<16x128xf32, #tpu.memory_space<any>>) target_semaphore(%216 : memref<!tpu.dma_semaphore, #tpu.memory_space<semaphore_mem>>)
    %c3_i32_125 = arith.constant 3 : i32
    %c1_i32_126 = arith.constant 1 : i32
    %c0_i32_127 = arith.constant 0 : i32
    %c0_i32_128 = arith.constant 0 : i32
    %217 = tpu.memref_slice %arg3[%40, %c0_i32_127, %c0_i32_128] : memref<8x16x128xf32, #tpu.memory_space<any>> -> memref<1x16x128xf32, #tpu.memory_space<any>>
    %218 = tpu.memref_squeeze %217 : memref<1x16x128xf32, #tpu.memory_space<any>> -> memref<16x128xf32, #tpu.memory_space<any>>
    %c0_i32_129 = arith.constant 0 : i32
    %c0_i32_130 = arith.constant 0 : i32
    %219 = tpu.memref_slice %arg5[%210, %c0_i32_129, %c0_i32_130] : memref<8x16x128xf32, #tpu.memory_space<any>> -> memref<1x16x128xf32, #tpu.memory_space<any>>
    %220 = tpu.memref_squeeze %219 : memref<1x16x128xf32, #tpu.memory_space<any>> -> memref<16x128xf32, #tpu.memory_space<any>>
    %221 = tpu.memref_slice %arg8[%c3_i32_125, %c1_i32_126] : memref<8x4x!tpu.dma_semaphore, #tpu.memory_space<semaphore_mem>> -> memref<1x1x!tpu.dma_semaphore, #tpu.memory_space<semaphore_mem>>
    %222 = tpu.memref_squeeze %221 : memref<1x1x!tpu.dma_semaphore, #tpu.memory_space<semaphore_mem>> -> memref<!tpu.dma_semaphore, #tpu.memory_space<semaphore_mem>>
    tpu.enqueue_dma source(%218 : memref<16x128xf32, #tpu.memory_space<any>>) target(%220 : memref<16x128xf32, #tpu.memory_space<any>>) target_semaphore(%222 : memref<!tpu.dma_semaphore, #tpu.memory_space<semaphore_mem>>)
    %c3_i32_131 = arith.constant 3 : i32
    %c2_i32_132 = arith.constant 2 : i32
    %c0_i32_133 = arith.constant 0 : i32
    %c0_i32_134 = arith.constant 0 : i32
    %223 = tpu.memref_slice %arg2[%72, %c0_i32_133, %c0_i32_134] : memref<8x16x128xf32, #tpu.memory_space<any>> -> memref<1x16x128xf32, #tpu.memory_space<any>>
    %224 = tpu.memref_squeeze %223 : memref<1x16x128xf32, #tpu.memory_space<any>> -> memref<16x128xf32, #tpu.memory_space<any>>
    %c0_i32_135 = arith.constant 0 : i32
    %c0_i32_136 = arith.constant 0 : i32
    %225 = tpu.memref_slice %arg6[%210, %c0_i32_135, %c0_i32_136] : memref<8x16x128xf32, #tpu.memory_space<any>> -> memref<1x16x128xf32, #tpu.memory_space<any>>
    %226 = tpu.memref_squeeze %225 : memref<1x16x128xf32, #tpu.memory_space<any>> -> memref<16x128xf32, #tpu.memory_space<any>>
    %227 = tpu.memref_slice %arg8[%c3_i32_131, %c2_i32_132] : memref<8x4x!tpu.dma_semaphore, #tpu.memory_space<semaphore_mem>> -> memref<1x1x!tpu.dma_semaphore, #tpu.memory_space<semaphore_mem>>
    %228 = tpu.memref_squeeze %227 : memref<1x1x!tpu.dma_semaphore, #tpu.memory_space<semaphore_mem>> -> memref<!tpu.dma_semaphore, #tpu.memory_space<semaphore_mem>>
    tpu.enqueue_dma source(%224 : memref<16x128xf32, #tpu.memory_space<any>>) target(%226 : memref<16x128xf32, #tpu.memory_space<any>>) target_semaphore(%228 : memref<!tpu.dma_semaphore, #tpu.memory_space<semaphore_mem>>)
    %c4_i32_137 = arith.constant 4 : i32
    %229 = arith.addi %0, %c4_i32_137 : i32
    %c4_i32_138 = arith.constant 4 : i32
    %c0_i32_139 = arith.constant 0 : i32
    %c0_i32_140 = arith.constant 0 : i32
    %c0_i32_141 = arith.constant 0 : i32
    %230 = tpu.memref_slice %arg2[%15, %c0_i32_140, %c0_i32_141] : memref<8x16x128xf32, #tpu.memory_space<any>> -> memref<1x16x128xf32, #tpu.memory_space<any>>
    %231 = tpu.memref_squeeze %230 : memref<1x16x128xf32, #tpu.memory_space<any>> -> memref<16x128xf32, #tpu.memory_space<any>>
    %c0_i32_142 = arith.constant 0 : i32
    %c0_i32_143 = arith.constant 0 : i32
    %232 = tpu.memref_slice %arg4[%229, %c0_i32_142, %c0_i32_143] : memref<8x16x128xf32, #tpu.memory_space<any>> -> memref<1x16x128xf32, #tpu.memory_space<any>>
    %233 = tpu.memref_squeeze %232 : memref<1x16x128xf32, #tpu.memory_space<any>> -> memref<16x128xf32, #tpu.memory_space<any>>
    %234 = tpu.memref_slice %arg8[%c4_i32_138, %c0_i32_139] : memref<8x4x!tpu.dma_semaphore, #tpu.memory_space<semaphore_mem>> -> memref<1x1x!tpu.dma_semaphore, #tpu.memory_space<semaphore_mem>>
    %235 = tpu.memref_squeeze %234 : memref<1x1x!tpu.dma_semaphore, #tpu.memory_space<semaphore_mem>> -> memref<!tpu.dma_semaphore, #tpu.memory_space<semaphore_mem>>
    tpu.enqueue_dma source(%231 : memref<16x128xf32, #tpu.memory_space<any>>) target(%233 : memref<16x128xf32, #tpu.memory_space<any>>) target_semaphore(%235 : memref<!tpu.dma_semaphore, #tpu.memory_space<semaphore_mem>>)
    %c4_i32_144 = arith.constant 4 : i32
    %c1_i32_145 = arith.constant 1 : i32
    %c0_i32_146 = arith.constant 0 : i32
    %c0_i32_147 = arith.constant 0 : i32
    %236 = tpu.memref_slice %arg3[%44, %c0_i32_146, %c0_i32_147] : memref<8x16x128xf32, #tpu.memory_space<any>> -> memref<1x16x128xf32, #tpu.memory_space<any>>
    %237 = tpu.memref_squeeze %236 : memref<1x16x128xf32, #tpu.memory_space<any>> -> memref<16x128xf32, #tpu.memory_space<any>>
    %c0_i32_148 = arith.constant 0 : i32
    %c0_i32_149 = arith.constant 0 : i32
    %238 = tpu.memref_slice %arg5[%229, %c0_i32_148, %c0_i32_149] : memref<8x16x128xf32, #tpu.memory_space<any>> -> memref<1x16x128xf32, #tpu.memory_space<any>>
    %239 = tpu.memref_squeeze %238 : memref<1x16x128xf32, #tpu.memory_space<any>> -> memref<16x128xf32, #tpu.memory_space<any>>
    %240 = tpu.memref_slice %arg8[%c4_i32_144, %c1_i32_145] : memref<8x4x!tpu.dma_semaphore, #tpu.memory_space<semaphore_mem>> -> memref<1x1x!tpu.dma_semaphore, #tpu.memory_space<semaphore_mem>>
    %241 = tpu.memref_squeeze %240 : memref<1x1x!tpu.dma_semaphore, #tpu.memory_space<semaphore_mem>> -> memref<!tpu.dma_semaphore, #tpu.memory_space<semaphore_mem>>
    tpu.enqueue_dma source(%237 : memref<16x128xf32, #tpu.memory_space<any>>) target(%239 : memref<16x128xf32, #tpu.memory_space<any>>) target_semaphore(%241 : memref<!tpu.dma_semaphore, #tpu.memory_space<semaphore_mem>>)
    %c4_i32_150 = arith.constant 4 : i32
    %c2_i32_151 = arith.constant 2 : i32
    %c0_i32_152 = arith.constant 0 : i32
    %c0_i32_153 = arith.constant 0 : i32
    %242 = tpu.memref_slice %arg2[%76, %c0_i32_152, %c0_i32_153] : memref<8x16x128xf32, #tpu.memory_space<any>> -> memref<1x16x128xf32, #tpu.memory_space<any>>
    %243 = tpu.memref_squeeze %242 : memref<1x16x128xf32, #tpu.memory_space<any>> -> memref<16x128xf32, #tpu.memory_space<any>>
    %c0_i32_154 = arith.constant 0 : i32
    %c0_i32_155 = arith.constant 0 : i32
    %244 = tpu.memref_slice %arg6[%229, %c0_i32_154, %c0_i32_155] : memref<8x16x128xf32, #tpu.memory_space<any>> -> memref<1x16x128xf32, #tpu.memory_space<any>>
    %245 = tpu.memref_squeeze %244 : memref<1x16x128xf32, #tpu.memory_space<any>> -> memref<16x128xf32, #tpu.memory_space<any>>
    %246 = tpu.memref_slice %arg8[%c4_i32_150, %c2_i32_151] : memref<8x4x!tpu.dma_semaphore, #tpu.memory_space<semaphore_mem>> -> memref<1x1x!tpu.dma_semaphore, #tpu.memory_space<semaphore_mem>>
    %247 = tpu.memref_squeeze %246 : memref<1x1x!tpu.dma_semaphore, #tpu.memory_space<semaphore_mem>> -> memref<!tpu.dma_semaphore, #tpu.memory_space<semaphore_mem>>
    tpu.enqueue_dma source(%243 : memref<16x128xf32, #tpu.memory_space<any>>) target(%245 : memref<16x128xf32, #tpu.memory_space<any>>) target_semaphore(%247 : memref<!tpu.dma_semaphore, #tpu.memory_space<semaphore_mem>>)
    %c5_i32_156 = arith.constant 5 : i32
    %248 = arith.addi %0, %c5_i32_156 : i32
    %c5_i32_157 = arith.constant 5 : i32
    %c0_i32_158 = arith.constant 0 : i32
    %c0_i32_159 = arith.constant 0 : i32
    %c0_i32_160 = arith.constant 0 : i32
    %249 = tpu.memref_slice %arg2[%18, %c0_i32_159, %c0_i32_160] : memref<8x16x128xf32, #tpu.memory_space<any>> -> memref<1x16x128xf32, #tpu.memory_space<any>>
    %250 = tpu.memref_squeeze %249 : memref<1x16x128xf32, #tpu.memory_space<any>> -> memref<16x128xf32, #tpu.memory_space<any>>
    %c0_i32_161 = arith.constant 0 : i32
    %c0_i32_162 = arith.constant 0 : i32
    %251 = tpu.memref_slice %arg4[%248, %c0_i32_161, %c0_i32_162] : memref<8x16x128xf32, #tpu.memory_space<any>> -> memref<1x16x128xf32, #tpu.memory_space<any>>
    %252 = tpu.memref_squeeze %251 : memref<1x16x128xf32, #tpu.memory_space<any>> -> memref<16x128xf32, #tpu.memory_space<any>>
    %253 = tpu.memref_slice %arg8[%c5_i32_157, %c0_i32_158] : memref<8x4x!tpu.dma_semaphore, #tpu.memory_space<semaphore_mem>> -> memref<1x1x!tpu.dma_semaphore, #tpu.memory_space<semaphore_mem>>
    %254 = tpu.memref_squeeze %253 : memref<1x1x!tpu.dma_semaphore, #tpu.memory_space<semaphore_mem>> -> memref<!tpu.dma_semaphore, #tpu.memory_space<semaphore_mem>>
    tpu.enqueue_dma source(%250 : memref<16x128xf32, #tpu.memory_space<any>>) target(%252 : memref<16x128xf32, #tpu.memory_space<any>>) target_semaphore(%254 : memref<!tpu.dma_semaphore, #tpu.memory_space<semaphore_mem>>)
    %c5_i32_163 = arith.constant 5 : i32
    %c1_i32_164 = arith.constant 1 : i32
    %c0_i32_165 = arith.constant 0 : i32
    %c0_i32_166 = arith.constant 0 : i32
    %255 = tpu.memref_slice %arg3[%48, %c0_i32_165, %c0_i32_166] : memref<8x16x128xf32, #tpu.memory_space<any>> -> memref<1x16x128xf32, #tpu.memory_space<any>>
    %256 = tpu.memref_squeeze %255 : memref<1x16x128xf32, #tpu.memory_space<any>> -> memref<16x128xf32, #tpu.memory_space<any>>
    %c0_i32_167 = arith.constant 0 : i32
    %c0_i32_168 = arith.constant 0 : i32
    %257 = tpu.memref_slice %arg5[%248, %c0_i32_167, %c0_i32_168] : memref<8x16x128xf32, #tpu.memory_space<any>> -> memref<1x16x128xf32, #tpu.memory_space<any>>
    %258 = tpu.memref_squeeze %257 : memref<1x16x128xf32, #tpu.memory_space<any>> -> memref<16x128xf32, #tpu.memory_space<any>>
    %259 = tpu.memref_slice %arg8[%c5_i32_163, %c1_i32_164] : memref<8x4x!tpu.dma_semaphore, #tpu.memory_space<semaphore_mem>> -> memref<1x1x!tpu.dma_semaphore, #tpu.memory_space<semaphore_mem>>
    %260 = tpu.memref_squeeze %259 : memref<1x1x!tpu.dma_semaphore, #tpu.memory_space<semaphore_mem>> -> memref<!tpu.dma_semaphore, #tpu.memory_space<semaphore_mem>>
    tpu.enqueue_dma source(%256 : memref<16x128xf32, #tpu.memory_space<any>>) target(%258 : memref<16x128xf32, #tpu.memory_space<any>>) target_semaphore(%260 : memref<!tpu.dma_semaphore, #tpu.memory_space<semaphore_mem>>)
    %c5_i32_169 = arith.constant 5 : i32
    %c2_i32_170 = arith.constant 2 : i32
    %c0_i32_171 = arith.constant 0 : i32
    %c0_i32_172 = arith.constant 0 : i32
    %261 = tpu.memref_slice %arg2[%80, %c0_i32_171, %c0_i32_172] : memref<8x16x128xf32, #tpu.memory_space<any>> -> memref<1x16x128xf32, #tpu.memory_space<any>>
    %262 = tpu.memref_squeeze %261 : memref<1x16x128xf32, #tpu.memory_space<any>> -> memref<16x128xf32, #tpu.memory_space<any>>
    %c0_i32_173 = arith.constant 0 : i32
    %c0_i32_174 = arith.constant 0 : i32
    %263 = tpu.memref_slice %arg6[%248, %c0_i32_173, %c0_i32_174] : memref<8x16x128xf32, #tpu.memory_space<any>> -> memref<1x16x128xf32, #tpu.memory_space<any>>
    %264 = tpu.memref_squeeze %263 : memref<1x16x128xf32, #tpu.memory_space<any>> -> memref<16x128xf32, #tpu.memory_space<any>>
    %265 = tpu.memref_slice %arg8[%c5_i32_169, %c2_i32_170] : memref<8x4x!tpu.dma_semaphore, #tpu.memory_space<semaphore_mem>> -> memref<1x1x!tpu.dma_semaphore, #tpu.memory_space<semaphore_mem>>
    %266 = tpu.memref_squeeze %265 : memref<1x1x!tpu.dma_semaphore, #tpu.memory_space<semaphore_mem>> -> memref<!tpu.dma_semaphore, #tpu.memory_space<semaphore_mem>>
    tpu.enqueue_dma source(%262 : memref<16x128xf32, #tpu.memory_space<any>>) target(%264 : memref<16x128xf32, #tpu.memory_space<any>>) target_semaphore(%266 : memref<!tpu.dma_semaphore, #tpu.memory_space<semaphore_mem>>)
    %c6_i32_175 = arith.constant 6 : i32
    %267 = arith.addi %0, %c6_i32_175 : i32
    %c6_i32_176 = arith.constant 6 : i32
    %c0_i32_177 = arith.constant 0 : i32
    %c0_i32_178 = arith.constant 0 : i32
    %c0_i32_179 = arith.constant 0 : i32
    %268 = tpu.memref_slice %arg2[%21, %c0_i32_178, %c0_i32_179] : memref<8x16x128xf32, #tpu.memory_space<any>> -> memref<1x16x128xf32, #tpu.memory_space<any>>
    %269 = tpu.memref_squeeze %268 : memref<1x16x128xf32, #tpu.memory_space<any>> -> memref<16x128xf32, #tpu.memory_space<any>>
    %c0_i32_180 = arith.constant 0 : i32
    %c0_i32_181 = arith.constant 0 : i32
    %270 = tpu.memref_slice %arg4[%267, %c0_i32_180, %c0_i32_181] : memref<8x16x128xf32, #tpu.memory_space<any>> -> memref<1x16x128xf32, #tpu.memory_space<any>>
    %271 = tpu.memref_squeeze %270 : memref<1x16x128xf32, #tpu.memory_space<any>> -> memref<16x128xf32, #tpu.memory_space<any>>
    %272 = tpu.memref_slice %arg8[%c6_i32_176, %c0_i32_177] : memref<8x4x!tpu.dma_semaphore, #tpu.memory_space<semaphore_mem>> -> memref<1x1x!tpu.dma_semaphore, #tpu.memory_space<semaphore_mem>>
    %273 = tpu.memref_squeeze %272 : memref<1x1x!tpu.dma_semaphore, #tpu.memory_space<semaphore_mem>> -> memref<!tpu.dma_semaphore, #tpu.memory_space<semaphore_mem>>
    tpu.enqueue_dma source(%269 : memref<16x128xf32, #tpu.memory_space<any>>) target(%271 : memref<16x128xf32, #tpu.memory_space<any>>) target_semaphore(%273 : memref<!tpu.dma_semaphore, #tpu.memory_space<semaphore_mem>>)
    %c6_i32_182 = arith.constant 6 : i32
    %c1_i32_183 = arith.constant 1 : i32
    %c0_i32_184 = arith.constant 0 : i32
    %c0_i32_185 = arith.constant 0 : i32
    %274 = tpu.memref_slice %arg3[%52, %c0_i32_184, %c0_i32_185] : memref<8x16x128xf32, #tpu.memory_space<any>> -> memref<1x16x128xf32, #tpu.memory_space<any>>
    %275 = tpu.memref_squeeze %274 : memref<1x16x128xf32, #tpu.memory_space<any>> -> memref<16x128xf32, #tpu.memory_space<any>>
    %c0_i32_186 = arith.constant 0 : i32
    %c0_i32_187 = arith.constant 0 : i32
    %276 = tpu.memref_slice %arg5[%267, %c0_i32_186, %c0_i32_187] : memref<8x16x128xf32, #tpu.memory_space<any>> -> memref<1x16x128xf32, #tpu.memory_space<any>>
    %277 = tpu.memref_squeeze %276 : memref<1x16x128xf32, #tpu.memory_space<any>> -> memref<16x128xf32, #tpu.memory_space<any>>
    %278 = tpu.memref_slice %arg8[%c6_i32_182, %c1_i32_183] : memref<8x4x!tpu.dma_semaphore, #tpu.memory_space<semaphore_mem>> -> memref<1x1x!tpu.dma_semaphore, #tpu.memory_space<semaphore_mem>>
    %279 = tpu.memref_squeeze %278 : memref<1x1x!tpu.dma_semaphore, #tpu.memory_space<semaphore_mem>> -> memref<!tpu.dma_semaphore, #tpu.memory_space<semaphore_mem>>
    tpu.enqueue_dma source(%275 : memref<16x128xf32, #tpu.memory_space<any>>) target(%277 : memref<16x128xf32, #tpu.memory_space<any>>) target_semaphore(%279 : memref<!tpu.dma_semaphore, #tpu.memory_space<semaphore_mem>>)
    %c6_i32_188 = arith.constant 6 : i32
    %c2_i32_189 = arith.constant 2 : i32
    %c0_i32_190 = arith.constant 0 : i32
    %c0_i32_191 = arith.constant 0 : i32
    %280 = tpu.memref_slice %arg2[%84, %c0_i32_190, %c0_i32_191] : memref<8x16x128xf32, #tpu.memory_space<any>> -> memref<1x16x128xf32, #tpu.memory_space<any>>
    %281 = tpu.memref_squeeze %280 : memref<1x16x128xf32, #tpu.memory_space<any>> -> memref<16x128xf32, #tpu.memory_space<any>>
    %c0_i32_192 = arith.constant 0 : i32
    %c0_i32_193 = arith.constant 0 : i32
    %282 = tpu.memref_slice %arg6[%267, %c0_i32_192, %c0_i32_193] : memref<8x16x128xf32, #tpu.memory_space<any>> -> memref<1x16x128xf32, #tpu.memory_space<any>>
    %283 = tpu.memref_squeeze %282 : memref<1x16x128xf32, #tpu.memory_space<any>> -> memref<16x128xf32, #tpu.memory_space<any>>
    %284 = tpu.memref_slice %arg8[%c6_i32_188, %c2_i32_189] : memref<8x4x!tpu.dma_semaphore, #tpu.memory_space<semaphore_mem>> -> memref<1x1x!tpu.dma_semaphore, #tpu.memory_space<semaphore_mem>>
    %285 = tpu.memref_squeeze %284 : memref<1x1x!tpu.dma_semaphore, #tpu.memory_space<semaphore_mem>> -> memref<!tpu.dma_semaphore, #tpu.memory_space<semaphore_mem>>
    tpu.enqueue_dma source(%281 : memref<16x128xf32, #tpu.memory_space<any>>) target(%283 : memref<16x128xf32, #tpu.memory_space<any>>) target_semaphore(%285 : memref<!tpu.dma_semaphore, #tpu.memory_space<semaphore_mem>>)
    %c7_i32_194 = arith.constant 7 : i32
    %286 = arith.addi %0, %c7_i32_194 : i32
    %c7_i32_195 = arith.constant 7 : i32
    %c0_i32_196 = arith.constant 0 : i32
    %c0_i32_197 = arith.constant 0 : i32
    %c0_i32_198 = arith.constant 0 : i32
    %287 = tpu.memref_slice %arg2[%24, %c0_i32_197, %c0_i32_198] : memref<8x16x128xf32, #tpu.memory_space<any>> -> memref<1x16x128xf32, #tpu.memory_space<any>>
    %288 = tpu.memref_squeeze %287 : memref<1x16x128xf32, #tpu.memory_space<any>> -> memref<16x128xf32, #tpu.memory_space<any>>
    %c0_i32_199 = arith.constant 0 : i32
    %c0_i32_200 = arith.constant 0 : i32
    %289 = tpu.memref_slice %arg4[%286, %c0_i32_199, %c0_i32_200] : memref<8x16x128xf32, #tpu.memory_space<any>> -> memref<1x16x128xf32, #tpu.memory_space<any>>
    %290 = tpu.memref_squeeze %289 : memref<1x16x128xf32, #tpu.memory_space<any>> -> memref<16x128xf32, #tpu.memory_space<any>>
    %291 = tpu.memref_slice %arg8[%c7_i32_195, %c0_i32_196] : memref<8x4x!tpu.dma_semaphore, #tpu.memory_space<semaphore_mem>> -> memref<1x1x!tpu.dma_semaphore, #tpu.memory_space<semaphore_mem>>
    %292 = tpu.memref_squeeze %291 : memref<1x1x!tpu.dma_semaphore, #tpu.memory_space<semaphore_mem>> -> memref<!tpu.dma_semaphore, #tpu.memory_space<semaphore_mem>>
    tpu.enqueue_dma source(%288 : memref<16x128xf32, #tpu.memory_space<any>>) target(%290 : memref<16x128xf32, #tpu.memory_space<any>>) target_semaphore(%292 : memref<!tpu.dma_semaphore, #tpu.memory_space<semaphore_mem>>)
    %c7_i32_201 = arith.constant 7 : i32
    %c1_i32_202 = arith.constant 1 : i32
    %c0_i32_203 = arith.constant 0 : i32
    %c0_i32_204 = arith.constant 0 : i32
    %293 = tpu.memref_slice %arg3[%56, %c0_i32_203, %c0_i32_204] : memref<8x16x128xf32, #tpu.memory_space<any>> -> memref<1x16x128xf32, #tpu.memory_space<any>>
    %294 = tpu.memref_squeeze %293 : memref<1x16x128xf32, #tpu.memory_space<any>> -> memref<16x128xf32, #tpu.memory_space<any>>
    %c0_i32_205 = arith.constant 0 : i32
    %c0_i32_206 = arith.constant 0 : i32
    %295 = tpu.memref_slice %arg5[%286, %c0_i32_205, %c0_i32_206] : memref<8x16x128xf32, #tpu.memory_space<any>> -> memref<1x16x128xf32, #tpu.memory_space<any>>
    %296 = tpu.memref_squeeze %295 : memref<1x16x128xf32, #tpu.memory_space<any>> -> memref<16x128xf32, #tpu.memory_space<any>>
    %297 = tpu.memref_slice %arg8[%c7_i32_201, %c1_i32_202] : memref<8x4x!tpu.dma_semaphore, #tpu.memory_space<semaphore_mem>> -> memref<1x1x!tpu.dma_semaphore, #tpu.memory_space<semaphore_mem>>
    %298 = tpu.memref_squeeze %297 : memref<1x1x!tpu.dma_semaphore, #tpu.memory_space<semaphore_mem>> -> memref<!tpu.dma_semaphore, #tpu.memory_space<semaphore_mem>>
    tpu.enqueue_dma source(%294 : memref<16x128xf32, #tpu.memory_space<any>>) target(%296 : memref<16x128xf32, #tpu.memory_space<any>>) target_semaphore(%298 : memref<!tpu.dma_semaphore, #tpu.memory_space<semaphore_mem>>)
    %c7_i32_207 = arith.constant 7 : i32
    %c2_i32_208 = arith.constant 2 : i32
    %c0_i32_209 = arith.constant 0 : i32
    %c0_i32_210 = arith.constant 0 : i32
    %299 = tpu.memref_slice %arg2[%88, %c0_i32_209, %c0_i32_210] : memref<8x16x128xf32, #tpu.memory_space<any>> -> memref<1x16x128xf32, #tpu.memory_space<any>>
    %300 = tpu.memref_squeeze %299 : memref<1x16x128xf32, #tpu.memory_space<any>> -> memref<16x128xf32, #tpu.memory_space<any>>
    %c0_i32_211 = arith.constant 0 : i32
    %c0_i32_212 = arith.constant 0 : i32
    %301 = tpu.memref_slice %arg6[%286, %c0_i32_211, %c0_i32_212] : memref<8x16x128xf32, #tpu.memory_space<any>> -> memref<1x16x128xf32, #tpu.memory_space<any>>
    %302 = tpu.memref_squeeze %301 : memref<1x16x128xf32, #tpu.memory_space<any>> -> memref<16x128xf32, #tpu.memory_space<any>>
    %303 = tpu.memref_slice %arg8[%c7_i32_207, %c2_i32_208] : memref<8x4x!tpu.dma_semaphore, #tpu.memory_space<semaphore_mem>> -> memref<1x1x!tpu.dma_semaphore, #tpu.memory_space<semaphore_mem>>
    %304 = tpu.memref_squeeze %303 : memref<1x1x!tpu.dma_semaphore, #tpu.memory_space<semaphore_mem>> -> memref<!tpu.dma_semaphore, #tpu.memory_space<semaphore_mem>>
    tpu.enqueue_dma source(%300 : memref<16x128xf32, #tpu.memory_space<any>>) target(%302 : memref<16x128xf32, #tpu.memory_space<any>>) target_semaphore(%304 : memref<!tpu.dma_semaphore, #tpu.memory_space<semaphore_mem>>)
    %c0_i32_213 = arith.constant 0 : i32
    %c0_i32_214 = arith.constant 0 : i32
    %c0_i32_215 = arith.constant 0 : i32
    %c1_i32_216 = arith.constant 1 : i32
    %c0_i32_217 = arith.constant 0 : i32
    %c0_i32_218 = arith.constant 0 : i32
    %305 = tpu.memref_slice %arg3[%c0_i32_213, %c0_i32_217, %c0_i32_218] : memref<8x16x128xf32, #tpu.memory_space<any>> -> memref<1x16x128xf32, #tpu.memory_space<any>>
    %306 = tpu.memref_squeeze %305 : memref<1x16x128xf32, #tpu.memory_space<any>> -> memref<16x128xf32, #tpu.memory_space<any>>
    %c0_i32_219 = arith.constant 0 : i32
    %c0_i32_220 = arith.constant 0 : i32
    %307 = tpu.memref_slice %arg5[%c0_i32_214, %c0_i32_219, %c0_i32_220] : memref<8x16x128xf32, #tpu.memory_space<any>> -> memref<1x16x128xf32, #tpu.memory_space<any>>
    %308 = tpu.memref_squeeze %307 : memref<1x16x128xf32, #tpu.memory_space<any>> -> memref<16x128xf32, #tpu.memory_space<any>>
    %309 = tpu.memref_slice %arg8[%c0_i32_215, %c1_i32_216] : memref<8x4x!tpu.dma_semaphore, #tpu.memory_space<semaphore_mem>> -> memref<1x1x!tpu.dma_semaphore, #tpu.memory_space<semaphore_mem>>
    %310 = tpu.memref_squeeze %309 : memref<1x1x!tpu.dma_semaphore, #tpu.memory_space<semaphore_mem>> -> memref<!tpu.dma_semaphore, #tpu.memory_space<semaphore_mem>>
    tpu.wait_dma2 semaphore(%310 : memref<!tpu.dma_semaphore, #tpu.memory_space<semaphore_mem>>) src(%306 : memref<16x128xf32, #tpu.memory_space<any>>) dst(%308 : memref<16x128xf32, #tpu.memory_space<any>>)
    %c0_i32_221 = arith.constant 0 : i32
    %c0_i32_222 = arith.constant 0 : i32
    %c1_i32_223 = arith.constant 1 : i32
    %c1_i32_224 = arith.constant 1 : i32
    %c0_i32_225 = arith.constant 0 : i32
    %c0_i32_226 = arith.constant 0 : i32
    %311 = tpu.memref_slice %arg3[%c0_i32_221, %c0_i32_225, %c0_i32_226] : memref<8x16x128xf32, #tpu.memory_space<any>> -> memref<1x16x128xf32, #tpu.memory_space<any>>
    %312 = tpu.memref_squeeze %311 : memref<1x16x128xf32, #tpu.memory_space<any>> -> memref<16x128xf32, #tpu.memory_space<any>>
    %c0_i32_227 = arith.constant 0 : i32
    %c0_i32_228 = arith.constant 0 : i32
    %313 = tpu.memref_slice %arg5[%c0_i32_222, %c0_i32_227, %c0_i32_228] : memref<8x16x128xf32, #tpu.memory_space<any>> -> memref<1x16x128xf32, #tpu.memory_space<any>>
    %314 = tpu.memref_squeeze %313 : memref<1x16x128xf32, #tpu.memory_space<any>> -> memref<16x128xf32, #tpu.memory_space<any>>
    %315 = tpu.memref_slice %arg8[%c1_i32_223, %c1_i32_224] : memref<8x4x!tpu.dma_semaphore, #tpu.memory_space<semaphore_mem>> -> memref<1x1x!tpu.dma_semaphore, #tpu.memory_space<semaphore_mem>>
    %316 = tpu.memref_squeeze %315 : memref<1x1x!tpu.dma_semaphore, #tpu.memory_space<semaphore_mem>> -> memref<!tpu.dma_semaphore, #tpu.memory_space<semaphore_mem>>
    tpu.wait_dma2 semaphore(%316 : memref<!tpu.dma_semaphore, #tpu.memory_space<semaphore_mem>>) src(%312 : memref<16x128xf32, #tpu.memory_space<any>>) dst(%314 : memref<16x128xf32, #tpu.memory_space<any>>)
    %c0_i32_229 = arith.constant 0 : i32
    %c0_i32_230 = arith.constant 0 : i32
    %c2_i32_231 = arith.constant 2 : i32
    %c1_i32_232 = arith.constant 1 : i32
    %c0_i32_233 = arith.constant 0 : i32
    %c0_i32_234 = arith.constant 0 : i32
    %317 = tpu.memref_slice %arg3[%c0_i32_229, %c0_i32_233, %c0_i32_234] : memref<8x16x128xf32, #tpu.memory_space<any>> -> memref<1x16x128xf32, #tpu.memory_space<any>>
    %318 = tpu.memref_squeeze %317 : memref<1x16x128xf32, #tpu.memory_space<any>> -> memref<16x128xf32, #tpu.memory_space<any>>
    %c0_i32_235 = arith.constant 0 : i32
    %c0_i32_236 = arith.constant 0 : i32
    %319 = tpu.memref_slice %arg5[%c0_i32_230, %c0_i32_235, %c0_i32_236] : memref<8x16x128xf32, #tpu.memory_space<any>> -> memref<1x16x128xf32, #tpu.memory_space<any>>
    %320 = tpu.memref_squeeze %319 : memref<1x16x128xf32, #tpu.memory_space<any>> -> memref<16x128xf32, #tpu.memory_space<any>>
    %321 = tpu.memref_slice %arg8[%c2_i32_231, %c1_i32_232] : memref<8x4x!tpu.dma_semaphore, #tpu.memory_space<semaphore_mem>> -> memref<1x1x!tpu.dma_semaphore, #tpu.memory_space<semaphore_mem>>
    %322 = tpu.memref_squeeze %321 : memref<1x1x!tpu.dma_semaphore, #tpu.memory_space<semaphore_mem>> -> memref<!tpu.dma_semaphore, #tpu.memory_space<semaphore_mem>>
    tpu.wait_dma2 semaphore(%322 : memref<!tpu.dma_semaphore, #tpu.memory_space<semaphore_mem>>) src(%318 : memref<16x128xf32, #tpu.memory_space<any>>) dst(%320 : memref<16x128xf32, #tpu.memory_space<any>>)
    %c0_i32_237 = arith.constant 0 : i32
    %c0_i32_238 = arith.constant 0 : i32
    %c3_i32_239 = arith.constant 3 : i32
    %c1_i32_240 = arith.constant 1 : i32
    %c0_i32_241 = arith.constant 0 : i32
    %c0_i32_242 = arith.constant 0 : i32
    %323 = tpu.memref_slice %arg3[%c0_i32_237, %c0_i32_241, %c0_i32_242] : memref<8x16x128xf32, #tpu.memory_space<any>> -> memref<1x16x128xf32, #tpu.memory_space<any>>
    %324 = tpu.memref_squeeze %323 : memref<1x16x128xf32, #tpu.memory_space<any>> -> memref<16x128xf32, #tpu.memory_space<any>>
    %c0_i32_243 = arith.constant 0 : i32
    %c0_i32_244 = arith.constant 0 : i32
    %325 = tpu.memref_slice %arg5[%c0_i32_238, %c0_i32_243, %c0_i32_244] : memref<8x16x128xf32, #tpu.memory_space<any>> -> memref<1x16x128xf32, #tpu.memory_space<any>>
    %326 = tpu.memref_squeeze %325 : memref<1x16x128xf32, #tpu.memory_space<any>> -> memref<16x128xf32, #tpu.memory_space<any>>
    %327 = tpu.memref_slice %arg8[%c3_i32_239, %c1_i32_240] : memref<8x4x!tpu.dma_semaphore, #tpu.memory_space<semaphore_mem>> -> memref<1x1x!tpu.dma_semaphore, #tpu.memory_space<semaphore_mem>>
    %328 = tpu.memref_squeeze %327 : memref<1x1x!tpu.dma_semaphore, #tpu.memory_space<semaphore_mem>> -> memref<!tpu.dma_semaphore, #tpu.memory_space<semaphore_mem>>
    tpu.wait_dma2 semaphore(%328 : memref<!tpu.dma_semaphore, #tpu.memory_space<semaphore_mem>>) src(%324 : memref<16x128xf32, #tpu.memory_space<any>>) dst(%326 : memref<16x128xf32, #tpu.memory_space<any>>)
    %c0_i32_245 = arith.constant 0 : i32
    %c0_i32_246 = arith.constant 0 : i32
    %c4_i32_247 = arith.constant 4 : i32
    %c1_i32_248 = arith.constant 1 : i32
    %c0_i32_249 = arith.constant 0 : i32
    %c0_i32_250 = arith.constant 0 : i32
    %329 = tpu.memref_slice %arg3[%c0_i32_245, %c0_i32_249, %c0_i32_250] : memref<8x16x128xf32, #tpu.memory_space<any>> -> memref<1x16x128xf32, #tpu.memory_space<any>>
    %330 = tpu.memref_squeeze %329 : memref<1x16x128xf32, #tpu.memory_space<any>> -> memref<16x128xf32, #tpu.memory_space<any>>
    %c0_i32_251 = arith.constant 0 : i32
    %c0_i32_252 = arith.constant 0 : i32
    %331 = tpu.memref_slice %arg5[%c0_i32_246, %c0_i32_251, %c0_i32_252] : memref<8x16x128xf32, #tpu.memory_space<any>> -> memref<1x16x128xf32, #tpu.memory_space<any>>
    %332 = tpu.memref_squeeze %331 : memref<1x16x128xf32, #tpu.memory_space<any>> -> memref<16x128xf32, #tpu.memory_space<any>>
    %333 = tpu.memref_slice %arg8[%c4_i32_247, %c1_i32_248] : memref<8x4x!tpu.dma_semaphore, #tpu.memory_space<semaphore_mem>> -> memref<1x1x!tpu.dma_semaphore, #tpu.memory_space<semaphore_mem>>
    %334 = tpu.memref_squeeze %333 : memref<1x1x!tpu.dma_semaphore, #tpu.memory_space<semaphore_mem>> -> memref<!tpu.dma_semaphore, #tpu.memory_space<semaphore_mem>>
    tpu.wait_dma2 semaphore(%334 : memref<!tpu.dma_semaphore, #tpu.memory_space<semaphore_mem>>) src(%330 : memref<16x128xf32, #tpu.memory_space<any>>) dst(%332 : memref<16x128xf32, #tpu.memory_space<any>>)
    %c0_i32_253 = arith.constant 0 : i32
    %c0_i32_254 = arith.constant 0 : i32
    %c5_i32_255 = arith.constant 5 : i32
    %c1_i32_256 = arith.constant 1 : i32
    %c0_i32_257 = arith.constant 0 : i32
    %c0_i32_258 = arith.constant 0 : i32
    %335 = tpu.memref_slice %arg3[%c0_i32_253, %c0_i32_257, %c0_i32_258] : memref<8x16x128xf32, #tpu.memory_space<any>> -> memref<1x16x128xf32, #tpu.memory_space<any>>
    %336 = tpu.memref_squeeze %335 : memref<1x16x128xf32, #tpu.memory_space<any>> -> memref<16x128xf32, #tpu.memory_space<any>>
    %c0_i32_259 = arith.constant 0 : i32
    %c0_i32_260 = arith.constant 0 : i32
    %337 = tpu.memref_slice %arg5[%c0_i32_254, %c0_i32_259, %c0_i32_260] : memref<8x16x128xf32, #tpu.memory_space<any>> -> memref<1x16x128xf32, #tpu.memory_space<any>>
    %338 = tpu.memref_squeeze %337 : memref<1x16x128xf32, #tpu.memory_space<any>> -> memref<16x128xf32, #tpu.memory_space<any>>
    %339 = tpu.memref_slice %arg8[%c5_i32_255, %c1_i32_256] : memref<8x4x!tpu.dma_semaphore, #tpu.memory_space<semaphore_mem>> -> memref<1x1x!tpu.dma_semaphore, #tpu.memory_space<semaphore_mem>>
    %340 = tpu.memref_squeeze %339 : memref<1x1x!tpu.dma_semaphore, #tpu.memory_space<semaphore_mem>> -> memref<!tpu.dma_semaphore, #tpu.memory_space<semaphore_mem>>
    tpu.wait_dma2 semaphore(%340 : memref<!tpu.dma_semaphore, #tpu.memory_space<semaphore_mem>>) src(%336 : memref<16x128xf32, #tpu.memory_space<any>>) dst(%338 : memref<16x128xf32, #tpu.memory_space<any>>)
    %c0_i32_261 = arith.constant 0 : i32
    %c0_i32_262 = arith.constant 0 : i32
    %c6_i32_263 = arith.constant 6 : i32
    %c1_i32_264 = arith.constant 1 : i32
    %c0_i32_265 = arith.constant 0 : i32
    %c0_i32_266 = arith.constant 0 : i32
    %341 = tpu.memref_slice %arg3[%c0_i32_261, %c0_i32_265, %c0_i32_266] : memref<8x16x128xf32, #tpu.memory_space<any>> -> memref<1x16x128xf32, #tpu.memory_space<any>>
    %342 = tpu.memref_squeeze %341 : memref<1x16x128xf32, #tpu.memory_space<any>> -> memref<16x128xf32, #tpu.memory_space<any>>
    %c0_i32_267 = arith.constant 0 : i32
    %c0_i32_268 = arith.constant 0 : i32
    %343 = tpu.memref_slice %arg5[%c0_i32_262, %c0_i32_267, %c0_i32_268] : memref<8x16x128xf32, #tpu.memory_space<any>> -> memref<1x16x128xf32, #tpu.memory_space<any>>
    %344 = tpu.memref_squeeze %343 : memref<1x16x128xf32, #tpu.memory_space<any>> -> memref<16x128xf32, #tpu.memory_space<any>>
    %345 = tpu.memref_slice %arg8[%c6_i32_263, %c1_i32_264] : memref<8x4x!tpu.dma_semaphore, #tpu.memory_space<semaphore_mem>> -> memref<1x1x!tpu.dma_semaphore, #tpu.memory_space<semaphore_mem>>
    %346 = tpu.memref_squeeze %345 : memref<1x1x!tpu.dma_semaphore, #tpu.memory_space<semaphore_mem>> -> memref<!tpu.dma_semaphore, #tpu.memory_space<semaphore_mem>>
    tpu.wait_dma2 semaphore(%346 : memref<!tpu.dma_semaphore, #tpu.memory_space<semaphore_mem>>) src(%342 : memref<16x128xf32, #tpu.memory_space<any>>) dst(%344 : memref<16x128xf32, #tpu.memory_space<any>>)
    %c0_i32_269 = arith.constant 0 : i32
    %c0_i32_270 = arith.constant 0 : i32
    %c7_i32_271 = arith.constant 7 : i32
    %c1_i32_272 = arith.constant 1 : i32
    %c0_i32_273 = arith.constant 0 : i32
    %c0_i32_274 = arith.constant 0 : i32
    %347 = tpu.memref_slice %arg3[%c0_i32_269, %c0_i32_273, %c0_i32_274] : memref<8x16x128xf32, #tpu.memory_space<any>> -> memref<1x16x128xf32, #tpu.memory_space<any>>
    %348 = tpu.memref_squeeze %347 : memref<1x16x128xf32, #tpu.memory_space<any>> -> memref<16x128xf32, #tpu.memory_space<any>>
    %c0_i32_275 = arith.constant 0 : i32
    %c0_i32_276 = arith.constant 0 : i32
    %349 = tpu.memref_slice %arg5[%c0_i32_270, %c0_i32_275, %c0_i32_276] : memref<8x16x128xf32, #tpu.memory_space<any>> -> memref<1x16x128xf32, #tpu.memory_space<any>>
    %350 = tpu.memref_squeeze %349 : memref<1x16x128xf32, #tpu.memory_space<any>> -> memref<16x128xf32, #tpu.memory_space<any>>
    %351 = tpu.memref_slice %arg8[%c7_i32_271, %c1_i32_272] : memref<8x4x!tpu.dma_semaphore, #tpu.memory_space<semaphore_mem>> -> memref<1x1x!tpu.dma_semaphore, #tpu.memory_space<semaphore_mem>>
    %352 = tpu.memref_squeeze %351 : memref<1x1x!tpu.dma_semaphore, #tpu.memory_space<semaphore_mem>> -> memref<!tpu.dma_semaphore, #tpu.memory_space<semaphore_mem>>
    tpu.wait_dma2 semaphore(%352 : memref<!tpu.dma_semaphore, #tpu.memory_space<semaphore_mem>>) src(%348 : memref<16x128xf32, #tpu.memory_space<any>>) dst(%350 : memref<16x128xf32, #tpu.memory_space<any>>)
    %c0_i32_277 = arith.constant 0 : i32
    %353 = arith.cmpi ne, %124, %c0_i32_277 : i32
    %354 = arith.extui %353 : i1 to i32
    %c0_i32_278 = arith.constant 0 : i32
    %355 = arith.cmpi ne, %354, %c0_i32_278 : i32
    scf.if %355 {
      %c0_i32_437 = arith.constant 0 : i32
      %c3_i32_438 = arith.constant 3 : i32
      %c0_i32_439 = arith.constant 0 : i32
      %c0_i32_440 = arith.constant 0 : i32
      %497 = tpu.memref_slice %arg2[%3, %c0_i32_439, %c0_i32_440] : memref<8x16x128xf32, #tpu.memory_space<any>> -> memref<1x16x128xf32, #tpu.memory_space<any>>
      %498 = tpu.memref_squeeze %497 : memref<1x16x128xf32, #tpu.memory_space<any>> -> memref<16x128xf32, #tpu.memory_space<any>>
      %c0_i32_441 = arith.constant 0 : i32
      %c0_i32_442 = arith.constant 0 : i32
      %499 = tpu.memref_slice %arg7[%92, %c0_i32_441, %c0_i32_442] : memref<8x16x128xf32, #tpu.memory_space<any>> -> memref<1x16x128xf32, #tpu.memory_space<any>>
      %500 = tpu.memref_squeeze %499 : memref<1x16x128xf32, #tpu.memory_space<any>> -> memref<16x128xf32, #tpu.memory_space<any>>
      %501 = tpu.memref_slice %arg8[%c0_i32_437, %c3_i32_438] : memref<8x4x!tpu.dma_semaphore, #tpu.memory_space<semaphore_mem>> -> memref<1x1x!tpu.dma_semaphore, #tpu.memory_space<semaphore_mem>>
      %502 = tpu.memref_squeeze %501 : memref<1x1x!tpu.dma_semaphore, #tpu.memory_space<semaphore_mem>> -> memref<!tpu.dma_semaphore, #tpu.memory_space<semaphore_mem>>
      tpu.enqueue_dma source(%498 : memref<16x128xf32, #tpu.memory_space<any>>) target(%500 : memref<16x128xf32, #tpu.memory_space<any>>) target_semaphore(%502 : memref<!tpu.dma_semaphore, #tpu.memory_space<semaphore_mem>>)
    } else {
    }
    %c0_i32_279 = arith.constant 0 : i32
    %356 = arith.cmpi ne, %128, %c0_i32_279 : i32
    %357 = arith.extui %356 : i1 to i32
    %c0_i32_280 = arith.constant 0 : i32
    %358 = arith.cmpi ne, %357, %c0_i32_280 : i32
    scf.if %358 {
      %c1_i32_437 = arith.constant 1 : i32
      %c3_i32_438 = arith.constant 3 : i32
      %c0_i32_439 = arith.constant 0 : i32
      %c0_i32_440 = arith.constant 0 : i32
      %497 = tpu.memref_slice %arg2[%6, %c0_i32_439, %c0_i32_440] : memref<8x16x128xf32, #tpu.memory_space<any>> -> memref<1x16x128xf32, #tpu.memory_space<any>>
      %498 = tpu.memref_squeeze %497 : memref<1x16x128xf32, #tpu.memory_space<any>> -> memref<16x128xf32, #tpu.memory_space<any>>
      %c0_i32_441 = arith.constant 0 : i32
      %c0_i32_442 = arith.constant 0 : i32
      %499 = tpu.memref_slice %arg7[%96, %c0_i32_441, %c0_i32_442] : memref<8x16x128xf32, #tpu.memory_space<any>> -> memref<1x16x128xf32, #tpu.memory_space<any>>
      %500 = tpu.memref_squeeze %499 : memref<1x16x128xf32, #tpu.memory_space<any>> -> memref<16x128xf32, #tpu.memory_space<any>>
      %501 = tpu.memref_slice %arg8[%c1_i32_437, %c3_i32_438] : memref<8x4x!tpu.dma_semaphore, #tpu.memory_space<semaphore_mem>> -> memref<1x1x!tpu.dma_semaphore, #tpu.memory_space<semaphore_mem>>
      %502 = tpu.memref_squeeze %501 : memref<1x1x!tpu.dma_semaphore, #tpu.memory_space<semaphore_mem>> -> memref<!tpu.dma_semaphore, #tpu.memory_space<semaphore_mem>>
      tpu.enqueue_dma source(%498 : memref<16x128xf32, #tpu.memory_space<any>>) target(%500 : memref<16x128xf32, #tpu.memory_space<any>>) target_semaphore(%502 : memref<!tpu.dma_semaphore, #tpu.memory_space<semaphore_mem>>)
    } else {
    }
    %c0_i32_281 = arith.constant 0 : i32
    %359 = arith.cmpi ne, %132, %c0_i32_281 : i32
    %360 = arith.extui %359 : i1 to i32
    %c0_i32_282 = arith.constant 0 : i32
    %361 = arith.cmpi ne, %360, %c0_i32_282 : i32
    scf.if %361 {
      %c2_i32_437 = arith.constant 2 : i32
      %c3_i32_438 = arith.constant 3 : i32
      %c0_i32_439 = arith.constant 0 : i32
      %c0_i32_440 = arith.constant 0 : i32
      %497 = tpu.memref_slice %arg2[%9, %c0_i32_439, %c0_i32_440] : memref<8x16x128xf32, #tpu.memory_space<any>> -> memref<1x16x128xf32, #tpu.memory_space<any>>
      %498 = tpu.memref_squeeze %497 : memref<1x16x128xf32, #tpu.memory_space<any>> -> memref<16x128xf32, #tpu.memory_space<any>>
      %c0_i32_441 = arith.constant 0 : i32
      %c0_i32_442 = arith.constant 0 : i32
      %499 = tpu.memref_slice %arg7[%100, %c0_i32_441, %c0_i32_442] : memref<8x16x128xf32, #tpu.memory_space<any>> -> memref<1x16x128xf32, #tpu.memory_space<any>>
      %500 = tpu.memref_squeeze %499 : memref<1x16x128xf32, #tpu.memory_space<any>> -> memref<16x128xf32, #tpu.memory_space<any>>
      %501 = tpu.memref_slice %arg8[%c2_i32_437, %c3_i32_438] : memref<8x4x!tpu.dma_semaphore, #tpu.memory_space<semaphore_mem>> -> memref<1x1x!tpu.dma_semaphore, #tpu.memory_space<semaphore_mem>>
      %502 = tpu.memref_squeeze %501 : memref<1x1x!tpu.dma_semaphore, #tpu.memory_space<semaphore_mem>> -> memref<!tpu.dma_semaphore, #tpu.memory_space<semaphore_mem>>
      tpu.enqueue_dma source(%498 : memref<16x128xf32, #tpu.memory_space<any>>) target(%500 : memref<16x128xf32, #tpu.memory_space<any>>) target_semaphore(%502 : memref<!tpu.dma_semaphore, #tpu.memory_space<semaphore_mem>>)
    } else {
    }
    %c0_i32_283 = arith.constant 0 : i32
    %362 = arith.cmpi ne, %136, %c0_i32_283 : i32
    %363 = arith.extui %362 : i1 to i32
    %c0_i32_284 = arith.constant 0 : i32
    %364 = arith.cmpi ne, %363, %c0_i32_284 : i32
    scf.if %364 {
      %c3_i32_437 = arith.constant 3 : i32
      %c3_i32_438 = arith.constant 3 : i32
      %c0_i32_439 = arith.constant 0 : i32
      %c0_i32_440 = arith.constant 0 : i32
      %497 = tpu.memref_slice %arg2[%12, %c0_i32_439, %c0_i32_440] : memref<8x16x128xf32, #tpu.memory_space<any>> -> memref<1x16x128xf32, #tpu.memory_space<any>>
      %498 = tpu.memref_squeeze %497 : memref<1x16x128xf32, #tpu.memory_space<any>> -> memref<16x128xf32, #tpu.memory_space<any>>
      %c0_i32_441 = arith.constant 0 : i32
      %c0_i32_442 = arith.constant 0 : i32
      %499 = tpu.memref_slice %arg7[%104, %c0_i32_441, %c0_i32_442] : memref<8x16x128xf32, #tpu.memory_space<any>> -> memref<1x16x128xf32, #tpu.memory_space<any>>
      %500 = tpu.memref_squeeze %499 : memref<1x16x128xf32, #tpu.memory_space<any>> -> memref<16x128xf32, #tpu.memory_space<any>>
      %501 = tpu.memref_slice %arg8[%c3_i32_437, %c3_i32_438] : memref<8x4x!tpu.dma_semaphore, #tpu.memory_space<semaphore_mem>> -> memref<1x1x!tpu.dma_semaphore, #tpu.memory_space<semaphore_mem>>
      %502 = tpu.memref_squeeze %501 : memref<1x1x!tpu.dma_semaphore, #tpu.memory_space<semaphore_mem>> -> memref<!tpu.dma_semaphore, #tpu.memory_space<semaphore_mem>>
      tpu.enqueue_dma source(%498 : memref<16x128xf32, #tpu.memory_space<any>>) target(%500 : memref<16x128xf32, #tpu.memory_space<any>>) target_semaphore(%502 : memref<!tpu.dma_semaphore, #tpu.memory_space<semaphore_mem>>)
    } else {
    }
    %c0_i32_285 = arith.constant 0 : i32
    %365 = arith.cmpi ne, %140, %c0_i32_285 : i32
    %366 = arith.extui %365 : i1 to i32
    %c0_i32_286 = arith.constant 0 : i32
    %367 = arith.cmpi ne, %366, %c0_i32_286 : i32
    scf.if %367 {
      %c4_i32_437 = arith.constant 4 : i32
      %c3_i32_438 = arith.constant 3 : i32
      %c0_i32_439 = arith.constant 0 : i32
      %c0_i32_440 = arith.constant 0 : i32
      %497 = tpu.memref_slice %arg2[%15, %c0_i32_439, %c0_i32_440] : memref<8x16x128xf32, #tpu.memory_space<any>> -> memref<1x16x128xf32, #tpu.memory_space<any>>
      %498 = tpu.memref_squeeze %497 : memref<1x16x128xf32, #tpu.memory_space<any>> -> memref<16x128xf32, #tpu.memory_space<any>>
      %c0_i32_441 = arith.constant 0 : i32
      %c0_i32_442 = arith.constant 0 : i32
      %499 = tpu.memref_slice %arg7[%108, %c0_i32_441, %c0_i32_442] : memref<8x16x128xf32, #tpu.memory_space<any>> -> memref<1x16x128xf32, #tpu.memory_space<any>>
      %500 = tpu.memref_squeeze %499 : memref<1x16x128xf32, #tpu.memory_space<any>> -> memref<16x128xf32, #tpu.memory_space<any>>
      %501 = tpu.memref_slice %arg8[%c4_i32_437, %c3_i32_438] : memref<8x4x!tpu.dma_semaphore, #tpu.memory_space<semaphore_mem>> -> memref<1x1x!tpu.dma_semaphore, #tpu.memory_space<semaphore_mem>>
      %502 = tpu.memref_squeeze %501 : memref<1x1x!tpu.dma_semaphore, #tpu.memory_space<semaphore_mem>> -> memref<!tpu.dma_semaphore, #tpu.memory_space<semaphore_mem>>
      tpu.enqueue_dma source(%498 : memref<16x128xf32, #tpu.memory_space<any>>) target(%500 : memref<16x128xf32, #tpu.memory_space<any>>) target_semaphore(%502 : memref<!tpu.dma_semaphore, #tpu.memory_space<semaphore_mem>>)
    } else {
    }
    %c0_i32_287 = arith.constant 0 : i32
    %368 = arith.cmpi ne, %144, %c0_i32_287 : i32
    %369 = arith.extui %368 : i1 to i32
    %c0_i32_288 = arith.constant 0 : i32
    %370 = arith.cmpi ne, %369, %c0_i32_288 : i32
    scf.if %370 {
      %c5_i32_437 = arith.constant 5 : i32
      %c3_i32_438 = arith.constant 3 : i32
      %c0_i32_439 = arith.constant 0 : i32
      %c0_i32_440 = arith.constant 0 : i32
      %497 = tpu.memref_slice %arg2[%18, %c0_i32_439, %c0_i32_440] : memref<8x16x128xf32, #tpu.memory_space<any>> -> memref<1x16x128xf32, #tpu.memory_space<any>>
      %498 = tpu.memref_squeeze %497 : memref<1x16x128xf32, #tpu.memory_space<any>> -> memref<16x128xf32, #tpu.memory_space<any>>
      %c0_i32_441 = arith.constant 0 : i32
      %c0_i32_442 = arith.constant 0 : i32
      %499 = tpu.memref_slice %arg7[%112, %c0_i32_441, %c0_i32_442] : memref<8x16x128xf32, #tpu.memory_space<any>> -> memref<1x16x128xf32, #tpu.memory_space<any>>
      %500 = tpu.memref_squeeze %499 : memref<1x16x128xf32, #tpu.memory_space<any>> -> memref<16x128xf32, #tpu.memory_space<any>>
      %501 = tpu.memref_slice %arg8[%c5_i32_437, %c3_i32_438] : memref<8x4x!tpu.dma_semaphore, #tpu.memory_space<semaphore_mem>> -> memref<1x1x!tpu.dma_semaphore, #tpu.memory_space<semaphore_mem>>
      %502 = tpu.memref_squeeze %501 : memref<1x1x!tpu.dma_semaphore, #tpu.memory_space<semaphore_mem>> -> memref<!tpu.dma_semaphore, #tpu.memory_space<semaphore_mem>>
      tpu.enqueue_dma source(%498 : memref<16x128xf32, #tpu.memory_space<any>>) target(%500 : memref<16x128xf32, #tpu.memory_space<any>>) target_semaphore(%502 : memref<!tpu.dma_semaphore, #tpu.memory_space<semaphore_mem>>)
    } else {
    }
    %c0_i32_289 = arith.constant 0 : i32
    %371 = arith.cmpi ne, %148, %c0_i32_289 : i32
    %372 = arith.extui %371 : i1 to i32
    %c0_i32_290 = arith.constant 0 : i32
    %373 = arith.cmpi ne, %372, %c0_i32_290 : i32
    scf.if %373 {
      %c6_i32_437 = arith.constant 6 : i32
      %c3_i32_438 = arith.constant 3 : i32
      %c0_i32_439 = arith.constant 0 : i32
      %c0_i32_440 = arith.constant 0 : i32
      %497 = tpu.memref_slice %arg2[%21, %c0_i32_439, %c0_i32_440] : memref<8x16x128xf32, #tpu.memory_space<any>> -> memref<1x16x128xf32, #tpu.memory_space<any>>
      %498 = tpu.memref_squeeze %497 : memref<1x16x128xf32, #tpu.memory_space<any>> -> memref<16x128xf32, #tpu.memory_space<any>>
      %c0_i32_441 = arith.constant 0 : i32
      %c0_i32_442 = arith.constant 0 : i32
      %499 = tpu.memref_slice %arg7[%116, %c0_i32_441, %c0_i32_442] : memref<8x16x128xf32, #tpu.memory_space<any>> -> memref<1x16x128xf32, #tpu.memory_space<any>>
      %500 = tpu.memref_squeeze %499 : memref<1x16x128xf32, #tpu.memory_space<any>> -> memref<16x128xf32, #tpu.memory_space<any>>
      %501 = tpu.memref_slice %arg8[%c6_i32_437, %c3_i32_438] : memref<8x4x!tpu.dma_semaphore, #tpu.memory_space<semaphore_mem>> -> memref<1x1x!tpu.dma_semaphore, #tpu.memory_space<semaphore_mem>>
      %502 = tpu.memref_squeeze %501 : memref<1x1x!tpu.dma_semaphore, #tpu.memory_space<semaphore_mem>> -> memref<!tpu.dma_semaphore, #tpu.memory_space<semaphore_mem>>
      tpu.enqueue_dma source(%498 : memref<16x128xf32, #tpu.memory_space<any>>) target(%500 : memref<16x128xf32, #tpu.memory_space<any>>) target_semaphore(%502 : memref<!tpu.dma_semaphore, #tpu.memory_space<semaphore_mem>>)
    } else {
    }
    %c0_i32_291 = arith.constant 0 : i32
    %374 = arith.cmpi ne, %152, %c0_i32_291 : i32
    %375 = arith.extui %374 : i1 to i32
    %c0_i32_292 = arith.constant 0 : i32
    %376 = arith.cmpi ne, %375, %c0_i32_292 : i32
    scf.if %376 {
      %c7_i32_437 = arith.constant 7 : i32
      %c3_i32_438 = arith.constant 3 : i32
      %c0_i32_439 = arith.constant 0 : i32
      %c0_i32_440 = arith.constant 0 : i32
      %497 = tpu.memref_slice %arg2[%24, %c0_i32_439, %c0_i32_440] : memref<8x16x128xf32, #tpu.memory_space<any>> -> memref<1x16x128xf32, #tpu.memory_space<any>>
      %498 = tpu.memref_squeeze %497 : memref<1x16x128xf32, #tpu.memory_space<any>> -> memref<16x128xf32, #tpu.memory_space<any>>
      %c0_i32_441 = arith.constant 0 : i32
      %c0_i32_442 = arith.constant 0 : i32
      %499 = tpu.memref_slice %arg7[%120, %c0_i32_441, %c0_i32_442] : memref<8x16x128xf32, #tpu.memory_space<any>> -> memref<1x16x128xf32, #tpu.memory_space<any>>
      %500 = tpu.memref_squeeze %499 : memref<1x16x128xf32, #tpu.memory_space<any>> -> memref<16x128xf32, #tpu.memory_space<any>>
      %501 = tpu.memref_slice %arg8[%c7_i32_437, %c3_i32_438] : memref<8x4x!tpu.dma_semaphore, #tpu.memory_space<semaphore_mem>> -> memref<1x1x!tpu.dma_semaphore, #tpu.memory_space<semaphore_mem>>
      %502 = tpu.memref_squeeze %501 : memref<1x1x!tpu.dma_semaphore, #tpu.memory_space<semaphore_mem>> -> memref<!tpu.dma_semaphore, #tpu.memory_space<semaphore_mem>>
      tpu.enqueue_dma source(%498 : memref<16x128xf32, #tpu.memory_space<any>>) target(%500 : memref<16x128xf32, #tpu.memory_space<any>>) target_semaphore(%502 : memref<!tpu.dma_semaphore, #tpu.memory_space<semaphore_mem>>)
    } else {
    }
    %c0_i32_293 = arith.constant 0 : i32
    %c0_i32_294 = arith.constant 0 : i32
    %c0_i32_295 = arith.constant 0 : i32
    %c0_i32_296 = arith.constant 0 : i32
    %c0_i32_297 = arith.constant 0 : i32
    %c0_i32_298 = arith.constant 0 : i32
    %377 = tpu.memref_slice %arg2[%c0_i32_293, %c0_i32_297, %c0_i32_298] : memref<8x16x128xf32, #tpu.memory_space<any>> -> memref<1x16x128xf32, #tpu.memory_space<any>>
    %378 = tpu.memref_squeeze %377 : memref<1x16x128xf32, #tpu.memory_space<any>> -> memref<16x128xf32, #tpu.memory_space<any>>
    %c0_i32_299 = arith.constant 0 : i32
    %c0_i32_300 = arith.constant 0 : i32
    %379 = tpu.memref_slice %arg4[%c0_i32_294, %c0_i32_299, %c0_i32_300] : memref<8x16x128xf32, #tpu.memory_space<any>> -> memref<1x16x128xf32, #tpu.memory_space<any>>
    %380 = tpu.memref_squeeze %379 : memref<1x16x128xf32, #tpu.memory_space<any>> -> memref<16x128xf32, #tpu.memory_space<any>>
    %381 = tpu.memref_slice %arg8[%c0_i32_295, %c0_i32_296] : memref<8x4x!tpu.dma_semaphore, #tpu.memory_space<semaphore_mem>> -> memref<1x1x!tpu.dma_semaphore, #tpu.memory_space<semaphore_mem>>
    %382 = tpu.memref_squeeze %381 : memref<1x1x!tpu.dma_semaphore, #tpu.memory_space<semaphore_mem>> -> memref<!tpu.dma_semaphore, #tpu.memory_space<semaphore_mem>>
    tpu.wait_dma2 semaphore(%382 : memref<!tpu.dma_semaphore, #tpu.memory_space<semaphore_mem>>) src(%378 : memref<16x128xf32, #tpu.memory_space<any>>) dst(%380 : memref<16x128xf32, #tpu.memory_space<any>>)
    %c0_i32_301 = arith.constant 0 : i32
    %c0_i32_302 = arith.constant 0 : i32
    %c0_i32_303 = arith.constant 0 : i32
    %c2_i32_304 = arith.constant 2 : i32
    %c0_i32_305 = arith.constant 0 : i32
    %c0_i32_306 = arith.constant 0 : i32
    %383 = tpu.memref_slice %arg2[%c0_i32_301, %c0_i32_305, %c0_i32_306] : memref<8x16x128xf32, #tpu.memory_space<any>> -> memref<1x16x128xf32, #tpu.memory_space<any>>
    %384 = tpu.memref_squeeze %383 : memref<1x16x128xf32, #tpu.memory_space<any>> -> memref<16x128xf32, #tpu.memory_space<any>>
    %c0_i32_307 = arith.constant 0 : i32
    %c0_i32_308 = arith.constant 0 : i32
    %385 = tpu.memref_slice %arg6[%c0_i32_302, %c0_i32_307, %c0_i32_308] : memref<8x16x128xf32, #tpu.memory_space<any>> -> memref<1x16x128xf32, #tpu.memory_space<any>>
    %386 = tpu.memref_squeeze %385 : memref<1x16x128xf32, #tpu.memory_space<any>> -> memref<16x128xf32, #tpu.memory_space<any>>
    %387 = tpu.memref_slice %arg8[%c0_i32_303, %c2_i32_304] : memref<8x4x!tpu.dma_semaphore, #tpu.memory_space<semaphore_mem>> -> memref<1x1x!tpu.dma_semaphore, #tpu.memory_space<semaphore_mem>>
    %388 = tpu.memref_squeeze %387 : memref<1x1x!tpu.dma_semaphore, #tpu.memory_space<semaphore_mem>> -> memref<!tpu.dma_semaphore, #tpu.memory_space<semaphore_mem>>
    tpu.wait_dma2 semaphore(%388 : memref<!tpu.dma_semaphore, #tpu.memory_space<semaphore_mem>>) src(%384 : memref<16x128xf32, #tpu.memory_space<any>>) dst(%386 : memref<16x128xf32, #tpu.memory_space<any>>)
    %c0_i32_309 = arith.constant 0 : i32
    %c0_i32_310 = arith.constant 0 : i32
    %c1_i32_311 = arith.constant 1 : i32
    %c0_i32_312 = arith.constant 0 : i32
    %c0_i32_313 = arith.constant 0 : i32
    %c0_i32_314 = arith.constant 0 : i32
    %389 = tpu.memref_slice %arg2[%c0_i32_309, %c0_i32_313, %c0_i32_314] : memref<8x16x128xf32, #tpu.memory_space<any>> -> memref<1x16x128xf32, #tpu.memory_space<any>>
    %390 = tpu.memref_squeeze %389 : memref<1x16x128xf32, #tpu.memory_space<any>> -> memref<16x128xf32, #tpu.memory_space<any>>
    %c0_i32_315 = arith.constant 0 : i32
    %c0_i32_316 = arith.constant 0 : i32
    %391 = tpu.memref_slice %arg4[%c0_i32_310, %c0_i32_315, %c0_i32_316] : memref<8x16x128xf32, #tpu.memory_space<any>> -> memref<1x16x128xf32, #tpu.memory_space<any>>
    %392 = tpu.memref_squeeze %391 : memref<1x16x128xf32, #tpu.memory_space<any>> -> memref<16x128xf32, #tpu.memory_space<any>>
    %393 = tpu.memref_slice %arg8[%c1_i32_311, %c0_i32_312] : memref<8x4x!tpu.dma_semaphore, #tpu.memory_space<semaphore_mem>> -> memref<1x1x!tpu.dma_semaphore, #tpu.memory_space<semaphore_mem>>
    %394 = tpu.memref_squeeze %393 : memref<1x1x!tpu.dma_semaphore, #tpu.memory_space<semaphore_mem>> -> memref<!tpu.dma_semaphore, #tpu.memory_space<semaphore_mem>>
    tpu.wait_dma2 semaphore(%394 : memref<!tpu.dma_semaphore, #tpu.memory_space<semaphore_mem>>) src(%390 : memref<16x128xf32, #tpu.memory_space<any>>) dst(%392 : memref<16x128xf32, #tpu.memory_space<any>>)
    %c0_i32_317 = arith.constant 0 : i32
    %c0_i32_318 = arith.constant 0 : i32
    %c1_i32_319 = arith.constant 1 : i32
    %c2_i32_320 = arith.constant 2 : i32
    %c0_i32_321 = arith.constant 0 : i32
    %c0_i32_322 = arith.constant 0 : i32
    %395 = tpu.memref_slice %arg2[%c0_i32_317, %c0_i32_321, %c0_i32_322] : memref<8x16x128xf32, #tpu.memory_space<any>> -> memref<1x16x128xf32, #tpu.memory_space<any>>
    %396 = tpu.memref_squeeze %395 : memref<1x16x128xf32, #tpu.memory_space<any>> -> memref<16x128xf32, #tpu.memory_space<any>>
    %c0_i32_323 = arith.constant 0 : i32
    %c0_i32_324 = arith.constant 0 : i32
    %397 = tpu.memref_slice %arg6[%c0_i32_318, %c0_i32_323, %c0_i32_324] : memref<8x16x128xf32, #tpu.memory_space<any>> -> memref<1x16x128xf32, #tpu.memory_space<any>>
    %398 = tpu.memref_squeeze %397 : memref<1x16x128xf32, #tpu.memory_space<any>> -> memref<16x128xf32, #tpu.memory_space<any>>
    %399 = tpu.memref_slice %arg8[%c1_i32_319, %c2_i32_320] : memref<8x4x!tpu.dma_semaphore, #tpu.memory_space<semaphore_mem>> -> memref<1x1x!tpu.dma_semaphore, #tpu.memory_space<semaphore_mem>>
    %400 = tpu.memref_squeeze %399 : memref<1x1x!tpu.dma_semaphore, #tpu.memory_space<semaphore_mem>> -> memref<!tpu.dma_semaphore, #tpu.memory_space<semaphore_mem>>
    tpu.wait_dma2 semaphore(%400 : memref<!tpu.dma_semaphore, #tpu.memory_space<semaphore_mem>>) src(%396 : memref<16x128xf32, #tpu.memory_space<any>>) dst(%398 : memref<16x128xf32, #tpu.memory_space<any>>)
    %c0_i32_325 = arith.constant 0 : i32
    %c0_i32_326 = arith.constant 0 : i32
    %c2_i32_327 = arith.constant 2 : i32
    %c0_i32_328 = arith.constant 0 : i32
    %c0_i32_329 = arith.constant 0 : i32
    %c0_i32_330 = arith.constant 0 : i32
    %401 = tpu.memref_slice %arg2[%c0_i32_325, %c0_i32_329, %c0_i32_330] : memref<8x16x128xf32, #tpu.memory_space<any>> -> memref<1x16x128xf32, #tpu.memory_space<any>>
    %402 = tpu.memref_squeeze %401 : memref<1x16x128xf32, #tpu.memory_space<any>> -> memref<16x128xf32, #tpu.memory_space<any>>
    %c0_i32_331 = arith.constant 0 : i32
    %c0_i32_332 = arith.constant 0 : i32
    %403 = tpu.memref_slice %arg4[%c0_i32_326, %c0_i32_331, %c0_i32_332] : memref<8x16x128xf32, #tpu.memory_space<any>> -> memref<1x16x128xf32, #tpu.memory_space<any>>
    %404 = tpu.memref_squeeze %403 : memref<1x16x128xf32, #tpu.memory_space<any>> -> memref<16x128xf32, #tpu.memory_space<any>>
    %405 = tpu.memref_slice %arg8[%c2_i32_327, %c0_i32_328] : memref<8x4x!tpu.dma_semaphore, #tpu.memory_space<semaphore_mem>> -> memref<1x1x!tpu.dma_semaphore, #tpu.memory_space<semaphore_mem>>
    %406 = tpu.memref_squeeze %405 : memref<1x1x!tpu.dma_semaphore, #tpu.memory_space<semaphore_mem>> -> memref<!tpu.dma_semaphore, #tpu.memory_space<semaphore_mem>>
    tpu.wait_dma2 semaphore(%406 : memref<!tpu.dma_semaphore, #tpu.memory_space<semaphore_mem>>) src(%402 : memref<16x128xf32, #tpu.memory_space<any>>) dst(%404 : memref<16x128xf32, #tpu.memory_space<any>>)
    %c0_i32_333 = arith.constant 0 : i32
    %c0_i32_334 = arith.constant 0 : i32
    %c2_i32_335 = arith.constant 2 : i32
    %c2_i32_336 = arith.constant 2 : i32
    %c0_i32_337 = arith.constant 0 : i32
    %c0_i32_338 = arith.constant 0 : i32
    %407 = tpu.memref_slice %arg2[%c0_i32_333, %c0_i32_337, %c0_i32_338] : memref<8x16x128xf32, #tpu.memory_space<any>> -> memref<1x16x128xf32, #tpu.memory_space<any>>
    %408 = tpu.memref_squeeze %407 : memref<1x16x128xf32, #tpu.memory_space<any>> -> memref<16x128xf32, #tpu.memory_space<any>>
    %c0_i32_339 = arith.constant 0 : i32
    %c0_i32_340 = arith.constant 0 : i32
    %409 = tpu.memref_slice %arg6[%c0_i32_334, %c0_i32_339, %c0_i32_340] : memref<8x16x128xf32, #tpu.memory_space<any>> -> memref<1x16x128xf32, #tpu.memory_space<any>>
    %410 = tpu.memref_squeeze %409 : memref<1x16x128xf32, #tpu.memory_space<any>> -> memref<16x128xf32, #tpu.memory_space<any>>
    %411 = tpu.memref_slice %arg8[%c2_i32_335, %c2_i32_336] : memref<8x4x!tpu.dma_semaphore, #tpu.memory_space<semaphore_mem>> -> memref<1x1x!tpu.dma_semaphore, #tpu.memory_space<semaphore_mem>>
    %412 = tpu.memref_squeeze %411 : memref<1x1x!tpu.dma_semaphore, #tpu.memory_space<semaphore_mem>> -> memref<!tpu.dma_semaphore, #tpu.memory_space<semaphore_mem>>
    tpu.wait_dma2 semaphore(%412 : memref<!tpu.dma_semaphore, #tpu.memory_space<semaphore_mem>>) src(%408 : memref<16x128xf32, #tpu.memory_space<any>>) dst(%410 : memref<16x128xf32, #tpu.memory_space<any>>)
    %c0_i32_341 = arith.constant 0 : i32
    %c0_i32_342 = arith.constant 0 : i32
    %c3_i32_343 = arith.constant 3 : i32
    %c0_i32_344 = arith.constant 0 : i32
    %c0_i32_345 = arith.constant 0 : i32
    %c0_i32_346 = arith.constant 0 : i32
    %413 = tpu.memref_slice %arg2[%c0_i32_341, %c0_i32_345, %c0_i32_346] : memref<8x16x128xf32, #tpu.memory_space<any>> -> memref<1x16x128xf32, #tpu.memory_space<any>>
    %414 = tpu.memref_squeeze %413 : memref<1x16x128xf32, #tpu.memory_space<any>> -> memref<16x128xf32, #tpu.memory_space<any>>
    %c0_i32_347 = arith.constant 0 : i32
    %c0_i32_348 = arith.constant 0 : i32
    %415 = tpu.memref_slice %arg4[%c0_i32_342, %c0_i32_347, %c0_i32_348] : memref<8x16x128xf32, #tpu.memory_space<any>> -> memref<1x16x128xf32, #tpu.memory_space<any>>
    %416 = tpu.memref_squeeze %415 : memref<1x16x128xf32, #tpu.memory_space<any>> -> memref<16x128xf32, #tpu.memory_space<any>>
    %417 = tpu.memref_slice %arg8[%c3_i32_343, %c0_i32_344] : memref<8x4x!tpu.dma_semaphore, #tpu.memory_space<semaphore_mem>> -> memref<1x1x!tpu.dma_semaphore, #tpu.memory_space<semaphore_mem>>
    %418 = tpu.memref_squeeze %417 : memref<1x1x!tpu.dma_semaphore, #tpu.memory_space<semaphore_mem>> -> memref<!tpu.dma_semaphore, #tpu.memory_space<semaphore_mem>>
    tpu.wait_dma2 semaphore(%418 : memref<!tpu.dma_semaphore, #tpu.memory_space<semaphore_mem>>) src(%414 : memref<16x128xf32, #tpu.memory_space<any>>) dst(%416 : memref<16x128xf32, #tpu.memory_space<any>>)
    %c0_i32_349 = arith.constant 0 : i32
    %c0_i32_350 = arith.constant 0 : i32
    %c3_i32_351 = arith.constant 3 : i32
    %c2_i32_352 = arith.constant 2 : i32
    %c0_i32_353 = arith.constant 0 : i32
    %c0_i32_354 = arith.constant 0 : i32
    %419 = tpu.memref_slice %arg2[%c0_i32_349, %c0_i32_353, %c0_i32_354] : memref<8x16x128xf32, #tpu.memory_space<any>> -> memref<1x16x128xf32, #tpu.memory_space<any>>
    %420 = tpu.memref_squeeze %419 : memref<1x16x128xf32, #tpu.memory_space<any>> -> memref<16x128xf32, #tpu.memory_space<any>>
    %c0_i32_355 = arith.constant 0 : i32
    %c0_i32_356 = arith.constant 0 : i32
    %421 = tpu.memref_slice %arg6[%c0_i32_350, %c0_i32_355, %c0_i32_356] : memref<8x16x128xf32, #tpu.memory_space<any>> -> memref<1x16x128xf32, #tpu.memory_space<any>>
    %422 = tpu.memref_squeeze %421 : memref<1x16x128xf32, #tpu.memory_space<any>> -> memref<16x128xf32, #tpu.memory_space<any>>
    %423 = tpu.memref_slice %arg8[%c3_i32_351, %c2_i32_352] : memref<8x4x!tpu.dma_semaphore, #tpu.memory_space<semaphore_mem>> -> memref<1x1x!tpu.dma_semaphore, #tpu.memory_space<semaphore_mem>>
    %424 = tpu.memref_squeeze %423 : memref<1x1x!tpu.dma_semaphore, #tpu.memory_space<semaphore_mem>> -> memref<!tpu.dma_semaphore, #tpu.memory_space<semaphore_mem>>
    tpu.wait_dma2 semaphore(%424 : memref<!tpu.dma_semaphore, #tpu.memory_space<semaphore_mem>>) src(%420 : memref<16x128xf32, #tpu.memory_space<any>>) dst(%422 : memref<16x128xf32, #tpu.memory_space<any>>)
    %c0_i32_357 = arith.constant 0 : i32
    %c0_i32_358 = arith.constant 0 : i32
    %c4_i32_359 = arith.constant 4 : i32
    %c0_i32_360 = arith.constant 0 : i32
    %c0_i32_361 = arith.constant 0 : i32
    %c0_i32_362 = arith.constant 0 : i32
    %425 = tpu.memref_slice %arg2[%c0_i32_357, %c0_i32_361, %c0_i32_362] : memref<8x16x128xf32, #tpu.memory_space<any>> -> memref<1x16x128xf32, #tpu.memory_space<any>>
    %426 = tpu.memref_squeeze %425 : memref<1x16x128xf32, #tpu.memory_space<any>> -> memref<16x128xf32, #tpu.memory_space<any>>
    %c0_i32_363 = arith.constant 0 : i32
    %c0_i32_364 = arith.constant 0 : i32
    %427 = tpu.memref_slice %arg4[%c0_i32_358, %c0_i32_363, %c0_i32_364] : memref<8x16x128xf32, #tpu.memory_space<any>> -> memref<1x16x128xf32, #tpu.memory_space<any>>
    %428 = tpu.memref_squeeze %427 : memref<1x16x128xf32, #tpu.memory_space<any>> -> memref<16x128xf32, #tpu.memory_space<any>>
    %429 = tpu.memref_slice %arg8[%c4_i32_359, %c0_i32_360] : memref<8x4x!tpu.dma_semaphore, #tpu.memory_space<semaphore_mem>> -> memref<1x1x!tpu.dma_semaphore, #tpu.memory_space<semaphore_mem>>
    %430 = tpu.memref_squeeze %429 : memref<1x1x!tpu.dma_semaphore, #tpu.memory_space<semaphore_mem>> -> memref<!tpu.dma_semaphore, #tpu.memory_space<semaphore_mem>>
    tpu.wait_dma2 semaphore(%430 : memref<!tpu.dma_semaphore, #tpu.memory_space<semaphore_mem>>) src(%426 : memref<16x128xf32, #tpu.memory_space<any>>) dst(%428 : memref<16x128xf32, #tpu.memory_space<any>>)
    %c0_i32_365 = arith.constant 0 : i32
    %c0_i32_366 = arith.constant 0 : i32
    %c4_i32_367 = arith.constant 4 : i32
    %c2_i32_368 = arith.constant 2 : i32
    %c0_i32_369 = arith.constant 0 : i32
    %c0_i32_370 = arith.constant 0 : i32
    %431 = tpu.memref_slice %arg2[%c0_i32_365, %c0_i32_369, %c0_i32_370] : memref<8x16x128xf32, #tpu.memory_space<any>> -> memref<1x16x128xf32, #tpu.memory_space<any>>
    %432 = tpu.memref_squeeze %431 : memref<1x16x128xf32, #tpu.memory_space<any>> -> memref<16x128xf32, #tpu.memory_space<any>>
    %c0_i32_371 = arith.constant 0 : i32
    %c0_i32_372 = arith.constant 0 : i32
    %433 = tpu.memref_slice %arg6[%c0_i32_366, %c0_i32_371, %c0_i32_372] : memref<8x16x128xf32, #tpu.memory_space<any>> -> memref<1x16x128xf32, #tpu.memory_space<any>>
    %434 = tpu.memref_squeeze %433 : memref<1x16x128xf32, #tpu.memory_space<any>> -> memref<16x128xf32, #tpu.memory_space<any>>
    %435 = tpu.memref_slice %arg8[%c4_i32_367, %c2_i32_368] : memref<8x4x!tpu.dma_semaphore, #tpu.memory_space<semaphore_mem>> -> memref<1x1x!tpu.dma_semaphore, #tpu.memory_space<semaphore_mem>>
    %436 = tpu.memref_squeeze %435 : memref<1x1x!tpu.dma_semaphore, #tpu.memory_space<semaphore_mem>> -> memref<!tpu.dma_semaphore, #tpu.memory_space<semaphore_mem>>
    tpu.wait_dma2 semaphore(%436 : memref<!tpu.dma_semaphore, #tpu.memory_space<semaphore_mem>>) src(%432 : memref<16x128xf32, #tpu.memory_space<any>>) dst(%434 : memref<16x128xf32, #tpu.memory_space<any>>)
    %c0_i32_373 = arith.constant 0 : i32
    %c0_i32_374 = arith.constant 0 : i32
    %c5_i32_375 = arith.constant 5 : i32
    %c0_i32_376 = arith.constant 0 : i32
    %c0_i32_377 = arith.constant 0 : i32
    %c0_i32_378 = arith.constant 0 : i32
    %437 = tpu.memref_slice %arg2[%c0_i32_373, %c0_i32_377, %c0_i32_378] : memref<8x16x128xf32, #tpu.memory_space<any>> -> memref<1x16x128xf32, #tpu.memory_space<any>>
    %438 = tpu.memref_squeeze %437 : memref<1x16x128xf32, #tpu.memory_space<any>> -> memref<16x128xf32, #tpu.memory_space<any>>
    %c0_i32_379 = arith.constant 0 : i32
    %c0_i32_380 = arith.constant 0 : i32
    %439 = tpu.memref_slice %arg4[%c0_i32_374, %c0_i32_379, %c0_i32_380] : memref<8x16x128xf32, #tpu.memory_space<any>> -> memref<1x16x128xf32, #tpu.memory_space<any>>
    %440 = tpu.memref_squeeze %439 : memref<1x16x128xf32, #tpu.memory_space<any>> -> memref<16x128xf32, #tpu.memory_space<any>>
    %441 = tpu.memref_slice %arg8[%c5_i32_375, %c0_i32_376] : memref<8x4x!tpu.dma_semaphore, #tpu.memory_space<semaphore_mem>> -> memref<1x1x!tpu.dma_semaphore, #tpu.memory_space<semaphore_mem>>
    %442 = tpu.memref_squeeze %441 : memref<1x1x!tpu.dma_semaphore, #tpu.memory_space<semaphore_mem>> -> memref<!tpu.dma_semaphore, #tpu.memory_space<semaphore_mem>>
    tpu.wait_dma2 semaphore(%442 : memref<!tpu.dma_semaphore, #tpu.memory_space<semaphore_mem>>) src(%438 : memref<16x128xf32, #tpu.memory_space<any>>) dst(%440 : memref<16x128xf32, #tpu.memory_space<any>>)
    %c0_i32_381 = arith.constant 0 : i32
    %c0_i32_382 = arith.constant 0 : i32
    %c5_i32_383 = arith.constant 5 : i32
    %c2_i32_384 = arith.constant 2 : i32
    %c0_i32_385 = arith.constant 0 : i32
    %c0_i32_386 = arith.constant 0 : i32
    %443 = tpu.memref_slice %arg2[%c0_i32_381, %c0_i32_385, %c0_i32_386] : memref<8x16x128xf32, #tpu.memory_space<any>> -> memref<1x16x128xf32, #tpu.memory_space<any>>
    %444 = tpu.memref_squeeze %443 : memref<1x16x128xf32, #tpu.memory_space<any>> -> memref<16x128xf32, #tpu.memory_space<any>>
    %c0_i32_387 = arith.constant 0 : i32
    %c0_i32_388 = arith.constant 0 : i32
    %445 = tpu.memref_slice %arg6[%c0_i32_382, %c0_i32_387, %c0_i32_388] : memref<8x16x128xf32, #tpu.memory_space<any>> -> memref<1x16x128xf32, #tpu.memory_space<any>>
    %446 = tpu.memref_squeeze %445 : memref<1x16x128xf32, #tpu.memory_space<any>> -> memref<16x128xf32, #tpu.memory_space<any>>
    %447 = tpu.memref_slice %arg8[%c5_i32_383, %c2_i32_384] : memref<8x4x!tpu.dma_semaphore, #tpu.memory_space<semaphore_mem>> -> memref<1x1x!tpu.dma_semaphore, #tpu.memory_space<semaphore_mem>>
    %448 = tpu.memref_squeeze %447 : memref<1x1x!tpu.dma_semaphore, #tpu.memory_space<semaphore_mem>> -> memref<!tpu.dma_semaphore, #tpu.memory_space<semaphore_mem>>
    tpu.wait_dma2 semaphore(%448 : memref<!tpu.dma_semaphore, #tpu.memory_space<semaphore_mem>>) src(%444 : memref<16x128xf32, #tpu.memory_space<any>>) dst(%446 : memref<16x128xf32, #tpu.memory_space<any>>)
    %c0_i32_389 = arith.constant 0 : i32
    %c0_i32_390 = arith.constant 0 : i32
    %c6_i32_391 = arith.constant 6 : i32
    %c0_i32_392 = arith.constant 0 : i32
    %c0_i32_393 = arith.constant 0 : i32
    %c0_i32_394 = arith.constant 0 : i32
    %449 = tpu.memref_slice %arg2[%c0_i32_389, %c0_i32_393, %c0_i32_394] : memref<8x16x128xf32, #tpu.memory_space<any>> -> memref<1x16x128xf32, #tpu.memory_space<any>>
    %450 = tpu.memref_squeeze %449 : memref<1x16x128xf32, #tpu.memory_space<any>> -> memref<16x128xf32, #tpu.memory_space<any>>
    %c0_i32_395 = arith.constant 0 : i32
    %c0_i32_396 = arith.constant 0 : i32
    %451 = tpu.memref_slice %arg4[%c0_i32_390, %c0_i32_395, %c0_i32_396] : memref<8x16x128xf32, #tpu.memory_space<any>> -> memref<1x16x128xf32, #tpu.memory_space<any>>
    %452 = tpu.memref_squeeze %451 : memref<1x16x128xf32, #tpu.memory_space<any>> -> memref<16x128xf32, #tpu.memory_space<any>>
    %453 = tpu.memref_slice %arg8[%c6_i32_391, %c0_i32_392] : memref<8x4x!tpu.dma_semaphore, #tpu.memory_space<semaphore_mem>> -> memref<1x1x!tpu.dma_semaphore, #tpu.memory_space<semaphore_mem>>
    %454 = tpu.memref_squeeze %453 : memref<1x1x!tpu.dma_semaphore, #tpu.memory_space<semaphore_mem>> -> memref<!tpu.dma_semaphore, #tpu.memory_space<semaphore_mem>>
    tpu.wait_dma2 semaphore(%454 : memref<!tpu.dma_semaphore, #tpu.memory_space<semaphore_mem>>) src(%450 : memref<16x128xf32, #tpu.memory_space<any>>) dst(%452 : memref<16x128xf32, #tpu.memory_space<any>>)
    %c0_i32_397 = arith.constant 0 : i32
    %c0_i32_398 = arith.constant 0 : i32
    %c6_i32_399 = arith.constant 6 : i32
    %c2_i32_400 = arith.constant 2 : i32
    %c0_i32_401 = arith.constant 0 : i32
    %c0_i32_402 = arith.constant 0 : i32
    %455 = tpu.memref_slice %arg2[%c0_i32_397, %c0_i32_401, %c0_i32_402] : memref<8x16x128xf32, #tpu.memory_space<any>> -> memref<1x16x128xf32, #tpu.memory_space<any>>
    %456 = tpu.memref_squeeze %455 : memref<1x16x128xf32, #tpu.memory_space<any>> -> memref<16x128xf32, #tpu.memory_space<any>>
    %c0_i32_403 = arith.constant 0 : i32
    %c0_i32_404 = arith.constant 0 : i32
    %457 = tpu.memref_slice %arg6[%c0_i32_398, %c0_i32_403, %c0_i32_404] : memref<8x16x128xf32, #tpu.memory_space<any>> -> memref<1x16x128xf32, #tpu.memory_space<any>>
    %458 = tpu.memref_squeeze %457 : memref<1x16x128xf32, #tpu.memory_space<any>> -> memref<16x128xf32, #tpu.memory_space<any>>
    %459 = tpu.memref_slice %arg8[%c6_i32_399, %c2_i32_400] : memref<8x4x!tpu.dma_semaphore, #tpu.memory_space<semaphore_mem>> -> memref<1x1x!tpu.dma_semaphore, #tpu.memory_space<semaphore_mem>>
    %460 = tpu.memref_squeeze %459 : memref<1x1x!tpu.dma_semaphore, #tpu.memory_space<semaphore_mem>> -> memref<!tpu.dma_semaphore, #tpu.memory_space<semaphore_mem>>
    tpu.wait_dma2 semaphore(%460 : memref<!tpu.dma_semaphore, #tpu.memory_space<semaphore_mem>>) src(%456 : memref<16x128xf32, #tpu.memory_space<any>>) dst(%458 : memref<16x128xf32, #tpu.memory_space<any>>)
    %c0_i32_405 = arith.constant 0 : i32
    %c0_i32_406 = arith.constant 0 : i32
    %c7_i32_407 = arith.constant 7 : i32
    %c0_i32_408 = arith.constant 0 : i32
    %c0_i32_409 = arith.constant 0 : i32
    %c0_i32_410 = arith.constant 0 : i32
    %461 = tpu.memref_slice %arg2[%c0_i32_405, %c0_i32_409, %c0_i32_410] : memref<8x16x128xf32, #tpu.memory_space<any>> -> memref<1x16x128xf32, #tpu.memory_space<any>>
    %462 = tpu.memref_squeeze %461 : memref<1x16x128xf32, #tpu.memory_space<any>> -> memref<16x128xf32, #tpu.memory_space<any>>
    %c0_i32_411 = arith.constant 0 : i32
    %c0_i32_412 = arith.constant 0 : i32
    %463 = tpu.memref_slice %arg4[%c0_i32_406, %c0_i32_411, %c0_i32_412] : memref<8x16x128xf32, #tpu.memory_space<any>> -> memref<1x16x128xf32, #tpu.memory_space<any>>
    %464 = tpu.memref_squeeze %463 : memref<1x16x128xf32, #tpu.memory_space<any>> -> memref<16x128xf32, #tpu.memory_space<any>>
    %465 = tpu.memref_slice %arg8[%c7_i32_407, %c0_i32_408] : memref<8x4x!tpu.dma_semaphore, #tpu.memory_space<semaphore_mem>> -> memref<1x1x!tpu.dma_semaphore, #tpu.memory_space<semaphore_mem>>
    %466 = tpu.memref_squeeze %465 : memref<1x1x!tpu.dma_semaphore, #tpu.memory_space<semaphore_mem>> -> memref<!tpu.dma_semaphore, #tpu.memory_space<semaphore_mem>>
    tpu.wait_dma2 semaphore(%466 : memref<!tpu.dma_semaphore, #tpu.memory_space<semaphore_mem>>) src(%462 : memref<16x128xf32, #tpu.memory_space<any>>) dst(%464 : memref<16x128xf32, #tpu.memory_space<any>>)
    %c0_i32_413 = arith.constant 0 : i32
    %c0_i32_414 = arith.constant 0 : i32
    %c7_i32_415 = arith.constant 7 : i32
    %c2_i32_416 = arith.constant 2 : i32
    %c0_i32_417 = arith.constant 0 : i32
    %c0_i32_418 = arith.constant 0 : i32
    %467 = tpu.memref_slice %arg2[%c0_i32_413, %c0_i32_417, %c0_i32_418] : memref<8x16x128xf32, #tpu.memory_space<any>> -> memref<1x16x128xf32, #tpu.memory_space<any>>
    %468 = tpu.memref_squeeze %467 : memref<1x16x128xf32, #tpu.memory_space<any>> -> memref<16x128xf32, #tpu.memory_space<any>>
    %c0_i32_419 = arith.constant 0 : i32
    %c0_i32_420 = arith.constant 0 : i32
    %469 = tpu.memref_slice %arg6[%c0_i32_414, %c0_i32_419, %c0_i32_420] : memref<8x16x128xf32, #tpu.memory_space<any>> -> memref<1x16x128xf32, #tpu.memory_space<any>>
    %470 = tpu.memref_squeeze %469 : memref<1x16x128xf32, #tpu.memory_space<any>> -> memref<16x128xf32, #tpu.memory_space<any>>
    %471 = tpu.memref_slice %arg8[%c7_i32_415, %c2_i32_416] : memref<8x4x!tpu.dma_semaphore, #tpu.memory_space<semaphore_mem>> -> memref<1x1x!tpu.dma_semaphore, #tpu.memory_space<semaphore_mem>>
    %472 = tpu.memref_squeeze %471 : memref<1x1x!tpu.dma_semaphore, #tpu.memory_space<semaphore_mem>> -> memref<!tpu.dma_semaphore, #tpu.memory_space<semaphore_mem>>
    tpu.wait_dma2 semaphore(%472 : memref<!tpu.dma_semaphore, #tpu.memory_space<semaphore_mem>>) src(%468 : memref<16x128xf32, #tpu.memory_space<any>>) dst(%470 : memref<16x128xf32, #tpu.memory_space<any>>)
    %c0_i32_421 = arith.constant 0 : i32
    %473 = arith.cmpi ne, %124, %c0_i32_421 : i32
    %474 = arith.extui %473 : i1 to i32
    %c0_i32_422 = arith.constant 0 : i32
    %475 = arith.cmpi ne, %474, %c0_i32_422 : i32
    scf.if %475 {
      %c0_i32_437 = arith.constant 0 : i32
      %c0_i32_438 = arith.constant 0 : i32
      %c0_i32_439 = arith.constant 0 : i32
      %c3_i32_440 = arith.constant 3 : i32
      %c0_i32_441 = arith.constant 0 : i32
      %c0_i32_442 = arith.constant 0 : i32
      %497 = tpu.memref_slice %arg2[%c0_i32_437, %c0_i32_441, %c0_i32_442] : memref<8x16x128xf32, #tpu.memory_space<any>> -> memref<1x16x128xf32, #tpu.memory_space<any>>
      %498 = tpu.memref_squeeze %497 : memref<1x16x128xf32, #tpu.memory_space<any>> -> memref<16x128xf32, #tpu.memory_space<any>>
      %c0_i32_443 = arith.constant 0 : i32
      %c0_i32_444 = arith.constant 0 : i32
      %499 = tpu.memref_slice %arg7[%c0_i32_438, %c0_i32_443, %c0_i32_444] : memref<8x16x128xf32, #tpu.memory_space<any>> -> memref<1x16x128xf32, #tpu.memory_space<any>>
      %500 = tpu.memref_squeeze %499 : memref<1x16x128xf32, #tpu.memory_space<any>> -> memref<16x128xf32, #tpu.memory_space<any>>
      %501 = tpu.memref_slice %arg8[%c0_i32_439, %c3_i32_440] : memref<8x4x!tpu.dma_semaphore, #tpu.memory_space<semaphore_mem>> -> memref<1x1x!tpu.dma_semaphore, #tpu.memory_space<semaphore_mem>>
      %502 = tpu.memref_squeeze %501 : memref<1x1x!tpu.dma_semaphore, #tpu.memory_space<semaphore_mem>> -> memref<!tpu.dma_semaphore, #tpu.memory_space<semaphore_mem>>
      tpu.wait_dma2 semaphore(%502 : memref<!tpu.dma_semaphore, #tpu.memory_space<semaphore_mem>>) src(%498 : memref<16x128xf32, #tpu.memory_space<any>>) dst(%500 : memref<16x128xf32, #tpu.memory_space<any>>)
    } else {
    }
    %c0_i32_423 = arith.constant 0 : i32
    %476 = arith.cmpi ne, %128, %c0_i32_423 : i32
    %477 = arith.extui %476 : i1 to i32
    %c0_i32_424 = arith.constant 0 : i32
    %478 = arith.cmpi ne, %477, %c0_i32_424 : i32
    scf.if %478 {
      %c0_i32_437 = arith.constant 0 : i32
      %c0_i32_438 = arith.constant 0 : i32
      %c1_i32_439 = arith.constant 1 : i32
      %c3_i32_440 = arith.constant 3 : i32
      %c0_i32_441 = arith.constant 0 : i32
      %c0_i32_442 = arith.constant 0 : i32
      %497 = tpu.memref_slice %arg2[%c0_i32_437, %c0_i32_441, %c0_i32_442] : memref<8x16x128xf32, #tpu.memory_space<any>> -> memref<1x16x128xf32, #tpu.memory_space<any>>
      %498 = tpu.memref_squeeze %497 : memref<1x16x128xf32, #tpu.memory_space<any>> -> memref<16x128xf32, #tpu.memory_space<any>>
      %c0_i32_443 = arith.constant 0 : i32
      %c0_i32_444 = arith.constant 0 : i32
      %499 = tpu.memref_slice %arg7[%c0_i32_438, %c0_i32_443, %c0_i32_444] : memref<8x16x128xf32, #tpu.memory_space<any>> -> memref<1x16x128xf32, #tpu.memory_space<any>>
      %500 = tpu.memref_squeeze %499 : memref<1x16x128xf32, #tpu.memory_space<any>> -> memref<16x128xf32, #tpu.memory_space<any>>
      %501 = tpu.memref_slice %arg8[%c1_i32_439, %c3_i32_440] : memref<8x4x!tpu.dma_semaphore, #tpu.memory_space<semaphore_mem>> -> memref<1x1x!tpu.dma_semaphore, #tpu.memory_space<semaphore_mem>>
      %502 = tpu.memref_squeeze %501 : memref<1x1x!tpu.dma_semaphore, #tpu.memory_space<semaphore_mem>> -> memref<!tpu.dma_semaphore, #tpu.memory_space<semaphore_mem>>
      tpu.wait_dma2 semaphore(%502 : memref<!tpu.dma_semaphore, #tpu.memory_space<semaphore_mem>>) src(%498 : memref<16x128xf32, #tpu.memory_space<any>>) dst(%500 : memref<16x128xf32, #tpu.memory_space<any>>)
    } else {
    }
    %c0_i32_425 = arith.constant 0 : i32
    %479 = arith.cmpi ne, %132, %c0_i32_425 : i32
    %480 = arith.extui %479 : i1 to i32
    %c0_i32_426 = arith.constant 0 : i32
    %481 = arith.cmpi ne, %480, %c0_i32_426 : i32
    scf.if %481 {
      %c0_i32_437 = arith.constant 0 : i32
      %c0_i32_438 = arith.constant 0 : i32
      %c2_i32_439 = arith.constant 2 : i32
      %c3_i32_440 = arith.constant 3 : i32
      %c0_i32_441 = arith.constant 0 : i32
      %c0_i32_442 = arith.constant 0 : i32
      %497 = tpu.memref_slice %arg2[%c0_i32_437, %c0_i32_441, %c0_i32_442] : memref<8x16x128xf32, #tpu.memory_space<any>> -> memref<1x16x128xf32, #tpu.memory_space<any>>
      %498 = tpu.memref_squeeze %497 : memref<1x16x128xf32, #tpu.memory_space<any>> -> memref<16x128xf32, #tpu.memory_space<any>>
      %c0_i32_443 = arith.constant 0 : i32
      %c0_i32_444 = arith.constant 0 : i32
      %499 = tpu.memref_slice %arg7[%c0_i32_438, %c0_i32_443, %c0_i32_444] : memref<8x16x128xf32, #tpu.memory_space<any>> -> memref<1x16x128xf32, #tpu.memory_space<any>>
      %500 = tpu.memref_squeeze %499 : memref<1x16x128xf32, #tpu.memory_space<any>> -> memref<16x128xf32, #tpu.memory_space<any>>
      %501 = tpu.memref_slice %arg8[%c2_i32_439, %c3_i32_440] : memref<8x4x!tpu.dma_semaphore, #tpu.memory_space<semaphore_mem>> -> memref<1x1x!tpu.dma_semaphore, #tpu.memory_space<semaphore_mem>>
      %502 = tpu.memref_squeeze %501 : memref<1x1x!tpu.dma_semaphore, #tpu.memory_space<semaphore_mem>> -> memref<!tpu.dma_semaphore, #tpu.memory_space<semaphore_mem>>
      tpu.wait_dma2 semaphore(%502 : memref<!tpu.dma_semaphore, #tpu.memory_space<semaphore_mem>>) src(%498 : memref<16x128xf32, #tpu.memory_space<any>>) dst(%500 : memref<16x128xf32, #tpu.memory_space<any>>)
    } else {
    }
    %c0_i32_427 = arith.constant 0 : i32
    %482 = arith.cmpi ne, %136, %c0_i32_427 : i32
    %483 = arith.extui %482 : i1 to i32
    %c0_i32_428 = arith.constant 0 : i32
    %484 = arith.cmpi ne, %483, %c0_i32_428 : i32
    scf.if %484 {
      %c0_i32_437 = arith.constant 0 : i32
      %c0_i32_438 = arith.constant 0 : i32
      %c3_i32_439 = arith.constant 3 : i32
      %c3_i32_440 = arith.constant 3 : i32
      %c0_i32_441 = arith.constant 0 : i32
      %c0_i32_442 = arith.constant 0 : i32
      %497 = tpu.memref_slice %arg2[%c0_i32_437, %c0_i32_441, %c0_i32_442] : memref<8x16x128xf32, #tpu.memory_space<any>> -> memref<1x16x128xf32, #tpu.memory_space<any>>
      %498 = tpu.memref_squeeze %497 : memref<1x16x128xf32, #tpu.memory_space<any>> -> memref<16x128xf32, #tpu.memory_space<any>>
      %c0_i32_443 = arith.constant 0 : i32
      %c0_i32_444 = arith.constant 0 : i32
      %499 = tpu.memref_slice %arg7[%c0_i32_438, %c0_i32_443, %c0_i32_444] : memref<8x16x128xf32, #tpu.memory_space<any>> -> memref<1x16x128xf32, #tpu.memory_space<any>>
      %500 = tpu.memref_squeeze %499 : memref<1x16x128xf32, #tpu.memory_space<any>> -> memref<16x128xf32, #tpu.memory_space<any>>
      %501 = tpu.memref_slice %arg8[%c3_i32_439, %c3_i32_440] : memref<8x4x!tpu.dma_semaphore, #tpu.memory_space<semaphore_mem>> -> memref<1x1x!tpu.dma_semaphore, #tpu.memory_space<semaphore_mem>>
      %502 = tpu.memref_squeeze %501 : memref<1x1x!tpu.dma_semaphore, #tpu.memory_space<semaphore_mem>> -> memref<!tpu.dma_semaphore, #tpu.memory_space<semaphore_mem>>
      tpu.wait_dma2 semaphore(%502 : memref<!tpu.dma_semaphore, #tpu.memory_space<semaphore_mem>>) src(%498 : memref<16x128xf32, #tpu.memory_space<any>>) dst(%500 : memref<16x128xf32, #tpu.memory_space<any>>)
    } else {
    }
    %c0_i32_429 = arith.constant 0 : i32
    %485 = arith.cmpi ne, %140, %c0_i32_429 : i32
    %486 = arith.extui %485 : i1 to i32
    %c0_i32_430 = arith.constant 0 : i32
    %487 = arith.cmpi ne, %486, %c0_i32_430 : i32
    scf.if %487 {
      %c0_i32_437 = arith.constant 0 : i32
      %c0_i32_438 = arith.constant 0 : i32
      %c4_i32_439 = arith.constant 4 : i32
      %c3_i32_440 = arith.constant 3 : i32
      %c0_i32_441 = arith.constant 0 : i32
      %c0_i32_442 = arith.constant 0 : i32
      %497 = tpu.memref_slice %arg2[%c0_i32_437, %c0_i32_441, %c0_i32_442] : memref<8x16x128xf32, #tpu.memory_space<any>> -> memref<1x16x128xf32, #tpu.memory_space<any>>
      %498 = tpu.memref_squeeze %497 : memref<1x16x128xf32, #tpu.memory_space<any>> -> memref<16x128xf32, #tpu.memory_space<any>>
      %c0_i32_443 = arith.constant 0 : i32
      %c0_i32_444 = arith.constant 0 : i32
      %499 = tpu.memref_slice %arg7[%c0_i32_438, %c0_i32_443, %c0_i32_444] : memref<8x16x128xf32, #tpu.memory_space<any>> -> memref<1x16x128xf32, #tpu.memory_space<any>>
      %500 = tpu.memref_squeeze %499 : memref<1x16x128xf32, #tpu.memory_space<any>> -> memref<16x128xf32, #tpu.memory_space<any>>
      %501 = tpu.memref_slice %arg8[%c4_i32_439, %c3_i32_440] : memref<8x4x!tpu.dma_semaphore, #tpu.memory_space<semaphore_mem>> -> memref<1x1x!tpu.dma_semaphore, #tpu.memory_space<semaphore_mem>>
      %502 = tpu.memref_squeeze %501 : memref<1x1x!tpu.dma_semaphore, #tpu.memory_space<semaphore_mem>> -> memref<!tpu.dma_semaphore, #tpu.memory_space<semaphore_mem>>
      tpu.wait_dma2 semaphore(%502 : memref<!tpu.dma_semaphore, #tpu.memory_space<semaphore_mem>>) src(%498 : memref<16x128xf32, #tpu.memory_space<any>>) dst(%500 : memref<16x128xf32, #tpu.memory_space<any>>)
    } else {
    }
    %c0_i32_431 = arith.constant 0 : i32
    %488 = arith.cmpi ne, %144, %c0_i32_431 : i32
    %489 = arith.extui %488 : i1 to i32
    %c0_i32_432 = arith.constant 0 : i32
    %490 = arith.cmpi ne, %489, %c0_i32_432 : i32
    scf.if %490 {
      %c0_i32_437 = arith.constant 0 : i32
      %c0_i32_438 = arith.constant 0 : i32
      %c5_i32_439 = arith.constant 5 : i32
      %c3_i32_440 = arith.constant 3 : i32
      %c0_i32_441 = arith.constant 0 : i32
      %c0_i32_442 = arith.constant 0 : i32
      %497 = tpu.memref_slice %arg2[%c0_i32_437, %c0_i32_441, %c0_i32_442] : memref<8x16x128xf32, #tpu.memory_space<any>> -> memref<1x16x128xf32, #tpu.memory_space<any>>
      %498 = tpu.memref_squeeze %497 : memref<1x16x128xf32, #tpu.memory_space<any>> -> memref<16x128xf32, #tpu.memory_space<any>>
      %c0_i32_443 = arith.constant 0 : i32
      %c0_i32_444 = arith.constant 0 : i32
      %499 = tpu.memref_slice %arg7[%c0_i32_438, %c0_i32_443, %c0_i32_444] : memref<8x16x128xf32, #tpu.memory_space<any>> -> memref<1x16x128xf32, #tpu.memory_space<any>>
      %500 = tpu.memref_squeeze %499 : memref<1x16x128xf32, #tpu.memory_space<any>> -> memref<16x128xf32, #tpu.memory_space<any>>
      %501 = tpu.memref_slice %arg8[%c5_i32_439, %c3_i32_440] : memref<8x4x!tpu.dma_semaphore, #tpu.memory_space<semaphore_mem>> -> memref<1x1x!tpu.dma_semaphore, #tpu.memory_space<semaphore_mem>>
      %502 = tpu.memref_squeeze %501 : memref<1x1x!tpu.dma_semaphore, #tpu.memory_space<semaphore_mem>> -> memref<!tpu.dma_semaphore, #tpu.memory_space<semaphore_mem>>
      tpu.wait_dma2 semaphore(%502 : memref<!tpu.dma_semaphore, #tpu.memory_space<semaphore_mem>>) src(%498 : memref<16x128xf32, #tpu.memory_space<any>>) dst(%500 : memref<16x128xf32, #tpu.memory_space<any>>)
    } else {
    }
    %c0_i32_433 = arith.constant 0 : i32
    %491 = arith.cmpi ne, %148, %c0_i32_433 : i32
    %492 = arith.extui %491 : i1 to i32
    %c0_i32_434 = arith.constant 0 : i32
    %493 = arith.cmpi ne, %492, %c0_i32_434 : i32
    scf.if %493 {
      %c0_i32_437 = arith.constant 0 : i32
      %c0_i32_438 = arith.constant 0 : i32
      %c6_i32_439 = arith.constant 6 : i32
      %c3_i32_440 = arith.constant 3 : i32
      %c0_i32_441 = arith.constant 0 : i32
      %c0_i32_442 = arith.constant 0 : i32
      %497 = tpu.memref_slice %arg2[%c0_i32_437, %c0_i32_441, %c0_i32_442] : memref<8x16x128xf32, #tpu.memory_space<any>> -> memref<1x16x128xf32, #tpu.memory_space<any>>
      %498 = tpu.memref_squeeze %497 : memref<1x16x128xf32, #tpu.memory_space<any>> -> memref<16x128xf32, #tpu.memory_space<any>>
      %c0_i32_443 = arith.constant 0 : i32
      %c0_i32_444 = arith.constant 0 : i32
      %499 = tpu.memref_slice %arg7[%c0_i32_438, %c0_i32_443, %c0_i32_444] : memref<8x16x128xf32, #tpu.memory_space<any>> -> memref<1x16x128xf32, #tpu.memory_space<any>>
      %500 = tpu.memref_squeeze %499 : memref<1x16x128xf32, #tpu.memory_space<any>> -> memref<16x128xf32, #tpu.memory_space<any>>
      %501 = tpu.memref_slice %arg8[%c6_i32_439, %c3_i32_440] : memref<8x4x!tpu.dma_semaphore, #tpu.memory_space<semaphore_mem>> -> memref<1x1x!tpu.dma_semaphore, #tpu.memory_space<semaphore_mem>>
      %502 = tpu.memref_squeeze %501 : memref<1x1x!tpu.dma_semaphore, #tpu.memory_space<semaphore_mem>> -> memref<!tpu.dma_semaphore, #tpu.memory_space<semaphore_mem>>
      tpu.wait_dma2 semaphore(%502 : memref<!tpu.dma_semaphore, #tpu.memory_space<semaphore_mem>>) src(%498 : memref<16x128xf32, #tpu.memory_space<any>>) dst(%500 : memref<16x128xf32, #tpu.memory_space<any>>)
    } else {
    }
    %c0_i32_435 = arith.constant 0 : i32
    %494 = arith.cmpi ne, %152, %c0_i32_435 : i32
    %495 = arith.extui %494 : i1 to i32
    %c0_i32_436 = arith.constant 0 : i32
    %496 = arith.cmpi ne, %495, %c0_i32_436 : i32
    scf.if %496 {
      %c0_i32_437 = arith.constant 0 : i32
      %c0_i32_438 = arith.constant 0 : i32
      %c7_i32_439 = arith.constant 7 : i32
      %c3_i32_440 = arith.constant 3 : i32
      %c0_i32_441 = arith.constant 0 : i32
      %c0_i32_442 = arith.constant 0 : i32
      %497 = tpu.memref_slice %arg2[%c0_i32_437, %c0_i32_441, %c0_i32_442] : memref<8x16x128xf32, #tpu.memory_space<any>> -> memref<1x16x128xf32, #tpu.memory_space<any>>
      %498 = tpu.memref_squeeze %497 : memref<1x16x128xf32, #tpu.memory_space<any>> -> memref<16x128xf32, #tpu.memory_space<any>>
      %c0_i32_443 = arith.constant 0 : i32
      %c0_i32_444 = arith.constant 0 : i32
      %499 = tpu.memref_slice %arg7[%c0_i32_438, %c0_i32_443, %c0_i32_444] : memref<8x16x128xf32, #tpu.memory_space<any>> -> memref<1x16x128xf32, #tpu.memory_space<any>>
      %500 = tpu.memref_squeeze %499 : memref<1x16x128xf32, #tpu.memory_space<any>> -> memref<16x128xf32, #tpu.memory_space<any>>
      %501 = tpu.memref_slice %arg8[%c7_i32_439, %c3_i32_440] : memref<8x4x!tpu.dma_semaphore, #tpu.memory_space<semaphore_mem>> -> memref<1x1x!tpu.dma_semaphore, #tpu.memory_space<semaphore_mem>>
      %502 = tpu.memref_squeeze %501 : memref<1x1x!tpu.dma_semaphore, #tpu.memory_space<semaphore_mem>> -> memref<!tpu.dma_semaphore, #tpu.memory_space<semaphore_mem>>
      tpu.wait_dma2 semaphore(%502 : memref<!tpu.dma_semaphore, #tpu.memory_space<semaphore_mem>>) src(%498 : memref<16x128xf32, #tpu.memory_space<any>>) dst(%500 : memref<16x128xf32, #tpu.memory_space<any>>)
    } else {
    }
    return
  }
}

</mosaic_0001>

<bundles_post_ra>
// kernel: pair_sample_forward.1
= control target key start
LH: loop header
LB: loop body
LE: loop exit
PB: predicated region body
PF: predicated region fallthrough
CT: control target
= control target key end

     0   :  { %s3082_s0 = inlined_call_operand.vmem [shape: s32[40], index: 0, kind: input, shape index: {}]   ;;  %s3083_s1 = inlined_call_operand.vmem [shape: f32[8,16,128], index: 1, kind: input, shape index: {}]   ;;  %s3084_s2 = inlined_call_operand.vmem [shape: f32[8,16,128], index: 2, kind: input, shape index: {}, may-alias: {2,6}]   ;;  %s3085_s3 = inlined_call_operand.vmem [shape: f32[8,16,128], index: 3, kind: output, shape index: {0}]   ;;  %s3086_s4 = inlined_call_operand.vmem [shape: f32[8,16,128], index: 4, kind: output, shape index: {1}]   ;;  %s3087_s5 = inlined_call_operand.vmem [shape: f32[8,16,128], index: 5, kind: output, shape index: {2}]   ;;  %s3088_s6 = inlined_call_operand.vmem [shape: f32[8,16,128], index: 6, kind: output, shape index: {3}, may-alias: {2,6}]  }
   0x1   :  { %3089 = sst [smem:[#allocation95_spill]] %s3088_s6  ;;  %s12_s23 = sshll.u32 %s3082_s0, 4  ;;  %s13_s23 = int_to_ptr.vmem [resolvable:$true] %s12_s23 }
   0x2   :  { %s2533_s24 = scalar_lea.vmem %s13_s23, 16  ;;  %p2538_p1 = scmp.lt.s32.totalorder %s13_s23, %s13_s23 }
   0x3   :  { %p2534_p0 = scmp.ne.s32.totalorder %s13_s23, %s2533_s24  ;;  %p2539_p2 = scmp.lt.s32.totalorder %s2533_s24, %s2533_s24 }
   0x5   :  { %p2540_p3 = por %p2539_p2, %p2538_p1 }
   0x7   :  { %p2541_p4 = pnand %p2540_p3, %p2534_p0 }
   0x9   :  { %2544 = shalt.err (!%p2541_p4)  }
   0xa   :  { %s2627_s25 = smov [#allocation4]  }
   0xb   :  { %15 = dma.vmem_to_smem %s13_s23, 16, %s2627_s25, [#allocation3] }
   0xc   :  { %2545 = dma.done.wait [#allocation3], 16 }
   0xd   :  { %2546 = vsyncadd [#allocation3], 4294967280 }
   0xe   :  { %17 = sfence }
   0xf   :  { %s2666_s26 = sld [smem:[#allocation4]]  ;;  %s2668_s27 = sld [smem:[#allocation4 + $0x1]] }
  0x10   :  { %s2670_s28 = sld [smem:[#allocation4 + $0x2]]  ;;  %s2672_s0 = sld [smem:[#allocation4 + $0x3]] }
  0x11   :  { %s2674_s29 = sld [smem:[#allocation4 + $0x4]]  ;;  %s2676_s30 = sld [smem:[#allocation4 + $0x5]] }
  0x12   :  { %s2678_s7 = sld [smem:[#allocation4 + $0x6]]  ;;  %s2680_s8 = sld [smem:[#allocation4 + $0x7]] }
  0x13   :  { %s2682_s9 = sld [smem:[#allocation4 + $0x8]]  ;;  %s2684_s10 = sld [smem:[#allocation4 + $0x9]] }
  0x14   :  { %s2686_s11 = sld [smem:[#allocation4 + $0xa]]  ;;  %s2688_s12 = sld [smem:[#allocation4 + $0xb]] }
  0x15   :  { %s2690_s13 = sld [smem:[#allocation4 + $0xc]]  ;;  %s2692_s14 = sld [smem:[#allocation4 + $0xd]] }
  0x16   :  { %s2694_s15 = sld [smem:[#allocation4 + $0xe]]  ;;  %s2696_s16 = sld [smem:[#allocation4 + $0xf]] }
  0x17   :  { %3090 = sst [smem:[#allocation70_spill]] %s2676_s30  ;;  %s2700_s18 = sld [smem:[#allocation4 + $0x11]] }
  0x18   :  { %3091 = sst [smem:[#allocation71_spill]] %s2678_s7  ;;  %s2698_s17 = sld [smem:[#allocation4 + $0x10]] }
  0x19   :  { %3092 = sst [smem:[#allocation72_spill]] %s2680_s8  ;;  %s2704_s20 = sld [smem:[#allocation4 + $0x13]] }
  0x1a   :  { %s2702_s19 = sld [smem:[#allocation4 + $0x12]]  ;;  %s2706_s21 = sld [smem:[#allocation4 + $0x14]] }
  0x1b   :  { %3093 = sst [smem:[#allocation73_spill]] %s2692_s14  ;;  %s2708_s22 = sld [smem:[#allocation4 + $0x15]] }
  0x1c   :  { %3094 = sst [smem:[#allocation74_spill]] %s2694_s15  ;;  %s2710_s23 = sld [smem:[#allocation4 + $0x16]] }
  0x1d   :  { %3095 = sst [smem:[#allocation75_spill]] %s2696_s16  ;;  %s2712_s24 = sld [smem:[#allocation4 + $0x17]] }
  0x1e   :  { %s2714_s25 = sld [smem:[#allocation4 + $0x18]]  ;;  %s2716_s6 = sld [smem:[#allocation4 + $0x19]] }
  0x1f   :  { %s2718_s16 = sld [smem:[#allocation4 + $0x1a]]  ;;  %s2720_s8 = sld [smem:[#allocation4 + $0x1b]] }
  0x20   :  { %3096 = sst [smem:[#allocation76_spill]] %s2706_s21  ;;  %s2722_s15 = sld [smem:[#allocation4 + $0x1c]] }
  0x21   :  { %3097 = sst [smem:[#allocation77_spill]] %s2708_s22  ;;  %s2724_s7 = sld [smem:[#allocation4 + $0x1d]] }
  0x22   :  { %3098 = sst [smem:[#allocation78_spill]] %s2710_s23  ;;  %s2726_s14 = sld [smem:[#allocation4 + $0x1e]] }
  0x23   :  { %3099 = sst [smem:[#allocation79_spill]] %s2712_s24  ;;  %s2728_s22 = sld [smem:[#allocation4 + $0x1f]] }
  0x24   :  { %3100 = sst [smem:[#allocation80_spill]] %s2714_s25  ;;  %s2730_s23 = sld [smem:[#allocation4 + $0x20]] }
  0x25   :  { %3101 = sst [smem:[#allocation81_spill]] %s2716_s6  ;;  %s2732_s24 = sld [smem:[#allocation4 + $0x21]] }
  0x26   :  { %3102 = sst [smem:[#allocation82_spill]] %s2718_s16  ;;  %s2734_s25 = sld [smem:[#allocation4 + $0x22]] }
  0x27   :  { %3103 = sst [smem:[#allocation83_spill]] %s2720_s8  ;;  %s2736_s30 = sld [smem:[#allocation4 + $0x23]] }
  0x28   :  { %3104 = sst [smem:[#allocation84_spill]] %s2722_s15  ;;  %s2738_s6 = sld [smem:[#allocation4 + $0x24]] }
  0x29   :  { %3105 = sst [smem:[#allocation85_spill]] %s2724_s7  ;;  %s2740_s16 = sld [smem:[#allocation4 + $0x25]] }
  0x2a   :  { %3106 = sst [smem:[#allocation86_spill]] %s2726_s14  ;;  %s2742_s8 = sld [smem:[#allocation4 + $0x26]] }
  0x2b   :  { %3107 = sst [smem:[#allocation87_spill]] %s2728_s22  ;;  %s2744_s15 = sld [smem:[#allocation4 + $0x27]] }
  0x2c   :  { %3108 = sst [smem:[#allocation88_spill]] %s2732_s24  ;;  %s2365_s7 = sshll.u32 %s2666_s26, 4 }
  0x2d   :  { %3109 = sst [smem:[#allocation89_spill]] %s2734_s25  ;;  %s2750_s22 = scalar_lea.vmem %s3083_s1, %s2365_s7 }
  0x2e   :  { %3110 = sst [smem:[#allocation90_spill]] %s2736_s30  ;;  %v134_v0 = vld [vmem:[%s2750_s22] sm:$0xff]  ;;  %v136_v1 = vld [vmem:[%s2750_s22 + $0x8] sm:$0xff] }
  0x2f   :  { %3111 = sst [smem:[#allocation91_spill]] %s2738_s6  ;;  %135 = vst [vmem:[%s3085_s3] sm:$0xff] %v134_v0  ;;  %137 = vst [vmem:[%s3085_s3 + $0x8] sm:$0xff] %v136_v1 }
  0x30   :  { %3112 = sst [smem:[#allocation92_spill]] %s2740_s16 }
  0x31   :  { %3113 = sst [smem:[#allocation93_spill]] %s2742_s8 }
  0x32   :  { %3114 = sst [smem:[#allocation94_spill]] %s2744_s15 }
  0x33   :  { %145 = vsyncadd [#allocation2], 256  ;;  %s2366_s26 = sshll.u32 %s2682_s9, 4 }
  0x34   :  { %s147_s7 = scalar_lea.vmem %s3084_s2, %s2366_s26 }
  0x35   :  { %v182_v2 = vld [vmem:[%s147_s7] sm:$0xff]  ;;  %v184_v3 = vld [vmem:[%s147_s7 + $0x8] sm:$0xff] }
  0x36   :  { %183 = vst [vmem:[%s3086_s4] sm:$0xff] %v182_v2  ;;  %185 = vst [vmem:[%s3086_s4 + $0x8] sm:$0xff] %v184_v3 }
  0x37   :  { %193 = vsyncadd [#allocation2 + $0x1], 256  ;;  %s2367_s6 = sshll.u32 %s2698_s17, 4 }
  0x38   :  { %s195_s9 = scalar_lea.vmem %s3083_s1, %s2367_s6 }
  0x39   :  { %v230_v4 = vld [vmem:[%s195_s9] sm:$0xff]  ;;  %v232_v5 = vld [vmem:[%s195_s9 + $0x8] sm:$0xff] }
  0x3a   :  { %231 = vst [vmem:[%s3087_s5] sm:$0xff] %v230_v4  ;;  %233 = vst [vmem:[%s3087_s5 + $0x8] sm:$0xff] %v232_v5 }
  0x3b   :  { %241 = vsyncadd [#allocation2 + $0x2], 256  ;;  %s2368_s24 = sshll.u32 %s2668_s27, 4 }
  0x3c   :  { %s2784_s17 = scalar_lea.vmem %s3083_s1, %s2368_s24 }
  0x3d   :  { %v279_v6 = vld [vmem:[%s2784_s17] sm:$0xff]  ;;  %v281_v7 = vld [vmem:[%s2784_s17 + $0x8] sm:$0xff] }
  0x3e   :  { %2369 = vst [vmem:[%s3085_s3 + $0x10] sm:$0xff] %v279_v6  ;;  %2370 = vst [vmem:[%s3085_s3 + $0x18] sm:$0xff] %v281_v7 }
  0x3f   :  { %290 = vsyncadd [#allocation2 + $0x4], 256  ;;  %s2372_s27 = sshll.u32 %s2684_s10, 4 }
  0x40   :  { %s292_s15 = scalar_lea.vmem %s3084_s2, %s2372_s27 }
  0x41   :  { %v327_v8 = vld [vmem:[%s292_s15] sm:$0xff]  ;;  %v329_v9 = vld [vmem:[%s292_s15 + $0x8] sm:$0xff] }
  0x42   :  { %2373 = vst [vmem:[%s3086_s4 + $0x10] sm:$0xff] %v327_v8  ;;  %2374 = vst [vmem:[%s3086_s4 + $0x18] sm:$0xff] %v329_v9 }
  0x43   :  { %338 = vsyncadd [#allocation2 + $0x5], 256  ;;  %s2376_s21 = sshll.u32 %s2700_s18, 4 }
  0x44   :  { %s340_s10 = scalar_lea.vmem %s3083_s1, %s2376_s21 }
  0x45   :  { %v375_v10 = vld [vmem:[%s340_s10] sm:$0xff]  ;;  %v377_v11 = vld [vmem:[%s340_s10 + $0x8] sm:$0xff] }
  0x46   :  { %2377 = vst [vmem:[%s3087_s5 + $0x10] sm:$0xff] %v375_v10  ;;  %2378 = vst [vmem:[%s3087_s5 + $0x18] sm:$0xff] %v377_v11 }
  0x47   :  { %386 = vsyncadd [#allocation2 + $0x6], 256  ;;  %s2380_s8 = sshll.u32 %s2670_s28, 4 }
  0x48   :  { %s2818_s18 = scalar_lea.vmem %s3083_s1, %s2380_s8 }
  0x49   :  { %v424_v12 = vld [vmem:[%s2818_s18] sm:$0xff]  ;;  %v426_v13 = vld [vmem:[%s2818_s18 + $0x8] sm:$0xff] }
  0x4a   :  { %2381 = vst [vmem:[%s3085_s3 + $0x20] sm:$0xff] %v424_v12  ;;  %2382 = vst [vmem:[%s3085_s3 + $0x28] sm:$0xff] %v426_v13 }
  0x4b   :  { %435 = vsyncadd [#allocation2 + $0x8], 256  ;;  %s2384_s28 = sshll.u32 %s2686_s11, 4 }
  0x4c   :  { %s437_s10 = scalar_lea.vmem %s3084_s2, %s2384_s28 }
  0x4d   :  { %v472_v14 = vld [vmem:[%s437_s10] sm:$0xff]  ;;  %v474_v15 = vld [vmem:[%s437_s10 + $0x8] sm:$0xff] }
  0x4e   :  { %2385 = vst [vmem:[%s3086_s4 + $0x20] sm:$0xff] %v472_v14  ;;  %2386 = vst [vmem:[%s3086_s4 + $0x28] sm:$0xff] %v474_v15 }
  0x4f   :  { %483 = vsyncadd [#allocation2 + $0x9], 256  ;;  %s2388_s8 = sshll.u32 %s2702_s19, 4 }
  0x50   :  { %s485_s11 = scalar_lea.vmem %s3083_s1, %s2388_s8 }
  0x51   :  { %v520_v16 = vld [vmem:[%s485_s11] sm:$0xff]  ;;  %v522_v17 = vld [vmem:[%s485_s11 + $0x8] sm:$0xff] }
  0x52   :  { %2389 = vst [vmem:[%s3087_s5 + $0x20] sm:$0xff] %v520_v16  ;;  %2390 = vst [vmem:[%s3087_s5 + $0x28] sm:$0xff] %v522_v17 }
  0x53   :  { %531 = vsyncadd [#allocation2 + $0xa], 256  ;;  %s2392_s28 = sshll.u32 %s2672_s0, 4 }
  0x54   :  { %s2852_s19 = scalar_lea.vmem %s3083_s1, %s2392_s28 }
  0x55   :  { %v569_v18 = vld [vmem:[%s2852_s19] sm:$0xff]  ;;  %v571_v19 = vld [vmem:[%s2852_s19 + $0x8] sm:$0xff] }
  0x56   :  { %2393 = vst [vmem:[%s3085_s3 + $0x30] sm:$0xff] %v569_v18  ;;  %2394 = vst [vmem:[%s3085_s3 + $0x38] sm:$0xff] %v571_v19 }
  0x57   :  { %580 = vsyncadd [#allocation2 + $0xc], 256  ;;  %s2396_s0 = sshll.u32 %s2688_s12, 4 }
  0x58   :  { %s582_s15 = scalar_lea.vmem %s3084_s2, %s2396_s0 }
  0x59   :  { %v617_v20 = vld [vmem:[%s582_s15] sm:$0xff]  ;;  %v619_v21 = vld [vmem:[%s582_s15 + $0x8] sm:$0xff] }
  0x5a   :  { %2397 = vst [vmem:[%s3086_s4 + $0x30] sm:$0xff] %v617_v20  ;;  %2398 = vst [vmem:[%s3086_s4 + $0x38] sm:$0xff] %v619_v21 }
  0x5b   :  { %628 = vsyncadd [#allocation2 + $0xd], 256  ;;  %s2400_s14 = sshll.u32 %s2704_s20, 4 }
  0x5c   :  { %s630_s12 = scalar_lea.vmem %s3083_s1, %s2400_s14 }
  0x5d   :  { %v665_v22 = vld [vmem:[%s630_s12] sm:$0xff]  ;;  %v667_v23 = vld [vmem:[%s630_s12 + $0x8] sm:$0xff] }
  0x5e   :  { %2401 = vst [vmem:[%s3087_s5 + $0x30] sm:$0xff] %v665_v22  ;;  %2402 = vst [vmem:[%s3087_s5 + $0x38] sm:$0xff] %v667_v23 }
  0x5f   :  { %676 = vsyncadd [#allocation2 + $0xe], 256  ;;  %s2404_s25 = sshll.u32 %s2674_s29, 4 }
  0x60   :  { %s2886_s20 = scalar_lea.vmem %s3083_s1, %s2404_s25 }
  0x61   :  { %v714_v24 = vld [vmem:[%s2886_s20] sm:$0xff]  ;;  %v716_v25 = vld [vmem:[%s2886_s20 + $0x8] sm:$0xff] }
  0x62   :  { %2405 = vst [vmem:[%s3085_s3 + $0x40] sm:$0xff] %v714_v24  ;;  %2406 = vst [vmem:[%s3085_s3 + $0x48] sm:$0xff] %v716_v25 }
  0x63   :  { %725 = vsyncadd [#allocation2 + $0x10], 256  ;;  %s2408_s29 = sshll.u32 %s2690_s13, 4 }
  0x64   :  { %s727_s24 = scalar_lea.vmem %s3084_s2, %s2408_s29 }
  0x65   :  { %v762_v26 = vld [vmem:[%s727_s24] sm:$0xff]  ;;  %v764_v27 = vld [vmem:[%s727_s24 + $0x8] sm:$0xff] }
  0x66   :  { %2409 = vst [vmem:[%s3086_s4 + $0x40] sm:$0xff] %v762_v26  ;;  %2410 = vst [vmem:[%s3086_s4 + $0x48] sm:$0xff] %v764_v27 }
  0x67   :  { %773 = vsyncadd [#allocation2 + $0x11], 256  ;;  %s3115_s30 = sld [smem:[#allocation76_spill]] }
  0x6d   :  { %s2412_s6 = sshll.u32 %s3115_s30, 4 }
  0x6e   :  { %s775_s13 = scalar_lea.vmem %s3083_s1, %s2412_s6 }
  0x6f   :  { %v810_v28 = vld [vmem:[%s775_s13] sm:$0xff]  ;;  %v812_v29 = vld [vmem:[%s775_s13 + $0x8] sm:$0xff] }
  0x70   :  { %2413 = vst [vmem:[%s3087_s5 + $0x40] sm:$0xff] %v810_v28  ;;  %2414 = vst [vmem:[%s3087_s5 + $0x48] sm:$0xff] %v812_v29 }
  0x71   :  { %821 = vsyncadd [#allocation2 + $0x12], 256  ;;  %s3116_s8 = sld [smem:[#allocation70_spill]] }
  0x77   :  { %s2416_s15 = sshll.u32 %s3116_s8, 4 }
  0x78   :  { %s2920_s11 = scalar_lea.vmem %s3083_s1, %s2416_s15 }
  0x79   :  { %v859_v30 = vld [vmem:[%s2920_s11] sm:$0xff]  ;;  %v861_v31 = vld [vmem:[%s2920_s11 + $0x8] sm:$0xff] }
  0x7a   :  { %2417 = vst [vmem:[%s3085_s3 + $0x50] sm:$0xff] %v859_v30  ;;  %2418 = vst [vmem:[%s3085_s3 + $0x58] sm:$0xff] %v861_v31 }
  0x7b   :  { %870 = vsyncadd [#allocation2 + $0x14], 256  ;;  %s3117_s28 = sld [smem:[#allocation73_spill]] }
  0x81   :  { %s2420_s12 = sshll.u32 %s3117_s28, 4 }
  0x82   :  { %s872_s10 = scalar_lea.vmem %s3084_s2, %s2420_s12 }
  0x83   :  { %v907_v32 = vld [vmem:[%s872_s10] sm:$0xff]  ;;  %v909_v33 = vld [vmem:[%s872_s10 + $0x8] sm:$0xff] }
  0x84   :  { %2421 = vst [vmem:[%s3086_s4 + $0x50] sm:$0xff] %v907_v32  ;;  %2422 = vst [vmem:[%s3086_s4 + $0x58] sm:$0xff] %v909_v33 }
  0x85   :  { %918 = vsyncadd [#allocation2 + $0x15], 256  ;;  %s3118_s0 = sld [smem:[#allocation77_spill]] }
  0x8b   :  { %s2424_s9 = sshll.u32 %s3118_s0, 4 }
  0x8c   :  { %s920_s26 = scalar_lea.vmem %s3083_s1, %s2424_s9 }
  0x8d   :  { %v955_v34 = vld [vmem:[%s920_s26] sm:$0xff]  ;;  %v957_v35 = vld [vmem:[%s920_s26 + $0x8] sm:$0xff] }
  0x8e   :  { %2425 = vst [vmem:[%s3087_s5 + $0x50] sm:$0xff] %v955_v34  ;;  %2426 = vst [vmem:[%s3087_s5 + $0x58] sm:$0xff] %v957_v35 }
  0x8f   :  { %966 = vsyncadd [#allocation2 + $0x16], 256  ;;  %s3119_s21 = sld [smem:[#allocation71_spill]] }
  0x95   :  { %s2428_s28 = sshll.u32 %s3119_s21, 4 }
  0x96   :  { %s2954_s6 = scalar_lea.vmem %s3083_s1, %s2428_s28 }
  0x97   :  { %v1004_v36 = vld [vmem:[%s2954_s6] sm:$0xff]  ;;  %v1006_v37 = vld [vmem:[%s2954_s6 + $0x8] sm:$0xff] }
  0x98   :  { %2429 = vst [vmem:[%s3085_s3 + $0x60] sm:$0xff] %v1004_v36  ;;  %2430 = vst [vmem:[%s3085_s3 + $0x68] sm:$0xff] %v1006_v37 }
  0x99   :  { %1015 = vsyncadd [#allocation2 + $0x18], 256  ;;  %s3120_s27 = sld [smem:[#allocation74_spill]] }
  0x9f   :  { %s2432_s0 = sshll.u32 %s3120_s27, 4 }
  0xa0   :  { %s1017_s15 = scalar_lea.vmem %s3084_s2, %s2432_s0 }
  0xa1   :  { %v1052_v38 = vld [vmem:[%s1017_s15] sm:$0xff]  ;;  %v1054_v39 = vld [vmem:[%s1017_s15 + $0x8] sm:$0xff] }
  0xa2   :  { %2433 = vst [vmem:[%s3086_s4 + $0x60] sm:$0xff] %v1052_v38  ;;  %2434 = vst [vmem:[%s3086_s4 + $0x68] sm:$0xff] %v1054_v39 }
  0xa3   :  { %1063 = vsyncadd [#allocation2 + $0x19], 256  ;;  %s3121_s14 = sld [smem:[#allocation78_spill]] }
  0xa9   :  { %s2436_s21 = sshll.u32 %s3121_s14, 4 }
  0xaa   :  { %s1065_s30 = scalar_lea.vmem %s3083_s1, %s2436_s21 }
  0xab   :  { %v1100_v40 = vld [vmem:[%s1065_s30] sm:$0xff]  ;;  %v1102_v41 = vld [vmem:[%s1065_s30 + $0x8] sm:$0xff] }
  0xac   :  { %2437 = vst [vmem:[%s3087_s5 + $0x60] sm:$0xff] %v1100_v40  ;;  %2438 = vst [vmem:[%s3087_s5 + $0x68] sm:$0xff] %v1102_v41 }
  0xad   :  { %1111 = vsyncadd [#allocation2 + $0x1a], 256  ;;  %s3122_s27 = sld [smem:[#allocation72_spill]] }
  0xb3   :  { %s2440_s0 = sshll.u32 %s3122_s27, 4 }
  0xb4   :  { %s2988_s15 = scalar_lea.vmem %s3083_s1, %s2440_s0 }
  0xb5   :  { %v1149_v42 = vld [vmem:[%s2988_s15] sm:$0xff]  ;;  %v1151_v43 = vld [vmem:[%s2988_s15 + $0x8] sm:$0xff] }
  0xb6   :  { %2441 = vst [vmem:[%s3085_s3 + $0x70] sm:$0xff] %v1149_v42  ;;  %2442 = vst [vmem:[%s3085_s3 + $0x78] sm:$0xff] %v1151_v43 }
  0xb7   :  { %1160 = vsyncadd [#allocation2 + $0x1c], 256  ;;  %s3123_s14 = sld [smem:[#allocation75_spill]] }
  0xbd   :  { %s2444_s21 = sshll.u32 %s3123_s14, 4 }
  0xbe   :  { %s1162_s30 = scalar_lea.vmem %s3084_s2, %s2444_s21 }
  0xbf   :  { %v1197_v44 = vld [vmem:[%s1162_s30] sm:$0xff]  ;;  %v1199_v45 = vld [vmem:[%s1162_s30 + $0x8] sm:$0xff] }
  0xc0   :  { %2445 = vst [vmem:[%s3086_s4 + $0x70] sm:$0xff] %v1197_v44  ;;  %2446 = vst [vmem:[%s3086_s4 + $0x78] sm:$0xff] %v1199_v45 }
  0xc1   :  { %1208 = vsyncadd [#allocation2 + $0x1d], 256  ;;  %s3124_s27 = sld [smem:[#allocation79_spill]] }
  0xc7   :  { %s2448_s3 = sshll.u32 %s3124_s27, 4 }
  0xc8   :  { %s1210_s8 = scalar_lea.vmem %s3083_s1, %s2448_s3 }
  0xc9   :  { %v1245_v46 = vld [vmem:[%s1210_s8] sm:$0xff]  ;;  %v1247_v47 = vld [vmem:[%s1210_s8 + $0x8] sm:$0xff] }
  0xca   :  { %2449 = vst [vmem:[%s3087_s5 + $0x70] sm:$0xff] %v1245_v46  ;;  %2450 = vst [vmem:[%s3087_s5 + $0x78] sm:$0xff] %v1247_v47 }
  0xcb   :  { %1256 = vsyncadd [#allocation2 + $0x1e], 256 }
  0xcc   :  { %2547 = dma.done.wait [#allocation2 + $0x1], 256 }
  0xcd   :  { %2548 = vsyncadd [#allocation2 + $0x1], 4294967040 }
  0xce   :  { %2549 = dma.done.wait [#allocation2 + $0x5], 256 }
  0xcf   :  { %2550 = vsyncadd [#allocation2 + $0x5], 4294967040 }
  0xd0   :  { %2551 = dma.done.wait [#allocation2 + $0x9], 256 }
  0xd1   :  { %2552 = vsyncadd [#allocation2 + $0x9], 4294967040 }
  0xd2   :  { %2553 = dma.done.wait [#allocation2 + $0xd], 256 }
  0xd3   :  { %2554 = vsyncadd [#allocation2 + $0xd], 4294967040 }
  0xd4   :  { %2555 = dma.done.wait [#allocation2 + $0x11], 256 }
  0xd5   :  { %2556 = vsyncadd [#allocation2 + $0x11], 4294967040 }
  0xd6   :  { %2557 = dma.done.wait [#allocation2 + $0x15], 256 }
  0xd7   :  { %2558 = vsyncadd [#allocation2 + $0x15], 4294967040 }
  0xd8   :  { %2559 = dma.done.wait [#allocation2 + $0x19], 256 }
  0xd9   :  { %2560 = vsyncadd [#allocation2 + $0x19], 4294967040 }
  0xda   :  { %2561 = dma.done.wait [#allocation2 + $0x1d], 256 }
  0xdb   :  { %2562 = vsyncadd [#allocation2 + $0x1d], 4294967040  ;;  %p2452_p5 = scmp.eq.s32.totalorder %s2730_s23, 0 }
  0xdc   :  { %s3125_s1 = sld [smem:[#allocation80_spill]] (!%p2452_p5)  ;;  %v1313_v48 = vld [vmem:[%s2750_s22] sm:$0xff] (!%p2452_p5)  ;;  %v1315_v49 = vld [vmem:[%s2750_s22 + $0x8] sm:$0xff] (!%p2452_p5)  ;;  %s3126_s14 = sld [smem:[#allocation95_spill]] (!%p2452_p5) }
  0xdd   :  { %1277 = sbr.rel (%p2452_p5) target bundleno = 230 (0xe6), region = 821 }
  0xe2   :  { %s2453_s4 = sshll.u32 (!%p2452_p5), %s3125_s1, 4 }
  0xe3   :  { %s1279_s21 = scalar_lea.vmem (!%p2452_p5), %s3126_s14, %s2453_s4 }
  0xe4   :  { %1314 = vst [vmem:[%s1279_s21] sm:$0xff] %v1313_v48  ;;  %1316 = vst [vmem:[%s1279_s21 + $0x8] sm:$0xff] %v1315_v49 }
  0xe5   :  { %1324 = vsyncadd [#allocation2 + $0x3], 256 }
  0xe6 PF:  { %s3127_s28 = sld [smem:[#allocation88_spill]] }
  0xec   :  { %p2454_p6 = scmp.eq.s32.totalorder %s3127_s28, 0 }
  0xed   :  { %s3128_s12 = sld [smem:[#allocation81_spill]] (!%p2454_p6)  ;;  %v1364_v50 = vld [vmem:[%s2784_s17] sm:$0xff] (!%p2454_p6)  ;;  %v1366_v51 = vld [vmem:[%s2784_s17 + $0x8] sm:$0xff] (!%p2454_p6)  ;;  %s3129_s22 = sld [smem:[#allocation95_spill]] (!%p2454_p6) }
  0xee   :  { %1328 = sbr.rel (%p2454_p6) target bundleno = 247 (0xf7), region = 859 }
  0xf3   :  { %s2455_s30 = sshll.u32 (!%p2454_p6), %s3128_s12, 4 }
  0xf4   :  { %s1330_s13 = scalar_lea.vmem (!%p2454_p6), %s3129_s22, %s2455_s30 }
  0xf5   :  { %1365 = vst [vmem:[%s1330_s13] sm:$0xff] %v1364_v50  ;;  %1367 = vst [vmem:[%s1330_s13 + $0x8] sm:$0xff] %v1366_v51 }
  0xf6   :  { %1375 = vsyncadd [#allocation2 + $0x7], 256 }
  0xf7 PF:  { %s3130_s25 = sld [smem:[#allocation89_spill]] }
  0xfd   :  { %p2456_p7 = scmp.eq.s32.totalorder %s3130_s25, 0 }
  0xfe   :  { %s3131_s27 = sld [smem:[#allocation82_spill]] (!%p2456_p7)  ;;  %v1415_v52 = vld [vmem:[%s2818_s18] sm:$0xff] (!%p2456_p7)  ;;  %v1417_v53 = vld [vmem:[%s2818_s18 + $0x8] sm:$0xff] (!%p2456_p7)  ;;  %s3132_s17 = sld [smem:[#allocation95_spill]] (!%p2456_p7) }
  0xff   :  { %1379 = sbr.rel (%p2456_p7) target bundleno = 264 (0x108), region = 897 }
 0x104   :  { %s2457_s3 = sshll.u32 (!%p2456_p7), %s3131_s27, 4 }
 0x105   :  { %s1381_s8 = scalar_lea.vmem (!%p2456_p7), %s3132_s17, %s2457_s3 }
 0x106   :  { %1416 = vst [vmem:[%s1381_s8] sm:$0xff] %v1415_v52  ;;  %1418 = vst [vmem:[%s1381_s8 + $0x8] sm:$0xff] %v1417_v53 }
 0x107   :  { %1426 = vsyncadd [#allocation2 + $0xb], 256 }
 0x108 PF:  { %s3133_s2 = sld [smem:[#allocation90_spill]] }
 0x10e   :  { %p2458_p8 = scmp.eq.s32.totalorder %s3133_s2, 0 }
 0x10f   :  { %s3134_s26 = sld [smem:[#allocation83_spill]] (!%p2458_p8)  ;;  %v1466_v54 = vld [vmem:[%s2852_s19] sm:$0xff] (!%p2458_p8)  ;;  %v1468_v55 = vld [vmem:[%s2852_s19 + $0x8] sm:$0xff] (!%p2458_p8)  ;;  %s3135_s18 = sld [smem:[#allocation95_spill]] (!%p2458_p8) }
 0x110   :  { %1430 = sbr.rel (%p2458_p8) target bundleno = 281 (0x119), region = 935 }
 0x115   :  { %s2459_s29 = sshll.u32 (!%p2458_p8), %s3134_s26, 4 }
 0x116   :  { %s1432_s4 = scalar_lea.vmem (!%p2458_p8), %s3135_s18, %s2459_s29 }
 0x117   :  { %1467 = vst [vmem:[%s1432_s4] sm:$0xff] %v1466_v54  ;;  %1469 = vst [vmem:[%s1432_s4 + $0x8] sm:$0xff] %v1468_v55 }
 0x118   :  { %1477 = vsyncadd [#allocation2 + $0xf], 256 }
 0x119 PF:  { %s3136_s5 = sld [smem:[#allocation91_spill]] }
 0x11f   :  { %p2460_p9 = scmp.eq.s32.totalorder %s3136_s5, 0 }
 0x120   :  { %s3137_s24 = sld [smem:[#allocation84_spill]] (!%p2460_p9)  ;;  %v1517_v56 = vld [vmem:[%s2886_s20] sm:$0xff] (!%p2460_p9)  ;;  %v1519_v57 = vld [vmem:[%s2886_s20 + $0x8] sm:$0xff] (!%p2460_p9)  ;;  %s3138_s19 = sld [smem:[#allocation95_spill]] (!%p2460_p9) }
 0x121   :  { %1481 = sbr.rel (%p2460_p9) target bundleno = 298 (0x12a), region = 973 }
 0x126   :  { %s2461_s14 = sshll.u32 (!%p2460_p9), %s3137_s24, 4 }
 0x127   :  { %s1483_s12 = scalar_lea.vmem (!%p2460_p9), %s3138_s19, %s2461_s14 }
 0x128   :  { %1518 = vst [vmem:[%s1483_s12] sm:$0xff] %v1517_v56  ;;  %1520 = vst [vmem:[%s1483_s12 + $0x8] sm:$0xff] %v1519_v57 }
 0x129   :  { %1528 = vsyncadd [#allocation2 + $0x13], 256 }
 0x12a PF:  { %s3139_s30 = sld [smem:[#allocation92_spill]] }
 0x130   :  { %p2462_p10 = scmp.eq.s32.totalorder %s3139_s30, 0 }
 0x131   :  { %s3140_s10 = sld [smem:[#allocation85_spill]] (!%p2462_p10)  ;;  %v1568_v58 = vld [vmem:[%s2920_s11] sm:$0xff] (!%p2462_p10)  ;;  %v1570_v59 = vld [vmem:[%s2920_s11 + $0x8] sm:$0xff] (!%p2462_p10)  ;;  %s3141_s20 = sld [smem:[#allocation95_spill]] (!%p2462_p10) }
 0x132   :  { %1532 = sbr.rel (%p2462_p10) target bundleno = 315 (0x13b), region = 1011 }
 0x137   :  { %s2463_s16 = sshll.u32 (!%p2462_p10), %s3140_s10, 4 }
 0x138   :  { %s1534_s25 = scalar_lea.vmem (!%p2462_p10), %s3141_s20, %s2463_s16 }
 0x139   :  { %1569 = vst [vmem:[%s1534_s25] sm:$0xff] %v1568_v58  ;;  %1571 = vst [vmem:[%s1534_s25 + $0x8] sm:$0xff] %v1570_v59 }
 0x13a   :  { %1579 = vsyncadd [#allocation2 + $0x17], 256 }
 0x13b PF:  { %s3142_s27 = sld [smem:[#allocation93_spill]] }
 0x141   :  { %p2464_p11 = scmp.eq.s32.totalorder %s3142_s27, 0 }
 0x142   :  { %s3143_s3 = sld [smem:[#allocation86_spill]] (!%p2464_p11)  ;;  %v1619_v60 = vld [vmem:[%s2954_s6] sm:$0xff] (!%p2464_p11)  ;;  %v1621_v61 = vld [vmem:[%s2954_s6 + $0x8] sm:$0xff] (!%p2464_p11)  ;;  %s3144_s11 = sld [smem:[#allocation95_spill]] (!%p2464_p11) }
 0x143   :  { %1583 = sbr.rel (%p2464_p11) target bundleno = 332 (0x14c), region = 1049 }
 0x148   :  { %s2465_s0 = sshll.u32 (!%p2464_p11), %s3143_s3, 4 }
 0x149   :  { %s1585_s8 = scalar_lea.vmem (!%p2464_p11), %s3144_s11, %s2465_s0 }
 0x14a   :  { %1620 = vst [vmem:[%s1585_s8] sm:$0xff] %v1619_v60  ;;  %1622 = vst [vmem:[%s1585_s8 + $0x8] sm:$0xff] %v1621_v61 }
 0x14b   :  { %1630 = vsyncadd [#allocation2 + $0x1b], 256 }
 0x14c PF:  { %s3145_s2 = sld [smem:[#allocation94_spill]] }
 0x152   :  { %p2466_p12 = scmp.eq.s32.totalorder %s3145_s2, 0 }
 0x153   :  { %s3146_s26 = sld [smem:[#allocation87_spill]] (!%p2466_p12)  ;;  %v1670_v62 = vld [vmem:[%s2988_s15] sm:$0xff] (!%p2466_p12)  ;;  %v1672_v63 = vld [vmem:[%s2988_s15 + $0x8] sm:$0xff] (!%p2466_p12) }
 0x154   :  { %1634 = sbr.rel (%p2466_p12) target bundleno = 349 (0x15d), region = 1087  ;;  %s3147_s6 = sld [smem:[#allocation95_spill]] (!%p2466_p12) }
 0x159   :  { %s2467_s29 = sshll.u32 (!%p2466_p12), %s3146_s26, 4 }
 0x15a   :  { %s1636_s18 = scalar_lea.vmem (!%p2466_p12), %s3147_s6, %s2467_s29 }
 0x15b   :  { %1671 = vst [vmem:[%s1636_s18] sm:$0xff] %v1670_v62  ;;  %1673 = vst [vmem:[%s1636_s18 + $0x8] sm:$0xff] %v1672_v63 }
 0x15c   :  { %1681 = vsyncadd [#allocation2 + $0x1f], 256 }
 0x15d PF:  { %2563 = dma.done.wait [#allocation2], 256 }
 0x15e   :  { %2564 = vsyncadd [#allocation2], 4294967040 }
 0x15f   :  { %2565 = dma.done.wait [#allocation2 + $0x2], 256 }
 0x160   :  { %2566 = vsyncadd [#allocation2 + $0x2], 4294967040 }
 0x161   :  { %2567 = dma.done.wait [#allocation2 + $0x4], 256 }
 0x162   :  { %2568 = vsyncadd [#allocation2 + $0x4], 4294967040 }
 0x163   :  { %2569 = dma.done.wait [#allocation2 + $0x6], 256 }
 0x164   :  { %2570 = vsyncadd [#allocation2 + $0x6], 4294967040 }
 0x165   :  { %2571 = dma.done.wait [#allocation2 + $0x8], 256 }
 0x166   :  { %2572 = vsyncadd [#allocation2 + $0x8], 4294967040 }
 0x167   :  { %2573 = dma.done.wait [#allocation2 + $0xa], 256 }
 0x168   :  { %2574 = vsyncadd [#allocation2 + $0xa], 4294967040 }
 0x169   :  { %2575 = dma.done.wait [#allocation2 + $0xc], 256 }
 0x16a   :  { %2576 = vsyncadd [#allocation2 + $0xc], 4294967040 }
 0x16b   :  { %2577 = dma.done.wait [#allocation2 + $0xe], 256 }
 0x16c   :  { %2578 = vsyncadd [#allocation2 + $0xe], 4294967040 }
 0x16d   :  { %2579 = dma.done.wait [#allocation2 + $0x10], 256 }
 0x16e   :  { %2580 = vsyncadd [#allocation2 + $0x10], 4294967040 }
 0x16f   :  { %2581 = dma.done.wait [#allocation2 + $0x12], 256 }
 0x170   :  { %2582 = vsyncadd [#allocation2 + $0x12], 4294967040 }
 0x171   :  { %2583 = dma.done.wait [#allocation2 + $0x14], 256 }
 0x172   :  { %2584 = vsyncadd [#allocation2 + $0x14], 4294967040 }
 0x173   :  { %2585 = dma.done.wait [#allocation2 + $0x16], 256 }
 0x174   :  { %2586 = vsyncadd [#allocation2 + $0x16], 4294967040 }
 0x175   :  { %2587 = dma.done.wait [#allocation2 + $0x18], 256 }
 0x176   :  { %2588 = vsyncadd [#allocation2 + $0x18], 4294967040 }
 0x177   :  { %2589 = dma.done.wait [#allocation2 + $0x1a], 256 }
 0x178   :  { %2590 = vsyncadd [#allocation2 + $0x1a], 4294967040 }
 0x179   :  { %2591 = dma.done.wait [#allocation2 + $0x1c], 256 }
 0x17a   :  { %2592 = vsyncadd [#allocation2 + $0x1c], 4294967040 }
 0x17b   :  { %2593 = dma.done.wait [#allocation2 + $0x1e], 256 }
 0x17c   :  { %2594 = vsyncadd [#allocation2 + $0x1e], 4294967040  ;;  %p2524_p13 = scmp.ne.s32.totalorder %s2730_s23, 0 }
 0x17e   :  { %2596 = dma.done.wait (%p2524_p13), [#allocation2 + $0x3], 256 }
 0x17f   :  { %2598 = vsyncadd (%p2524_p13), [#allocation2 + $0x3], 4294967040  ;;  %s3148_s15 = sld [smem:[#allocation88_spill]] }
 0x185   :  { %p2525_p0 = scmp.ne.s32.totalorder %s3148_s15, 0 }
 0x187   :  { %2600 = dma.done.wait (%p2525_p0), [#allocation2 + $0x7], 256 }
 0x188   :  { %2602 = vsyncadd (%p2525_p0), [#allocation2 + $0x7], 4294967040  ;;  %s3149_s4 = sld [smem:[#allocation89_spill]] }
 0x18e   :  { %p2526_p1 = scmp.ne.s32.totalorder %s3149_s4, 0 }
 0x190   :  { %2604 = dma.done.wait (%p2526_p1), [#allocation2 + $0xb], 256 }
 0x191   :  { %2606 = vsyncadd (%p2526_p1), [#allocation2 + $0xb], 4294967040  ;;  %s3150_s5 = sld [smem:[#allocation90_spill]] }
 0x197   :  { %p2527_p2 = scmp.ne.s32.totalorder %s3150_s5, 0 }
 0x199   :  { %2608 = dma.done.wait (%p2527_p2), [#allocation2 + $0xf], 256 }
 0x19a   :  { %2610 = vsyncadd (%p2527_p2), [#allocation2 + $0xf], 4294967040  ;;  %s3151_s24 = sld [smem:[#allocation91_spill]] }
 0x1a0   :  { %p2528_p3 = scmp.ne.s32.totalorder %s3151_s24, 0 }
 0x1a2   :  { %2612 = dma.done.wait (%p2528_p3), [#allocation2 + $0x13], 256 }
 0x1a3   :  { %2614 = vsyncadd (%p2528_p3), [#allocation2 + $0x13], 4294967040  ;;  %s3152_s14 = sld [smem:[#allocation92_spill]] }
 0x1a9   :  { %p2529_p4 = scmp.ne.s32.totalorder %s3152_s14, 0 }
 0x1ab   :  { %2616 = dma.done.wait (%p2529_p4), [#allocation2 + $0x17], 256 }
 0x1ac   :  { %2618 = vsyncadd (%p2529_p4), [#allocation2 + $0x17], 4294967040  ;;  %s3153_s23 = sld [smem:[#allocation93_spill]] }
 0x1b2   :  { %p2530_p5 = scmp.ne.s32.totalorder %s3153_s23, 0 }
 0x1b4   :  { %2620 = dma.done.wait (%p2530_p5), [#allocation2 + $0x1b], 256 }
 0x1b5   :  { %2622 = vsyncadd (%p2530_p5), [#allocation2 + $0x1b], 4294967040  ;;  %s3154_s21 = sld [smem:[#allocation94_spill]] }
 0x1bb   :  { %p2531_p6 = scmp.ne.s32.totalorder %s3154_s21, 0 }
 0x1bd   :  { %2624 = dma.done.wait (%p2531_p6), [#allocation2 + $0x1f], 256 }
 0x1be   :  { %2626 = vsyncadd (%p2531_p6), [#allocation2 + $0x1f], 4294967040 }
 0x1bf   :  { %1762 = vsyncmov [#allocation2] }
 0x1c2   :  { %s1763_s28 = vpop.sfrf %1762 }
 0x1c3   :  { %p2476_p7 = scmp.ne.s32.totalorder %s1763_s28, 0 }
 0x1c5   :  { %1767 = shalt.err (%p2476_p7)  }
 0x1c6   :  { %1769 = vsyncmov [#allocation2 + $0x1] }
 0x1c9   :  { %s1770_s19 = vpop.sfrf %1769 }
 0x1ca   :  { %p2477_p8 = scmp.ne.s32.totalorder %s1770_s19, 0 }
 0x1cc   :  { %1774 = shalt.err (%p2477_p8)  }
 0x1cd   :  { %1776 = vsyncmov [#allocation2 + $0x2] }
 0x1d0   :  { %s1777_s12 = vpop.sfrf %1776 }
 0x1d1   :  { %p2478_p9 = scmp.ne.s32.totalorder %s1777_s12, 0 }
 0x1d3   :  { %1781 = shalt.err (%p2478_p9)  }
 0x1d4   :  { %1783 = vsyncmov [#allocation2 + $0x3] }
 0x1d7   :  { %s1784_s30 = vpop.sfrf %1783 }
 0x1d8   :  { %p2479_p10 = scmp.ne.s32.totalorder %s1784_s30, 0 }
 0x1da   :  { %1788 = shalt.err (%p2479_p10)  }
 0x1db   :  { %1790 = vsyncmov [#allocation2 + $0x4] }
 0x1de   :  { %s1791_s10 = vpop.sfrf %1790 }
 0x1df   :  { %p2480_p11 = scmp.ne.s32.totalorder %s1791_s10, 0 }
 0x1e1   :  { %1795 = shalt.err (%p2480_p11)  }
 0x1e2   :  { %1797 = vsyncmov [#allocation2 + $0x5] }
 0x1e5   :  { %s1798_s16 = vpop.sfrf %1797 }
 0x1e6   :  { %p2481_p12 = scmp.ne.s32.totalorder %s1798_s16, 0 }
 0x1e8   :  { %1802 = shalt.err (%p2481_p12)  }
 0x1e9   :  { %1804 = vsyncmov [#allocation2 + $0x6] }
 0x1ec   :  { %s1805_s22 = vpop.sfrf %1804 }
 0x1ed   :  { %p2482_p13 = scmp.ne.s32.totalorder %s1805_s22, 0 }
 0x1ef   :  { %1809 = shalt.err (%p2482_p13)  }
 0x1f0   :  { %1811 = vsyncmov [#allocation2 + $0x7] }
 0x1f3   :  { %s1812_s13 = vpop.sfrf %1811 }
 0x1f4   :  { %p2483_p0 = scmp.ne.s32.totalorder %s1812_s13, 0 }
 0x1f6   :  { %1816 = shalt.err (%p2483_p0)  }
 0x1f7   :  { %1818 = vsyncmov [#allocation2 + $0x8] }
 0x1fa   :  { %s1819_s20 = vpop.sfrf %1818 }
 0x1fb   :  { %p2484_p1 = scmp.ne.s32.totalorder %s1819_s20, 0 }
 0x1fd   :  { %1823 = shalt.err (%p2484_p1)  }
 0x1fe   :  { %1825 = vsyncmov [#allocation2 + $0x9] }
 0x201   :  { %s1826_s25 = vpop.sfrf %1825 }
 0x202   :  { %p2485_p2 = scmp.ne.s32.totalorder %s1826_s25, 0 }
 0x204   :  { %1830 = shalt.err (%p2485_p2)  }
 0x205   :  { %1832 = vsyncmov [#allocation2 + $0xa] }
 0x208   :  { %s1833_s27 = vpop.sfrf %1832 }
 0x209   :  { %p2486_p3 = scmp.ne.s32.totalorder %s1833_s27, 0 }
 0x20b   :  { %1837 = shalt.err (%p2486_p3)  }
 0x20c   :  { %1839 = vsyncmov [#allocation2 + $0xb] }
 0x20f   :  { %s1840_s3 = vpop.sfrf %1839 }
 0x210   :  { %p2487_p4 = scmp.ne.s32.totalorder %s1840_s3, 0 }
 0x212   :  { %1844 = shalt.err (%p2487_p4)  }
 0x213   :  { %1846 = vsyncmov [#allocation2 + $0xc] }
 0x216   :  { %s1847_s0 = vpop.sfrf %1846 }
 0x217   :  { %p2488_p5 = scmp.ne.s32.totalorder %s1847_s0, 0 }
 0x219   :  { %1851 = shalt.err (%p2488_p5)  }
 0x21a   :  { %1853 = vsyncmov [#allocation2 + $0xd] }
 0x21d   :  { %s1854_s9 = vpop.sfrf %1853 }
 0x21e   :  { %p2489_p6 = scmp.ne.s32.totalorder %s1854_s9, 0 }
 0x220   :  { %1858 = shalt.err (%p2489_p6)  }
 0x221   :  { %1860 = vsyncmov [#allocation2 + $0xe] }
 0x224   :  { %s1861_s17 = vpop.sfrf %1860 }
 0x225   :  { %p2490_p7 = scmp.ne.s32.totalorder %s1861_s17, 0 }
 0x227   :  { %1865 = shalt.err (%p2490_p7)  }
 0x228   :  { %1867 = vsyncmov [#allocation2 + $0xf] }
 0x22b   :  { %s1868_s11 = vpop.sfrf %1867 }
 0x22c   :  { %p2491_p8 = scmp.ne.s32.totalorder %s1868_s11, 0 }
 0x22e   :  { %1872 = shalt.err (%p2491_p8)  }
 0x22f   :  { %1874 = vsyncmov [#allocation2 + $0x10] }
 0x232   :  { %s1875_s8 = vpop.sfrf %1874 }
 0x233   :  { %p2492_p9 = scmp.ne.s32.totalorder %s1875_s8, 0 }
 0x235   :  { %1879 = shalt.err (%p2492_p9)  }
 0x236   :  { %1881 = vsyncmov [#allocation2 + $0x11] }
 0x239   :  { %s1882_s2 = vpop.sfrf %1881 }
 0x23a   :  { %p2493_p10 = scmp.ne.s32.totalorder %s1882_s2, 0 }
 0x23c   :  { %1886 = shalt.err (%p2493_p10)  }
 0x23d   :  { %1888 = vsyncmov [#allocation2 + $0x12] }
 0x240   :  { %s1889_s26 = vpop.sfrf %1888 }
 0x241   :  { %p2494_p11 = scmp.ne.s32.totalorder %s1889_s26, 0 }
 0x243   :  { %1893 = shalt.err (%p2494_p11)  }
 0x244   :  { %1895 = vsyncmov [#allocation2 + $0x13] }
 0x247   :  { %s1896_s29 = vpop.sfrf %1895 }
 0x248   :  { %p2495_p12 = scmp.ne.s32.totalorder %s1896_s29, 0 }
 0x24a   :  { %1900 = shalt.err (%p2495_p12)  }
 0x24b   :  { %1902 = vsyncmov [#allocation2 + $0x14] }
 0x24e   :  { %s1903_s7 = vpop.sfrf %1902 }
 0x24f   :  { %p2496_p13 = scmp.ne.s32.totalorder %s1903_s7, 0 }
 0x251   :  { %1907 = shalt.err (%p2496_p13)  }
 0x252   :  { %1909 = vsyncmov [#allocation2 + $0x15] }
 0x255   :  { %s1910_s1 = vpop.sfrf %1909 }
 0x256   :  { %p2497_p0 = scmp.ne.s32.totalorder %s1910_s1, 0 }
 0x258   :  { %1914 = shalt.err (%p2497_p0)  }
 0x259   :  { %1916 = vsyncmov [#allocation2 + $0x16] }
 0x25c   :  { %s1917_s6 = vpop.sfrf %1916 }
 0x25d   :  { %p2498_p1 = scmp.ne.s32.totalorder %s1917_s6, 0 }
 0x25f   :  { %1921 = shalt.err (%p2498_p1)  }
 0x260   :  { %1923 = vsyncmov [#allocation2 + $0x17] }
 0x263   :  { %s1924_s18 = vpop.sfrf %1923 }
 0x264   :  { %p2499_p2 = scmp.ne.s32.totalorder %s1924_s18, 0 }
 0x266   :  { %1928 = shalt.err (%p2499_p2)  }
 0x267   :  { %1930 = vsyncmov [#allocation2 + $0x18] }
 0x26a   :  { %s1931_s15 = vpop.sfrf %1930 }
 0x26b   :  { %p2500_p3 = scmp.ne.s32.totalorder %s1931_s15, 0 }
 0x26d   :  { %1935 = shalt.err (%p2500_p3)  }
 0x26e   :  { %1937 = vsyncmov [#allocation2 + $0x19] }
 0x271   :  { %s1938_s4 = vpop.sfrf %1937 }
 0x272   :  { %p2501_p4 = scmp.ne.s32.totalorder %s1938_s4, 0 }
 0x274   :  { %1942 = shalt.err (%p2501_p4)  }
 0x275   :  { %1944 = vsyncmov [#allocation2 + $0x1a] }
 0x278   :  { %s1945_s5 = vpop.sfrf %1944 }
 0x279   :  { %p2502_p5 = scmp.ne.s32.totalorder %s1945_s5, 0 }
 0x27b   :  { %1949 = shalt.err (%p2502_p5)  }
 0x27c   :  { %1951 = vsyncmov [#allocation2 + $0x1b] }
 0x27f   :  { %s1952_s24 = vpop.sfrf %1951 }
 0x280   :  { %p2503_p6 = scmp.ne.s32.totalorder %s1952_s24, 0 }
 0x282   :  { %1956 = shalt.err (%p2503_p6)  }
 0x283   :  { %1958 = vsyncmov [#allocation2 + $0x1c] }
 0x286   :  { %s1959_s14 = vpop.sfrf %1958 }
 0x287   :  { %p2504_p7 = scmp.ne.s32.totalorder %s1959_s14, 0 }
 0x289   :  { %1963 = shalt.err (%p2504_p7)  }
 0x28a   :  { %1965 = vsyncmov [#allocation2 + $0x1d] }
 0x28d   :  { %s1966_s23 = vpop.sfrf %1965 }
 0x28e   :  { %p2505_p8 = scmp.ne.s32.totalorder %s1966_s23, 0 }
 0x290   :  { %1970 = shalt.err (%p2505_p8)  }
 0x291   :  { %1972 = vsyncmov [#allocation2 + $0x1e] }
 0x294   :  { %s1973_s21 = vpop.sfrf %1972 }
 0x295   :  { %p2506_p9 = scmp.ne.s32.totalorder %s1973_s21, 0 }
 0x297   :  { %1977 = shalt.err (%p2506_p9)  }
 0x298   :  { %1979 = vsyncmov [#allocation2 + $0x1f] }
 0x29b   :  { %s1980_s28 = vpop.sfrf %1979 }
 0x29c   :  { %p2507_p10 = scmp.ne.s32.totalorder %s1980_s28, 0 }
 0x29e   :  { %1984 = shalt.err (%p2507_p10)  }

</bundles_post_ra>
